<compile_context>
chip_gen: v7x
topology: tpu7x:2x2x1
jax: 0.10.0
libtpu: 0.0.40
codegen_flags: <defaults>
</compile_context>

<pallas_src>
import functools

import numpy as np
import jax
import jax.numpy as jnp
from jax import lax
from jax.experimental import pallas as pl
from jax.experimental.pallas import tpu as pltpu


# ----------------------------------------------------------------------------
# Pallas kernel 1: conv1 as a transposed im2col matmul + bias + ReLU.
#   w_ref:  (C1, C*K*K)          bf16
#   x_ref:  (C*K*K, BT*OH1*OW1)  bf16   (patches, transposed -> lane-dense out)
#   out:    (C1, BT*OH1*OW1)     bf16   (lanes = pixels, unmasked stores)
# ----------------------------------------------------------------------------
def _conv1_kernel(w_ref, x_ref, b_ref, o_ref):
    acc = jnp.dot(w_ref[...], x_ref[...], preferred_element_type=jnp.float32)
    acc = jnp.maximum(acc + b_ref[...], 0.0)
    o_ref[...] = acc.astype(o_ref.dtype)


# ----------------------------------------------------------------------------
# Pallas kernel 2 (fused, one grid step per batch element):
#   conv2 (im2col matmul + bias + ReLU) -> AdaptiveAvgPool2d((4,4)) as a
#   constant matmul -> LSTM input projection -> LSTM recurrence -> FC head.
#   Everything after the patches2 DMA stays in VMEM/registers.
# ----------------------------------------------------------------------------
def _mega_kernel(p2_ref, w2_ref, b2_ref, pool_ref, v_ref, bg_ref,
                 whh_ref, wfc_ref, bfc_ref, o_ref, *, seq, hidden, n_pool):
    H = hidden

    # conv2: (seq*OH2*OW2, C1*25) @ (C1*25, C2) + bias, ReLU  -> (seq*64, C2) f32
    acc2 = jnp.dot(p2_ref[...], w2_ref[...], preferred_element_type=jnp.float32)
    acc2 = jnp.maximum(acc2 + b2_ref[...], 0.0)

    # AdaptiveAvgPool2d((4,4)) as ONE constant matmul on the MXU.
    # f2 rows are (pool_pos, t); cols are conv2 channels.
    f2 = jnp.dot(pool_ref[...], acc2, preferred_element_type=jnp.float32)

    # LSTM input projection: pooled feats @ W_ih^T + (b_ih + b_hh).
    # The NCHW flatten is folded into v_ref's (n_pool, C2, 4H) layout, so this
    # is n_pool small sublane-aligned dots (no transpose/reshape relayouts).
    gates_x = jnp.zeros((seq, 4 * H), jnp.float32) + bg_ref[...]
    for p in range(n_pool):
        fp = f2[p * seq:(p + 1) * seq, :].astype(jnp.bfloat16)      # (seq, C2)
        gates_x = gates_x + jnp.dot(fp, v_ref[p],
                                    preferred_element_type=jnp.float32)

    # LSTM recurrence (zero initial state, as in nn.LSTM) + FC on last hidden.
    whh = whh_ref[...]                                              # (H, 4H) bf16
    h = jnp.zeros((1, H), jnp.float32)
    c = jnp.zeros((1, H), jnp.float32)
    for t in range(seq):
        g = gates_x[t:t + 1, :]
        if t > 0:   # h == 0 at t == 0 (zero initial state) -> skip the dot
            g = g + jnp.dot(h.astype(jnp.bfloat16), whh,
                            preferred_element_type=jnp.float32)
        i_g = jax.nn.sigmoid(g[:, 0:H])
        f_g = jax.nn.sigmoid(g[:, H:2 * H])
        g_g = jnp.tanh(g[:, 2 * H:3 * H])
        o_g = jax.nn.sigmoid(g[:, 3 * H:4 * H])
        c = f_g * c + i_g * g_g
        h = o_g * jnp.tanh(c)

    res = jnp.dot(h, wfc_ref[...], preferred_element_type=jnp.float32) + bfc_ref[...]
    o_ref[...] = jnp.broadcast_to(res.reshape(1, 1, 1), o_ref.shape)


# ----------------------------------------------------------------------------
# XLA glue: im2col (standard and transposed) and the constant pooling matrix.
# ----------------------------------------------------------------------------
def im2col(x_nhwc, ksize, stride, pad):
    """rows = (n, oh, ow), cols = (c, kh, kw)  -- matches OIHW weight flatten."""
    N, H, W, C = x_nhwc.shape
    OH = (H + 2 * pad - ksize) // stride + 1
    OW = (W + 2 * pad - ksize) // stride + 1
    xp = jnp.pad(x_nhwc, ((0, 0), (pad, pad), (pad, pad), (0, 0)))
    cols = []
    for kh in range(ksize):
        for kw in range(ksize):
            sl = xp[:, kh:kh + stride * (OH - 1) + 1:stride,
                       kw:kw + stride * (OW - 1) + 1:stride, :]     # (N,OH,OW,C)
            cols.append(sl)
    patches = jnp.stack(cols, axis=-1)                              # (N,OH,OW,C,KK)
    return patches.reshape(N * OH * OW, C * ksize * ksize), OH, OW


def im2col_T(x_nhwc, ksize, stride, pad):
    """rows = (c, kh, kw), cols = (n, oh, ow)  -- transposed patch matrix."""
    N, H, W, C = x_nhwc.shape
    OH = (H + 2 * pad - ksize) // stride + 1
    OW = (W + 2 * pad - ksize) // stride + 1
    xp = jnp.pad(x_nhwc, ((0, 0), (pad, pad), (pad, pad), (0, 0)))
    cols = []
    for kh in range(ksize):
        for kw in range(ksize):
            sl = xp[:, kh:kh + stride * (OH - 1) + 1:stride,
                       kw:kw + stride * (OW - 1) + 1:stride, :]     # (N,OH,OW,C)
            cols.append(sl)
    pt = jnp.stack(cols, axis=0)                                    # (KK,N,OH,OW,C)
    pt = pt.transpose(4, 0, 1, 2, 3)                                # (C,KK,N,OH,OW)
    return pt.reshape(C * ksize * ksize, N * OH * OW), OH, OW


def build_pool_matrix(seq, oh, ow, out_hw):
    """Constant AdaptiveAvgPool2d((4,4)) matrix.
    rows = (pool_pos, t), cols = (t, oh*ow)."""
    ph, pw = oh // out_hw, ow // out_hw
    n_s, n_p = oh * ow, out_hw * out_hw
    m = np.zeros((n_p * seq, seq * n_s), np.float32)
    inv = 1.0 / (ph * pw)
    for r in range(oh):
        for c in range(ow):
            pidx = (r // ph) * out_hw + (c // pw)
            sidx = r * ow + c
            for t in range(seq):
                m[pidx * seq + t, t * n_s + sidx] = inv
    return jnp.asarray(m)


# ----------------------------------------------------------------------------
# Parameters (PyTorch layouts) and forward pass
# ----------------------------------------------------------------------------
def init_params(key, hidden=128, embed=512, scale=0.05):
    ks = jax.random.split(key, 10)
    return {
        "w1": jax.random.normal(ks[0], (16, 1, 5, 5), jnp.float32) * scale,
        "b1": jax.random.normal(ks[1], (16,), jnp.float32) * scale,
        "w2": jax.random.normal(ks[2], (32, 16, 5, 5), jnp.float32) * scale,
        "b2": jax.random.normal(ks[3], (32,), jnp.float32) * scale,
        "w_ih": jax.random.normal(ks[4], (4 * hidden, embed), jnp.float32) * scale,
        "w_hh": jax.random.normal(ks[5], (4 * hidden, hidden), jnp.float32) * scale,
        "b_ih": jax.random.normal(ks[6], (4 * hidden,), jnp.float32) * scale,
        "b_hh": jax.random.normal(ks[7], (4 * hidden,), jnp.float32) * scale,
        "w_fc": jax.random.normal(ks[8], (1, hidden), jnp.float32) * scale,
        "b_fc": jax.random.normal(ks[9], (1,), jnp.float32) * scale,
    }


def forward(x_seq, p):
    B, T, C, H, W = x_seq.shape
    BT = B * T
    x = x_seq.reshape(BT, C, H, W).transpose(0, 2, 3, 1).astype(jnp.bfloat16)  # NHWC

    # ---- conv1: C->16, k5 s2 p2, ReLU (Pallas, lane-dense transposed output) ----
    C1 = p["w1"].shape[0]
    patches1T, OH1, OW1 = im2col_T(x, 5, 2, 2)                     # (C*25, BT*256)
    K1, M1 = patches1T.shape
    w1r = p["w1"].reshape(C1, K1).astype(jnp.bfloat16)
    b1 = p["b1"].reshape(C1, 1).astype(jnp.float32)

    y1T = pl.pallas_call(
        _conv1_kernel,
        out_shape=jax.ShapeDtypeStruct((C1, M1), jnp.bfloat16),
        grid=(1,),
        in_specs=[
            pl.BlockSpec((C1, K1), lambda i: (0, 0)),
            pl.BlockSpec((K1, M1), lambda i: (0, 0)),
            pl.BlockSpec((C1, 1), lambda i: (0, 0)),
        ],
        out_specs=pl.BlockSpec((C1, M1), lambda i: (0, 0)),
        compiler_params=pltpu.CompilerParams(
            dimension_semantics=("arbitrary",)),
    )(w1r, patches1T, b1)

    # ---- conv2 patches (XLA glue; see TODO at top) ----
    y1 = y1T.reshape(C1, BT, OH1, OW1).transpose(1, 2, 3, 0)       # NHWC bf16
    C2 = p["w2"].shape[0]
    patches2, OH2, OW2 = im2col(y1, 5, 2, 2)                       # (BT*64, C1*25)
    K2 = patches2.shape[1]
    w2f = p["w2"].reshape(C2, K2).T.astype(jnp.bfloat16)           # (K2, C2)
    b2 = p["b2"].reshape(1, C2).astype(jnp.float32)

    # ---- constants for the fused kernel ----
    out_hw = 4
    assert OH2 % out_hw == 0 and OW2 % out_hw == 0
    n_pool = out_hw * out_hw
    poolT = build_pool_matrix(T, OH2, OW2, out_hw)                 # (n_pool*T, T*OH2*OW2)

    fourH, D = p["w_ih"].shape
    Hh = fourH // 4
    assert D == C2 * n_pool
    # W_ih columns are NCHW-flattened (c, pool_pos); re-layout to (pool, c, 4H).
    V = p["w_ih"].T.reshape(C2, n_pool, fourH).transpose(1, 0, 2).astype(jnp.bfloat16)
    bg = (p["b_ih"] + p["b_hh"]).reshape(1, fourH).astype(jnp.float32)
    whhT = p["w_hh"].T.astype(jnp.bfloat16)                        # (H, 4H)
    wfcT = p["w_fc"].T.astype(jnp.float32)                         # (H, 1)
    bfc = p["b_fc"].reshape(1, 1).astype(jnp.float32)

    rows_per_b = T * OH2 * OW2

    out3 = pl.pallas_call(
        functools.partial(_mega_kernel, seq=T, hidden=Hh, n_pool=n_pool),
        out_shape=jax.ShapeDtypeStruct((B, 1, 128), jnp.float32),
        grid=(B,),
        in_specs=[
            pl.BlockSpec((rows_per_b, K2), lambda b: (b, 0)),       # patches2 (per batch)
            pl.BlockSpec((K2, C2), lambda b: (0, 0)),               # w2f
            pl.BlockSpec((1, C2), lambda b: (0, 0)),                # b2
            pl.BlockSpec((n_pool * T, rows_per_b), lambda b: (0, 0)),  # pool matrix
            pl.BlockSpec((n_pool, C2, fourH), lambda b: (0, 0, 0)), # W_ih re-layout
            pl.BlockSpec((1, fourH), lambda b: (0, 0)),             # gate bias
            pl.BlockSpec((Hh, fourH), lambda b: (0, 0)),            # W_hh^T
            pl.BlockSpec((Hh, 1), lambda b: (0, 0)),                # W_fc^T
            pl.BlockSpec((1, 1), lambda b: (0, 0)),                 # b_fc
        ],
        out_specs=pl.BlockSpec((1, 1, 128), lambda b: (b, 0, 0)),
        compiler_params=pltpu.CompilerParams(
            dimension_semantics=("parallel",)),
    )(patches2, w2f, b2, poolT, V, bg, whhT, wfcT, bfc)

    return out3[:, 0, :1]                                          # (B, 1)


# ----------------------------------------------------------------------------
# Pure-JAX reference (matches the PyTorch forward pass)
# ----------------------------------------------------------------------------
def reference_forward(x_seq, p, hidden=128):
    B, T, C, H, W = x_seq.shape
    x = x_seq.reshape(B * T, C, H, W)
    y = lax.conv_general_dilated(x, p["w1"], (2, 2), ((2, 2), (2, 2)),
                                 dimension_numbers=("NCHW", "OIHW", "NCHW"),
                                 precision=lax.Precision.HIGHEST)
    y = jax.nn.relu(y + p["b1"][None, :, None, None])
    y = lax.conv_general_dilated(y, p["w2"], (2, 2), ((2, 2), (2, 2)),
                                 dimension_numbers=("NCHW", "OIHW", "NCHW"),
                                 precision=lax.Precision.HIGHEST)
    y = jax.nn.relu(y + p["b2"][None, :, None, None])
    BT, Cc, Hh, Ww = y.shape
    y = y.reshape(BT, Cc, 4, Hh // 4, 4, Ww // 4).mean(axis=(3, 5))
    feats = y.reshape(B, T, -1)
    h = jnp.zeros((B, hidden), jnp.float32)
    c = jnp.zeros((B, hidden), jnp.float32)
    for t in range(T):
        gates = (feats[:, t] @ p["w_ih"].T + p["b_ih"]
                 + h @ p["w_hh"].T + p["b_hh"])
        i_g = jax.nn.sigmoid(gates[:, 0:hidden])
        f_g = jax.nn.sigmoid(gates[:, hidden:2 * hidden])
        g_g = jnp.tanh(gates[:, 2 * hidden:3 * hidden])
        o_g = jax.nn.sigmoid(gates[:, 3 * hidden:4 * hidden])
        c = f_g * c + i_g * g_g
        h = o_g * jnp.tanh(c)
    return h @ p["w_fc"].T + p["b_fc"]


if __name__ == "__main__":
    root = jax.random.PRNGKey(0)
    k_in, k_par = jax.random.split(root)
    # (B, T, C, H, W) = (2, 4, 1, 32, 32) -> conv stack gives 8x8 -> pool to 4x4
    x_seq = jax.random.normal(k_in, (2, 4, 1, 32, 32), jnp.float32)
    params = init_params(k_par)

    out = jax.jit(forward)(x_seq, params)
    out = jax.block_until_ready(out)

    assert out.shape == (2, 1)
    ref = reference_forward(x_seq, params)
    if not jnp.allclose(out, ref, atol=1e-2, rtol=1e-2):
        raise AssertionError("Pallas output does not match reference")
    print("KERNEL_OK")
</pallas_src>

<mosaic_0001>
module attributes {stable_mosaic.version = 11 : i64} {
  func.func @_conv1_kernel(%arg0: i32, %arg1: memref<16x25xbf16, #tpu.memory_space<vmem>>, %arg2: memref<25x2048xbf16, #tpu.memory_space<vmem>>, %arg3: memref<16x1xf32, #tpu.memory_space<vmem>>, %arg4: memref<16x2048xbf16, #tpu.memory_space<vmem>>) attributes {dimension_semantics = [#tpu.dimension_semantics<arbitrary>], iteration_bounds = array<i64: 1>, scalar_prefetch = 0 : i64, scratch_operands = 0 : i64, tpu.core_type = #tpu.core_type<tc>, window_params = [{pipeline_mode = #tpu.pipeline_mode<synchronous>, transform_indices = @transform_0, window_bounds = array<i64: 16, 25>}, {pipeline_mode = #tpu.pipeline_mode<synchronous>, transform_indices = @transform_1, window_bounds = array<i64: 25, 2048>}, {pipeline_mode = #tpu.pipeline_mode<synchronous>, transform_indices = @transform_2, window_bounds = array<i64: 16, 1>}, {pipeline_mode = #tpu.pipeline_mode<synchronous>, transform_indices = @transform_3, window_bounds = array<i64: 16, 2048>}]} {
    %c0 = arith.constant 0 : index
    %c0_0 = arith.constant 0 : index
    %0 = vector.load %arg1[%c0, %c0_0] : memref<16x25xbf16, #tpu.memory_space<vmem>>, vector<16x25xbf16>
    %c0_1 = arith.constant 0 : index
    %c0_2 = arith.constant 0 : index
    %1 = vector.load %arg2[%c0_1, %c0_2] : memref<25x2048xbf16, #tpu.memory_space<vmem>>, vector<25x2048xbf16>
    %cst = arith.constant dense<0.000000e+00> : vector<16x2048xf32>
    %2 = tpu.matmul %0, %1, %cst {dimension_numbers = #tpu.dot_dimension_numbers<[1], [0], [0], [1], [0, 0, 1, 1], [], []>} : vector<16x25xbf16>, vector<25x2048xbf16>, vector<16x2048xf32> -> vector<16x2048xf32>
    %c0_3 = arith.constant 0 : index
    %c0_4 = arith.constant 0 : index
    %3 = vector.load %arg3[%c0_3, %c0_4] : memref<16x1xf32, #tpu.memory_space<vmem>>, vector<16x1xf32>
    %4 = vector.broadcast %3 : vector<16x1xf32> to vector<16x2048xf32>
    %5 = arith.addf %2, %4 : vector<16x2048xf32>
    %cst_5 = arith.constant 0.000000e+00 : f32
    %6 = vector.broadcast %cst_5 : f32 to vector<16x2048xf32>
    %7 = arith.maximumf %5, %6 : vector<16x2048xf32>
    %8 = arith.truncf %7 : vector<16x2048xf32> to vector<16x2048xbf16>
    %c0_6 = arith.constant 0 : index
    %c0_7 = arith.constant 0 : index
    %9 = vector.load %arg4[%c0_6, %c0_7] : memref<16x2048xbf16, #tpu.memory_space<vmem>>, vector<16x2048xbf16>
    tpu.vector_store %arg4[%c0_6, %c0_7], %8 {strides = array<i32>} : memref<16x2048xbf16, #tpu.memory_space<vmem>>, vector<16x2048xbf16>,
    return
  }
  func.func @transform_0(%arg0: i32) -> (i32, i32) {
    %c0_i32 = arith.constant 0 : i32
    %c0_i32_0 = arith.constant 0 : i32
    %c0_i32_1 = arith.constant 0 : i32
    return %c0_i32, %c0_i32_0 : i32, i32
  }
  func.func @transform_1(%arg0: i32) -> (i32, i32) {
    %c0_i32 = arith.constant 0 : i32
    %c0_i32_0 = arith.constant 0 : i32
    %c0_i32_1 = arith.constant 0 : i32
    return %c0_i32, %c0_i32_0 : i32, i32
  }
  func.func @transform_2(%arg0: i32) -> (i32, i32) {
    %c0_i32 = arith.constant 0 : i32
    %c0_i32_0 = arith.constant 0 : i32
    %c0_i32_1 = arith.constant 0 : i32
    return %c0_i32, %c0_i32_0 : i32, i32
  }
  func.func @transform_3(%arg0: i32) -> (i32, i32) {
    %c0_i32 = arith.constant 0 : i32
    %c0_i32_0 = arith.constant 0 : i32
    %c0_i32_1 = arith.constant 0 : i32
    return %c0_i32, %c0_i32_0 : i32, i32
  }
}

module attributes {stable_mosaic.version = 11 : i64} {
  func.func @_mega_kernel(%arg0: i32, %arg1: memref<256x400xbf16, #tpu.memory_space<vmem>>, %arg2: memref<400x32xbf16, #tpu.memory_space<vmem>>, %arg3: memref<1x32xf32, #tpu.memory_space<vmem>>, %arg4: memref<64x256xf32, #tpu.memory_space<vmem>>, %arg5: memref<16x32x512xbf16, #tpu.memory_space<vmem>>, %arg6: memref<1x512xf32, #tpu.memory_space<vmem>>, %arg7: memref<128x512xbf16, #tpu.memory_space<vmem>>, %arg8: memref<128x1xf32, #tpu.memory_space<vmem>>, %arg9: memref<1x1xf32, #tpu.memory_space<vmem>>, %arg10: memref<1x1x128xf32, #tpu.memory_space<vmem>>) attributes {dimension_semantics = [#tpu.dimension_semantics<parallel>], iteration_bounds = array<i64: 2>, scalar_prefetch = 0 : i64, scratch_operands = 0 : i64, tpu.core_type = #tpu.core_type<tc>, window_params = [{transform_indices = @transform_0, window_bounds = array<i64: 256, 400>}, {pipeline_mode = #tpu.pipeline_mode<synchronous>, transform_indices = @transform_1, window_bounds = array<i64: 400, 32>}, {pipeline_mode = #tpu.pipeline_mode<synchronous>, transform_indices = @transform_2, window_bounds = array<i64: 1, 32>}, {pipeline_mode = #tpu.pipeline_mode<synchronous>, transform_indices = @transform_3, window_bounds = array<i64: 64, 256>}, {pipeline_mode = #tpu.pipeline_mode<synchronous>, transform_indices = @transform_4, window_bounds = array<i64: 16, 32, 512>}, {pipeline_mode = #tpu.pipeline_mode<synchronous>, transform_indices = @transform_5, window_bounds = array<i64: 1, 512>}, {pipeline_mode = #tpu.pipeline_mode<synchronous>, transform_indices = @transform_6, window_bounds = array<i64: 128, 512>}, {pipeline_mode = #tpu.pipeline_mode<synchronous>, transform_indices = @transform_7, window_bounds = array<i64: 128, 1>}, {pipeline_mode = #tpu.pipeline_mode<synchronous>, transform_indices = @transform_8, window_bounds = array<i64: 1, 1>}, {transform_indices = @transform_9, window_bounds = array<i64: 1, 1, 128>}]} {
    %c0 = arith.constant 0 : index
    %c0_0 = arith.constant 0 : index
    %0 = vector.load %arg1[%c0, %c0_0] : memref<256x400xbf16, #tpu.memory_space<vmem>>, vector<256x400xbf16>
    %c0_1 = arith.constant 0 : index
    %c0_2 = arith.constant 0 : index
    %1 = vector.load %arg2[%c0_1, %c0_2] : memref<400x32xbf16, #tpu.memory_space<vmem>>, vector<400x32xbf16>
    %cst = arith.constant dense<0.000000e+00> : vector<256x32xf32>
    %2 = tpu.matmul %0, %1, %cst {dimension_numbers = #tpu.dot_dimension_numbers<[1], [0], [0], [1], [0, 0, 1, 1], [], []>} : vector<256x400xbf16>, vector<400x32xbf16>, vector<256x32xf32> -> vector<256x32xf32>
    %c0_3 = arith.constant 0 : index
    %c0_4 = arith.constant 0 : index
    %3 = vector.load %arg3[%c0_3, %c0_4] : memref<1x32xf32, #tpu.memory_space<vmem>>, vector<1x32xf32>
    %4 = vector.broadcast %3 : vector<1x32xf32> to vector<256x32xf32>
    %5 = arith.addf %2, %4 : vector<256x32xf32>
    %cst_5 = arith.constant 0.000000e+00 : f32
    %6 = vector.broadcast %cst_5 : f32 to vector<256x32xf32>
    %7 = arith.maximumf %5, %6 : vector<256x32xf32>
    %c0_6 = arith.constant 0 : index
    %c0_7 = arith.constant 0 : index
    %8 = vector.load %arg4[%c0_6, %c0_7] : memref<64x256xf32, #tpu.memory_space<vmem>>, vector<64x256xf32>
    %cst_8 = arith.constant dense<0.000000e+00> : vector<64x32xf32>
    %9 = tpu.matmul %8, %7, %cst_8 {dimension_numbers = #tpu.dot_dimension_numbers<[1], [0], [0], [1], [0, 0, 1, 1], [], []>} : vector<64x256xf32>, vector<256x32xf32>, vector<64x32xf32> -> vector<64x32xf32>
    %cst_9 = arith.constant 0.000000e+00 : f32
    %10 = vector.broadcast %cst_9 : f32 to vector<4x512xf32>
    %c0_10 = arith.constant 0 : index
    %c0_11 = arith.constant 0 : index
    %11 = vector.load %arg6[%c0_10, %c0_11] : memref<1x512xf32, #tpu.memory_space<vmem>>, vector<1x512xf32>
    %12 = vector.broadcast %11 : vector<1x512xf32> to vector<4x512xf32>
    %13 = arith.addf %10, %12 : vector<4x512xf32>
    %14 = vector.extract_strided_slice %9 {offsets = [0, 0], sizes = [4, 32], strides = [1, 1]} : vector<64x32xf32> to vector<4x32xf32>
    %15 = arith.truncf %14 : vector<4x32xf32> to vector<4x32xbf16>
    %c0_12 = arith.constant 0 : index
    %c0_13 = arith.constant 0 : index
    %c0_14 = arith.constant 0 : index
    %16 = vector.load %arg5[%c0_12, %c0_13, %c0_14] : memref<16x32x512xbf16, #tpu.memory_space<vmem>>, vector<1x32x512xbf16>
    %17 = vector.shape_cast %16 : vector<1x32x512xbf16> to vector<32x512xbf16>
    %cst_15 = arith.constant dense<0.000000e+00> : vector<4x512xf32>
    %18 = tpu.matmul %15, %17, %cst_15 {dimension_numbers = #tpu.dot_dimension_numbers<[1], [0], [0], [1], [0, 0, 1, 1], [], []>} : vector<4x32xbf16>, vector<32x512xbf16>, vector<4x512xf32> -> vector<4x512xf32>
    %19 = arith.addf %13, %18 : vector<4x512xf32>
    %20 = vector.extract_strided_slice %9 {offsets = [4, 0], sizes = [4, 32], strides = [1, 1]} : vector<64x32xf32> to vector<4x32xf32>
    %21 = arith.truncf %20 : vector<4x32xf32> to vector<4x32xbf16>
    %c1 = arith.constant 1 : index
    %c0_16 = arith.constant 0 : index
    %c0_17 = arith.constant 0 : index
    %22 = vector.load %arg5[%c1, %c0_16, %c0_17] : memref<16x32x512xbf16, #tpu.memory_space<vmem>>, vector<1x32x512xbf16>
    %23 = vector.shape_cast %22 : vector<1x32x512xbf16> to vector<32x512xbf16>
    %cst_18 = arith.constant dense<0.000000e+00> : vector<4x512xf32>
    %24 = tpu.matmul %21, %23, %cst_18 {dimension_numbers = #tpu.dot_dimension_numbers<[1], [0], [0], [1], [0, 0, 1, 1], [], []>} : vector<4x32xbf16>, vector<32x512xbf16>, vector<4x512xf32> -> vector<4x512xf32>
    %25 = arith.addf %19, %24 : vector<4x512xf32>
    %26 = vector.extract_strided_slice %9 {offsets = [8, 0], sizes = [4, 32], strides = [1, 1]} : vector<64x32xf32> to vector<4x32xf32>
    %27 = arith.truncf %26 : vector<4x32xf32> to vector<4x32xbf16>
    %c2 = arith.constant 2 : index
    %c0_19 = arith.constant 0 : index
    %c0_20 = arith.constant 0 : index
    %28 = vector.load %arg5[%c2, %c0_19, %c0_20] : memref<16x32x512xbf16, #tpu.memory_space<vmem>>, vector<1x32x512xbf16>
    %29 = vector.shape_cast %28 : vector<1x32x512xbf16> to vector<32x512xbf16>
    %cst_21 = arith.constant dense<0.000000e+00> : vector<4x512xf32>
    %30 = tpu.matmul %27, %29, %cst_21 {dimension_numbers = #tpu.dot_dimension_numbers<[1], [0], [0], [1], [0, 0, 1, 1], [], []>} : vector<4x32xbf16>, vector<32x512xbf16>, vector<4x512xf32> -> vector<4x512xf32>
    %31 = arith.addf %25, %30 : vector<4x512xf32>
    %32 = vector.extract_strided_slice %9 {offsets = [12, 0], sizes = [4, 32], strides = [1, 1]} : vector<64x32xf32> to vector<4x32xf32>
    %33 = arith.truncf %32 : vector<4x32xf32> to vector<4x32xbf16>
    %c3 = arith.constant 3 : index
    %c0_22 = arith.constant 0 : index
    %c0_23 = arith.constant 0 : index
    %34 = vector.load %arg5[%c3, %c0_22, %c0_23] : memref<16x32x512xbf16, #tpu.memory_space<vmem>>, vector<1x32x512xbf16>
    %35 = vector.shape_cast %34 : vector<1x32x512xbf16> to vector<32x512xbf16>
    %cst_24 = arith.constant dense<0.000000e+00> : vector<4x512xf32>
    %36 = tpu.matmul %33, %35, %cst_24 {dimension_numbers = #tpu.dot_dimension_numbers<[1], [0], [0], [1], [0, 0, 1, 1], [], []>} : vector<4x32xbf16>, vector<32x512xbf16>, vector<4x512xf32> -> vector<4x512xf32>
    %37 = arith.addf %31, %36 : vector<4x512xf32>
    %38 = vector.extract_strided_slice %9 {offsets = [16, 0], sizes = [4, 32], strides = [1, 1]} : vector<64x32xf32> to vector<4x32xf32>
    %39 = arith.truncf %38 : vector<4x32xf32> to vector<4x32xbf16>
    %c4 = arith.constant 4 : index
    %c0_25 = arith.constant 0 : index
    %c0_26 = arith.constant 0 : index
    %40 = vector.load %arg5[%c4, %c0_25, %c0_26] : memref<16x32x512xbf16, #tpu.memory_space<vmem>>, vector<1x32x512xbf16>
    %41 = vector.shape_cast %40 : vector<1x32x512xbf16> to vector<32x512xbf16>
    %cst_27 = arith.constant dense<0.000000e+00> : vector<4x512xf32>
    %42 = tpu.matmul %39, %41, %cst_27 {dimension_numbers = #tpu.dot_dimension_numbers<[1], [0], [0], [1], [0, 0, 1, 1], [], []>} : vector<4x32xbf16>, vector<32x512xbf16>, vector<4x512xf32> -> vector<4x512xf32>
    %43 = arith.addf %37, %42 : vector<4x512xf32>
    %44 = vector.extract_strided_slice %9 {offsets = [20, 0], sizes = [4, 32], strides = [1, 1]} : vector<64x32xf32> to vector<4x32xf32>
    %45 = arith.truncf %44 : vector<4x32xf32> to vector<4x32xbf16>
    %c5 = arith.constant 5 : index
    %c0_28 = arith.constant 0 : index
    %c0_29 = arith.constant 0 : index
    %46 = vector.load %arg5[%c5, %c0_28, %c0_29] : memref<16x32x512xbf16, #tpu.memory_space<vmem>>, vector<1x32x512xbf16>
    %47 = vector.shape_cast %46 : vector<1x32x512xbf16> to vector<32x512xbf16>
    %cst_30 = arith.constant dense<0.000000e+00> : vector<4x512xf32>
    %48 = tpu.matmul %45, %47, %cst_30 {dimension_numbers = #tpu.dot_dimension_numbers<[1], [0], [0], [1], [0, 0, 1, 1], [], []>} : vector<4x32xbf16>, vector<32x512xbf16>, vector<4x512xf32> -> vector<4x512xf32>
    %49 = arith.addf %43, %48 : vector<4x512xf32>
    %50 = vector.extract_strided_slice %9 {offsets = [24, 0], sizes = [4, 32], strides = [1, 1]} : vector<64x32xf32> to vector<4x32xf32>
    %51 = arith.truncf %50 : vector<4x32xf32> to vector<4x32xbf16>
    %c6 = arith.constant 6 : index
    %c0_31 = arith.constant 0 : index
    %c0_32 = arith.constant 0 : index
    %52 = vector.load %arg5[%c6, %c0_31, %c0_32] : memref<16x32x512xbf16, #tpu.memory_space<vmem>>, vector<1x32x512xbf16>
    %53 = vector.shape_cast %52 : vector<1x32x512xbf16> to vector<32x512xbf16>
    %cst_33 = arith.constant dense<0.000000e+00> : vector<4x512xf32>
    %54 = tpu.matmul %51, %53, %cst_33 {dimension_numbers = #tpu.dot_dimension_numbers<[1], [0], [0], [1], [0, 0, 1, 1], [], []>} : vector<4x32xbf16>, vector<32x512xbf16>, vector<4x512xf32> -> vector<4x512xf32>
    %55 = arith.addf %49, %54 : vector<4x512xf32>
    %56 = vector.extract_strided_slice %9 {offsets = [28, 0], sizes = [4, 32], strides = [1, 1]} : vector<64x32xf32> to vector<4x32xf32>
    %57 = arith.truncf %56 : vector<4x32xf32> to vector<4x32xbf16>
    %c7 = arith.constant 7 : index
    %c0_34 = arith.constant 0 : index
    %c0_35 = arith.constant 0 : index
    %58 = vector.load %arg5[%c7, %c0_34, %c0_35] : memref<16x32x512xbf16, #tpu.memory_space<vmem>>, vector<1x32x512xbf16>
    %59 = vector.shape_cast %58 : vector<1x32x512xbf16> to vector<32x512xbf16>
    %cst_36 = arith.constant dense<0.000000e+00> : vector<4x512xf32>
    %60 = tpu.matmul %57, %59, %cst_36 {dimension_numbers = #tpu.dot_dimension_numbers<[1], [0], [0], [1], [0, 0, 1, 1], [], []>} : vector<4x32xbf16>, vector<32x512xbf16>, vector<4x512xf32> -> vector<4x512xf32>
    %61 = arith.addf %55, %60 : vector<4x512xf32>
    %62 = vector.extract_strided_slice %9 {offsets = [32, 0], sizes = [4, 32], strides = [1, 1]} : vector<64x32xf32> to vector<4x32xf32>
    %63 = arith.truncf %62 : vector<4x32xf32> to vector<4x32xbf16>
    %c8 = arith.constant 8 : index
    %c0_37 = arith.constant 0 : index
    %c0_38 = arith.constant 0 : index
    %64 = vector.load %arg5[%c8, %c0_37, %c0_38] : memref<16x32x512xbf16, #tpu.memory_space<vmem>>, vector<1x32x512xbf16>
    %65 = vector.shape_cast %64 : vector<1x32x512xbf16> to vector<32x512xbf16>
    %cst_39 = arith.constant dense<0.000000e+00> : vector<4x512xf32>
    %66 = tpu.matmul %63, %65, %cst_39 {dimension_numbers = #tpu.dot_dimension_numbers<[1], [0], [0], [1], [0, 0, 1, 1], [], []>} : vector<4x32xbf16>, vector<32x512xbf16>, vector<4x512xf32> -> vector<4x512xf32>
    %67 = arith.addf %61, %66 : vector<4x512xf32>
    %68 = vector.extract_strided_slice %9 {offsets = [36, 0], sizes = [4, 32], strides = [1, 1]} : vector<64x32xf32> to vector<4x32xf32>
    %69 = arith.truncf %68 : vector<4x32xf32> to vector<4x32xbf16>
    %c9 = arith.constant 9 : index
    %c0_40 = arith.constant 0 : index
    %c0_41 = arith.constant 0 : index
    %70 = vector.load %arg5[%c9, %c0_40, %c0_41] : memref<16x32x512xbf16, #tpu.memory_space<vmem>>, vector<1x32x512xbf16>
    %71 = vector.shape_cast %70 : vector<1x32x512xbf16> to vector<32x512xbf16>
    %cst_42 = arith.constant dense<0.000000e+00> : vector<4x512xf32>
    %72 = tpu.matmul %69, %71, %cst_42 {dimension_numbers = #tpu.dot_dimension_numbers<[1], [0], [0], [1], [0, 0, 1, 1], [], []>} : vector<4x32xbf16>, vector<32x512xbf16>, vector<4x512xf32> -> vector<4x512xf32>
    %73 = arith.addf %67, %72 : vector<4x512xf32>
    %74 = vector.extract_strided_slice %9 {offsets = [40, 0], sizes = [4, 32], strides = [1, 1]} : vector<64x32xf32> to vector<4x32xf32>
    %75 = arith.truncf %74 : vector<4x32xf32> to vector<4x32xbf16>
    %c10 = arith.constant 10 : index
    %c0_43 = arith.constant 0 : index
    %c0_44 = arith.constant 0 : index
    %76 = vector.load %arg5[%c10, %c0_43, %c0_44] : memref<16x32x512xbf16, #tpu.memory_space<vmem>>, vector<1x32x512xbf16>
    %77 = vector.shape_cast %76 : vector<1x32x512xbf16> to vector<32x512xbf16>
    %cst_45 = arith.constant dense<0.000000e+00> : vector<4x512xf32>
    %78 = tpu.matmul %75, %77, %cst_45 {dimension_numbers = #tpu.dot_dimension_numbers<[1], [0], [0], [1], [0, 0, 1, 1], [], []>} : vector<4x32xbf16>, vector<32x512xbf16>, vector<4x512xf32> -> vector<4x512xf32>
    %79 = arith.addf %73, %78 : vector<4x512xf32>
    %80 = vector.extract_strided_slice %9 {offsets = [44, 0], sizes = [4, 32], strides = [1, 1]} : vector<64x32xf32> to vector<4x32xf32>
    %81 = arith.truncf %80 : vector<4x32xf32> to vector<4x32xbf16>
    %c11 = arith.constant 11 : index
    %c0_46 = arith.constant 0 : index
    %c0_47 = arith.constant 0 : index
    %82 = vector.load %arg5[%c11, %c0_46, %c0_47] : memref<16x32x512xbf16, #tpu.memory_space<vmem>>, vector<1x32x512xbf16>
    %83 = vector.shape_cast %82 : vector<1x32x512xbf16> to vector<32x512xbf16>
    %cst_48 = arith.constant dense<0.000000e+00> : vector<4x512xf32>
    %84 = tpu.matmul %81, %83, %cst_48 {dimension_numbers = #tpu.dot_dimension_numbers<[1], [0], [0], [1], [0, 0, 1, 1], [], []>} : vector<4x32xbf16>, vector<32x512xbf16>, vector<4x512xf32> -> vector<4x512xf32>
    %85 = arith.addf %79, %84 : vector<4x512xf32>
    %86 = vector.extract_strided_slice %9 {offsets = [48, 0], sizes = [4, 32], strides = [1, 1]} : vector<64x32xf32> to vector<4x32xf32>
    %87 = arith.truncf %86 : vector<4x32xf32> to vector<4x32xbf16>
    %c12 = arith.constant 12 : index
    %c0_49 = arith.constant 0 : index
    %c0_50 = arith.constant 0 : index
    %88 = vector.load %arg5[%c12, %c0_49, %c0_50] : memref<16x32x512xbf16, #tpu.memory_space<vmem>>, vector<1x32x512xbf16>
    %89 = vector.shape_cast %88 : vector<1x32x512xbf16> to vector<32x512xbf16>
    %cst_51 = arith.constant dense<0.000000e+00> : vector<4x512xf32>
    %90 = tpu.matmul %87, %89, %cst_51 {dimension_numbers = #tpu.dot_dimension_numbers<[1], [0], [0], [1], [0, 0, 1, 1], [], []>} : vector<4x32xbf16>, vector<32x512xbf16>, vector<4x512xf32> -> vector<4x512xf32>
    %91 = arith.addf %85, %90 : vector<4x512xf32>
    %92 = vector.extract_strided_slice %9 {offsets = [52, 0], sizes = [4, 32], strides = [1, 1]} : vector<64x32xf32> to vector<4x32xf32>
    %93 = arith.truncf %92 : vector<4x32xf32> to vector<4x32xbf16>
    %c13 = arith.constant 13 : index
    %c0_52 = arith.constant 0 : index
    %c0_53 = arith.constant 0 : index
    %94 = vector.load %arg5[%c13, %c0_52, %c0_53] : memref<16x32x512xbf16, #tpu.memory_space<vmem>>, vector<1x32x512xbf16>
    %95 = vector.shape_cast %94 : vector<1x32x512xbf16> to vector<32x512xbf16>
    %cst_54 = arith.constant dense<0.000000e+00> : vector<4x512xf32>
    %96 = tpu.matmul %93, %95, %cst_54 {dimension_numbers = #tpu.dot_dimension_numbers<[1], [0], [0], [1], [0, 0, 1, 1], [], []>} : vector<4x32xbf16>, vector<32x512xbf16>, vector<4x512xf32> -> vector<4x512xf32>
    %97 = arith.addf %91, %96 : vector<4x512xf32>
    %98 = vector.extract_strided_slice %9 {offsets = [56, 0], sizes = [4, 32], strides = [1, 1]} : vector<64x32xf32> to vector<4x32xf32>
    %99 = arith.truncf %98 : vector<4x32xf32> to vector<4x32xbf16>
    %c14 = arith.constant 14 : index
    %c0_55 = arith.constant 0 : index
    %c0_56 = arith.constant 0 : index
    %100 = vector.load %arg5[%c14, %c0_55, %c0_56] : memref<16x32x512xbf16, #tpu.memory_space<vmem>>, vector<1x32x512xbf16>
    %101 = vector.shape_cast %100 : vector<1x32x512xbf16> to vector<32x512xbf16>
    %cst_57 = arith.constant dense<0.000000e+00> : vector<4x512xf32>
    %102 = tpu.matmul %99, %101, %cst_57 {dimension_numbers = #tpu.dot_dimension_numbers<[1], [0], [0], [1], [0, 0, 1, 1], [], []>} : vector<4x32xbf16>, vector<32x512xbf16>, vector<4x512xf32> -> vector<4x512xf32>
    %103 = arith.addf %97, %102 : vector<4x512xf32>
    %104 = vector.extract_strided_slice %9 {offsets = [60, 0], sizes = [4, 32], strides = [1, 1]} : vector<64x32xf32> to vector<4x32xf32>
    %105 = arith.truncf %104 : vector<4x32xf32> to vector<4x32xbf16>
    %c15 = arith.constant 15 : index
    %c0_58 = arith.constant 0 : index
    %c0_59 = arith.constant 0 : index
    %106 = vector.load %arg5[%c15, %c0_58, %c0_59] : memref<16x32x512xbf16, #tpu.memory_space<vmem>>, vector<1x32x512xbf16>
    %107 = vector.shape_cast %106 : vector<1x32x512xbf16> to vector<32x512xbf16>
    %cst_60 = arith.constant dense<0.000000e+00> : vector<4x512xf32>
    %108 = tpu.matmul %105, %107, %cst_60 {dimension_numbers = #tpu.dot_dimension_numbers<[1], [0], [0], [1], [0, 0, 1, 1], [], []>} : vector<4x32xbf16>, vector<32x512xbf16>, vector<4x512xf32> -> vector<4x512xf32>
    %109 = arith.addf %103, %108 : vector<4x512xf32>
    %c0_61 = arith.constant 0 : index
    %c0_62 = arith.constant 0 : index
    %110 = vector.load %arg7[%c0_61, %c0_62] : memref<128x512xbf16, #tpu.memory_space<vmem>>, vector<128x512xbf16>
    %cst_63 = arith.constant 0.000000e+00 : f32
    %111 = vector.broadcast %cst_63 : f32 to vector<1x128xf32>
    %112 = vector.extract_strided_slice %109 {offsets = [0, 0], sizes = [1, 512], strides = [1, 1]} : vector<4x512xf32> to vector<1x512xf32>
    %113 = vector.extract_strided_slice %112 {offsets = [0, 0], sizes = [1, 128], strides = [1, 1]} : vector<1x512xf32> to vector<1x128xf32>
    %114 = arith.negf %113 : vector<1x128xf32>
    %115 = math.exp %114 : vector<1x128xf32>
    %cst_64 = arith.constant 1.000000e+00 : f32
    %116 = vector.broadcast %cst_64 : f32 to vector<1x128xf32>
    %117 = arith.addf %116, %115 : vector<1x128xf32>
    %118 = arith.divf %116, %117 : vector<1x128xf32>
    %119 = vector.extract_strided_slice %112 {offsets = [0, 128], sizes = [1, 128], strides = [1, 1]} : vector<1x512xf32> to vector<1x128xf32>
    %120 = arith.negf %119 : vector<1x128xf32>
    %121 = math.exp %120 : vector<1x128xf32>
    %cst_65 = arith.constant 1.000000e+00 : f32
    %122 = vector.broadcast %cst_65 : f32 to vector<1x128xf32>
    %123 = arith.addf %122, %121 : vector<1x128xf32>
    %124 = arith.divf %122, %123 : vector<1x128xf32>
    %125 = vector.extract_strided_slice %112 {offsets = [0, 256], sizes = [1, 128], strides = [1, 1]} : vector<1x512xf32> to vector<1x128xf32>
    %126 = math.tanh %125 : vector<1x128xf32>
    %127 = vector.extract_strided_slice %112 {offsets = [0, 384], sizes = [1, 128], strides = [1, 1]} : vector<1x512xf32> to vector<1x128xf32>
    %128 = arith.negf %127 : vector<1x128xf32>
    %129 = math.exp %128 : vector<1x128xf32>
    %cst_66 = arith.constant 1.000000e+00 : f32
    %130 = vector.broadcast %cst_66 : f32 to vector<1x128xf32>
    %131 = arith.addf %130, %129 : vector<1x128xf32>
    %132 = arith.divf %130, %131 : vector<1x128xf32>
    %133 = arith.mulf %124, %111 : vector<1x128xf32>
    %134 = arith.mulf %118, %126 : vector<1x128xf32>
    %135 = arith.addf %133, %134 : vector<1x128xf32>
    %136 = math.tanh %135 : vector<1x128xf32>
    %137 = arith.mulf %132, %136 : vector<1x128xf32>
    %138 = vector.extract_strided_slice %109 {offsets = [1, 0], sizes = [1, 512], strides = [1, 1]} : vector<4x512xf32> to vector<1x512xf32>
    %139 = arith.truncf %137 : vector<1x128xf32> to vector<1x128xbf16>
    %cst_67 = arith.constant dense<0.000000e+00> : vector<1x512xf32>
    %140 = tpu.matmul %139, %110, %cst_67 {dimension_numbers = #tpu.dot_dimension_numbers<[1], [0], [0], [1], [0, 0, 1, 1], [], []>} : vector<1x128xbf16>, vector<128x512xbf16>, vector<1x512xf32> -> vector<1x512xf32>
    %141 = arith.addf %138, %140 : vector<1x512xf32>
    %142 = vector.extract_strided_slice %141 {offsets = [0, 0], sizes = [1, 128], strides = [1, 1]} : vector<1x512xf32> to vector<1x128xf32>
    %143 = arith.negf %142 : vector<1x128xf32>
    %144 = math.exp %143 : vector<1x128xf32>
    %cst_68 = arith.constant 1.000000e+00 : f32
    %145 = vector.broadcast %cst_68 : f32 to vector<1x128xf32>
    %146 = arith.addf %145, %144 : vector<1x128xf32>
    %147 = arith.divf %145, %146 : vector<1x128xf32>
    %148 = vector.extract_strided_slice %141 {offsets = [0, 128], sizes = [1, 128], strides = [1, 1]} : vector<1x512xf32> to vector<1x128xf32>
    %149 = arith.negf %148 : vector<1x128xf32>
    %150 = math.exp %149 : vector<1x128xf32>
    %cst_69 = arith.constant 1.000000e+00 : f32
    %151 = vector.broadcast %cst_69 : f32 to vector<1x128xf32>
    %152 = arith.addf %151, %150 : vector<1x128xf32>
    %153 = arith.divf %151, %152 : vector<1x128xf32>
    %154 = vector.extract_strided_slice %141 {offsets = [0, 256], sizes = [1, 128], strides = [1, 1]} : vector<1x512xf32> to vector<1x128xf32>
    %155 = math.tanh %154 : vector<1x128xf32>
    %156 = vector.extract_strided_slice %141 {offsets = [0, 384], sizes = [1, 128], strides = [1, 1]} : vector<1x512xf32> to vector<1x128xf32>
    %157 = arith.negf %156 : vector<1x128xf32>
    %158 = math.exp %157 : vector<1x128xf32>
    %cst_70 = arith.constant 1.000000e+00 : f32
    %159 = vector.broadcast %cst_70 : f32 to vector<1x128xf32>
    %160 = arith.addf %159, %158 : vector<1x128xf32>
    %161 = arith.divf %159, %160 : vector<1x128xf32>
    %162 = arith.mulf %153, %135 : vector<1x128xf32>
    %163 = arith.mulf %147, %155 : vector<1x128xf32>
    %164 = arith.addf %162, %163 : vector<1x128xf32>
    %165 = math.tanh %164 : vector<1x128xf32>
    %166 = arith.mulf %161, %165 : vector<1x128xf32>
    %167 = vector.extract_strided_slice %109 {offsets = [2, 0], sizes = [1, 512], strides = [1, 1]} : vector<4x512xf32> to vector<1x512xf32>
    %168 = arith.truncf %166 : vector<1x128xf32> to vector<1x128xbf16>
    %cst_71 = arith.constant dense<0.000000e+00> : vector<1x512xf32>
    %169 = tpu.matmul %168, %110, %cst_71 {dimension_numbers = #tpu.dot_dimension_numbers<[1], [0], [0], [1], [0, 0, 1, 1], [], []>} : vector<1x128xbf16>, vector<128x512xbf16>, vector<1x512xf32> -> vector<1x512xf32>
    %170 = arith.addf %167, %169 : vector<1x512xf32>
    %171 = vector.extract_strided_slice %170 {offsets = [0, 0], sizes = [1, 128], strides = [1, 1]} : vector<1x512xf32> to vector<1x128xf32>
    %172 = arith.negf %171 : vector<1x128xf32>
    %173 = math.exp %172 : vector<1x128xf32>
    %cst_72 = arith.constant 1.000000e+00 : f32
    %174 = vector.broadcast %cst_72 : f32 to vector<1x128xf32>
    %175 = arith.addf %174, %173 : vector<1x128xf32>
    %176 = arith.divf %174, %175 : vector<1x128xf32>
    %177 = vector.extract_strided_slice %170 {offsets = [0, 128], sizes = [1, 128], strides = [1, 1]} : vector<1x512xf32> to vector<1x128xf32>
    %178 = arith.negf %177 : vector<1x128xf32>
    %179 = math.exp %178 : vector<1x128xf32>
    %cst_73 = arith.constant 1.000000e+00 : f32
    %180 = vector.broadcast %cst_73 : f32 to vector<1x128xf32>
    %181 = arith.addf %180, %179 : vector<1x128xf32>
    %182 = arith.divf %180, %181 : vector<1x128xf32>
    %183 = vector.extract_strided_slice %170 {offsets = [0, 256], sizes = [1, 128], strides = [1, 1]} : vector<1x512xf32> to vector<1x128xf32>
    %184 = math.tanh %183 : vector<1x128xf32>
    %185 = vector.extract_strided_slice %170 {offsets = [0, 384], sizes = [1, 128], strides = [1, 1]} : vector<1x512xf32> to vector<1x128xf32>
    %186 = arith.negf %185 : vector<1x128xf32>
    %187 = math.exp %186 : vector<1x128xf32>
    %cst_74 = arith.constant 1.000000e+00 : f32
    %188 = vector.broadcast %cst_74 : f32 to vector<1x128xf32>
    %189 = arith.addf %188, %187 : vector<1x128xf32>
    %190 = arith.divf %188, %189 : vector<1x128xf32>
    %191 = arith.mulf %182, %164 : vector<1x128xf32>
    %192 = arith.mulf %176, %184 : vector<1x128xf32>
    %193 = arith.addf %191, %192 : vector<1x128xf32>
    %194 = math.tanh %193 : vector<1x128xf32>
    %195 = arith.mulf %190, %194 : vector<1x128xf32>
    %196 = vector.extract_strided_slice %109 {offsets = [3, 0], sizes = [1, 512], strides = [1, 1]} : vector<4x512xf32> to vector<1x512xf32>
    %197 = arith.truncf %195 : vector<1x128xf32> to vector<1x128xbf16>
    %cst_75 = arith.constant dense<0.000000e+00> : vector<1x512xf32>
    %198 = tpu.matmul %197, %110, %cst_75 {dimension_numbers = #tpu.dot_dimension_numbers<[1], [0], [0], [1], [0, 0, 1, 1], [], []>} : vector<1x128xbf16>, vector<128x512xbf16>, vector<1x512xf32> -> vector<1x512xf32>
    %199 = arith.addf %196, %198 : vector<1x512xf32>
    %200 = vector.extract_strided_slice %199 {offsets = [0, 0], sizes = [1, 128], strides = [1, 1]} : vector<1x512xf32> to vector<1x128xf32>
    %201 = arith.negf %200 : vector<1x128xf32>
    %202 = math.exp %201 : vector<1x128xf32>
    %cst_76 = arith.constant 1.000000e+00 : f32
    %203 = vector.broadcast %cst_76 : f32 to vector<1x128xf32>
    %204 = arith.addf %203, %202 : vector<1x128xf32>
    %205 = arith.divf %203, %204 : vector<1x128xf32>
    %206 = vector.extract_strided_slice %199 {offsets = [0, 128], sizes = [1, 128], strides = [1, 1]} : vector<1x512xf32> to vector<1x128xf32>
    %207 = arith.negf %206 : vector<1x128xf32>
    %208 = math.exp %207 : vector<1x128xf32>
    %cst_77 = arith.constant 1.000000e+00 : f32
    %209 = vector.broadcast %cst_77 : f32 to vector<1x128xf32>
    %210 = arith.addf %209, %208 : vector<1x128xf32>
    %211 = arith.divf %209, %210 : vector<1x128xf32>
    %212 = vector.extract_strided_slice %199 {offsets = [0, 256], sizes = [1, 128], strides = [1, 1]} : vector<1x512xf32> to vector<1x128xf32>
    %213 = math.tanh %212 : vector<1x128xf32>
    %214 = vector.extract_strided_slice %199 {offsets = [0, 384], sizes = [1, 128], strides = [1, 1]} : vector<1x512xf32> to vector<1x128xf32>
    %215 = arith.negf %214 : vector<1x128xf32>
    %216 = math.exp %215 : vector<1x128xf32>
    %cst_78 = arith.constant 1.000000e+00 : f32
    %217 = vector.broadcast %cst_78 : f32 to vector<1x128xf32>
    %218 = arith.addf %217, %216 : vector<1x128xf32>
    %219 = arith.divf %217, %218 : vector<1x128xf32>
    %220 = arith.mulf %211, %193 : vector<1x128xf32>
    %221 = arith.mulf %205, %213 : vector<1x128xf32>
    %222 = arith.addf %220, %221 : vector<1x128xf32>
    %223 = math.tanh %222 : vector<1x128xf32>
    %224 = arith.mulf %219, %223 : vector<1x128xf32>
    %c0_79 = arith.constant 0 : index
    %c0_80 = arith.constant 0 : index
    %225 = vector.load %arg8[%c0_79, %c0_80] : memref<128x1xf32, #tpu.memory_space<vmem>>, vector<128x1xf32>
    %cst_81 = arith.constant dense<0.000000e+00> : vector<1x1xf32>
    %226 = tpu.matmul %224, %225, %cst_81 {dimension_numbers = #tpu.dot_dimension_numbers<[1], [0], [0], [1], [0, 0, 1, 1], [], []>} : vector<1x128xf32>, vector<128x1xf32>, vector<1x1xf32> -> vector<1x1xf32>
    %c0_82 = arith.constant 0 : index
    %c0_83 = arith.constant 0 : index
    %227 = vector.load %arg9[%c0_82, %c0_83] : memref<1x1xf32, #tpu.memory_space<vmem>>, vector<1x1xf32>
    %228 = arith.addf %226, %227 : vector<1x1xf32>
    %229 = vector.shape_cast %228 : vector<1x1xf32> to vector<1x1x1xf32>
    %230 = vector.shape_cast %229 : vector<1x1x1xf32> to vector<1x1x1xf32>
    %231 = vector.broadcast %230 : vector<1x1x1xf32> to vector<1x1x128xf32>
    %c0_84 = arith.constant 0 : index
    %c0_85 = arith.constant 0 : index
    %c0_86 = arith.constant 0 : index
    %232 = vector.load %arg10[%c0_84, %c0_85, %c0_86] : memref<1x1x128xf32, #tpu.memory_space<vmem>>, vector<1x1x128xf32>
    tpu.vector_store %arg10[%c0_84, %c0_85, %c0_86], %231 {strides = array<i32>} : memref<1x1x128xf32, #tpu.memory_space<vmem>>, vector<1x1x128xf32>,
    return
  }
  func.func @transform_0(%arg0: i32) -> (i32, i32) {
    %c0_i32 = arith.constant 0 : i32
    %c0_i32_0 = arith.constant 0 : i32
    return %arg0, %c0_i32 : i32, i32
  }
  func.func @transform_1(%arg0: i32) -> (i32, i32) {
    %c0_i32 = arith.constant 0 : i32
    %c0_i32_0 = arith.constant 0 : i32
    %c0_i32_1 = arith.constant 0 : i32
    return %c0_i32, %c0_i32_0 : i32, i32
  }
  func.func @transform_2(%arg0: i32) -> (i32, i32) {
    %c0_i32 = arith.constant 0 : i32
    %c0_i32_0 = arith.constant 0 : i32
    %c0_i32_1 = arith.constant 0 : i32
    return %c0_i32, %c0_i32_0 : i32, i32
  }
  func.func @transform_3(%arg0: i32) -> (i32, i32) {
    %c0_i32 = arith.constant 0 : i32
    %c0_i32_0 = arith.constant 0 : i32
    %c0_i32_1 = arith.constant 0 : i32
    return %c0_i32, %c0_i32_0 : i32, i32
  }
  func.func @transform_4(%arg0: i32) -> (i32, i32, i32) {
    %c0_i32 = arith.constant 0 : i32
    %c0_i32_0 = arith.constant 0 : i32
    %c0_i32_1 = arith.constant 0 : i32
    %c0_i32_2 = arith.constant 0 : i32
    return %c0_i32, %c0_i32_0, %c0_i32_1 : i32, i32, i32
  }
  func.func @transform_5(%arg0: i32) -> (i32, i32) {
    %c0_i32 = arith.constant 0 : i32
    %c0_i32_0 = arith.constant 0 : i32
    %c0_i32_1 = arith.constant 0 : i32
    return %c0_i32, %c0_i32_0 : i32, i32
  }
  func.func @transform_6(%arg0: i32) -> (i32, i32) {
    %c0_i32 = arith.constant 0 : i32
    %c0_i32_0 = arith.constant 0 : i32
    %c0_i32_1 = arith.constant 0 : i32
    return %c0_i32, %c0_i32_0 : i32, i32
  }
  func.func @transform_7(%arg0: i32) -> (i32, i32) {
    %c0_i32 = arith.constant 0 : i32
    %c0_i32_0 = arith.constant 0 : i32
    %c0_i32_1 = arith.constant 0 : i32
    return %c0_i32, %c0_i32_0 : i32, i32
  }
  func.func @transform_8(%arg0: i32) -> (i32, i32) {
    %c0_i32 = arith.constant 0 : i32
    %c0_i32_0 = arith.constant 0 : i32
    %c0_i32_1 = arith.constant 0 : i32
    return %c0_i32, %c0_i32_0 : i32, i32
  }
  func.func @transform_9(%arg0: i32) -> (i32, i32, i32) {
    %c0_i32 = arith.constant 0 : i32
    %c0_i32_0 = arith.constant 0 : i32
    %c0_i32_1 = arith.constant 0 : i32
    return %arg0, %c0_i32, %c0_i32_0 : i32, i32, i32
  }
}

</mosaic_0001>

<bundles_post_ra>
// kernel: forward.2
= control target key start
LH: loop header
LB: loop body
LE: loop exit
PB: predicated region body
PF: predicated region fallthrough
CT: control target
= control target key end

     0   :  { %vm214_vm0 = vcmask 1043456   ;;  %vm215_vm1 = vcmask 1044480   ;;  %v835_v3 = vmov 65535   ;;  %v836_v5 = vmov 0   ;;  %s1091_s1 = inlined_call_operand.vmem [shape: bf16[25,2048], index: 1, kind: input, shape index: {}]   ;;  %s1092_s0 = inlined_call_operand.vmem [shape: bf16[16,25], index: 0, kind: input, shape index: {}]   ;;  %s1093_s2 = inlined_call_operand.vmem [shape: f32[16,1], index: 2, kind: input, shape index: {}]   ;;  %s1094_s3 = inlined_call_operand.vmem [shape: bf16[16,2048], index: 3, kind: output, shape index: {}]  }
   0x1   :  { %v17_v0 = vld [vmem:[%s1091_s1] sm:$0xff]  ;;  %v18_v2 = vld [vmem:[%s1091_s1 + $0x8] sm:$0xff]  ;;  %v216_v4 = vsel %vm214_vm0, 4294967295, %v835_v3  ;;  %298 = vmatprep.mubr.bf16.mxu0 %v836_v5  ;;  %341 = vmatprep.mubr.bf16.mxu1 %v836_v5  ;;  %v19_v20 = vld [vmem:[%s1091_s1 + $0x10] sm:$0xff]  ;;  %vm210_vm2 = vcmask 203776  }
   0x2   :  { %v25_v1 = vld [vmem:[%s1091_s1 + $0x40] sm:$0xff]  ;;  %v26_v7 = vld [vmem:[%s1091_s1 + $0x48] sm:$0xff]  ;;  %v877_v11 = vsel %vm215_vm1, %v216_v4, 0  ;;  %833 = vset.pattern.permute.xlu0 %v836_v5  ;;  %v27_v23 = vld [vmem:[%s1091_s1 + $0x50] sm:$0xff] }
   0x3   :  { %v760_v6 = vcombine.high %v17_v0, %v25_v1  ;;  %v759_v8 = vcombine.low %v17_v0, %v25_v1  ;;  %v33_v9 = vld [vmem:[%s1091_s1 + $0x80] sm:$0xff]  ;;  %v762_v12 = vcombine.high %v18_v2, %v26_v7  ;;  %v761_v13 = vcombine.low %v18_v2, %v26_v7  ;;  %v34_v15 = vld [vmem:[%s1091_s1 + $0x88] sm:$0xff]  ;;  %v20_v24 = vld [vmem:[%s1091_s1 + $0x18] sm:$0xff] }
   0x4   :  { %v41_v10 = vld [vmem:[%s1091_s1 + $0xc0] sm:$0x11]  ;;  %v42_v16 = vld [vmem:[%s1091_s1 + $0xc8] sm:$0x11]  ;;  %v28_v25 = vld [vmem:[%s1091_s1 + $0x58] sm:$0xff]  ;;  %v764_v28 = vcombine.high %v19_v20, %v27_v23  ;;  %v763_v37 = vcombine.low %v19_v20, %v27_v23 }
   0x5   :  { %v776_v14 = vcombine.high %v33_v9, %v41_v10  ;;  %v775_v17 = vcombine.low %v33_v9, %v41_v10  ;;  %266 = vmatprep.subr.bf16.mxu0 %v760_v6  ;;  %v778_v18 = vcombine.high %v34_v15, %v42_v16  ;;  %v777_v19 = vcombine.low %v34_v15, %v42_v16  ;;  %v35_v29 = vld [vmem:[%s1091_s1 + $0x90] sm:$0xff]  ;;  %v36_v31 = vld [vmem:[%s1091_s1 + $0x98] sm:$0xff]  ;;  %v917_v35 = vld [vmem:[%s1092_s0] sm:$0xff]  }
   0x6   :  { %309 = vmatprep.subr.bf16.mxu1 %v762_v12  ;;  %267 = vmatpush1.bf16.msra.mxu0 %v759_v8  ;;  %v43_v30 = vld [vmem:[%s1091_s1 + $0xd0] sm:$0x11]  ;;  %v766_v32 = vcombine.high %v20_v24, %v28_v25  ;;  %v44_v34 = vld [vmem:[%s1091_s1 + $0xd8] sm:$0x11]  ;;  %v765_v39 = vcombine.low %v20_v24, %v28_v25  ;;  %v21_v42 = vld [vmem:[%s1091_s1 + $0x20] sm:$0xff] }
   0x7   :  { %v222_v21 = vand.u32 %v776_v14, %v877_v11  ;;  %v219_v22 = vand.u32 %v775_v17, %v877_v11  ;;  %310 = vmatpush1.bf16.msra.mxu1 %v761_v13  ;;  %v228_v26 = vand.u32 %v778_v18, %v877_v11  ;;  %v225_v27 = vand.u32 %v777_v19, %v877_v11  ;;  %v29_v43 = vld [vmem:[%s1091_s1 + $0x60] sm:$0xff]  ;;  %v22_v45 = vld [vmem:[%s1091_s1 + $0x28] sm:$0xff]  ;;  %v23_v0 = vld [vmem:[%s1091_s1 + $0x30] sm:$0xff] }
   0x8   :  { %v780_v33 = vcombine.high %v35_v29, %v43_v30  ;;  %v782_v36 = vcombine.high %v36_v31, %v44_v34  ;;  %v779_v38 = vcombine.low %v35_v29, %v43_v30  ;;  %v781_v41 = vcombine.low %v36_v31, %v44_v34  ;;  %v37_v46 = vld [vmem:[%s1091_s1 + $0xa0] sm:$0xff]  ;;  %v30_v48 = vld [vmem:[%s1091_s1 + $0x68] sm:$0xff]  ;;  %v31_v1 = vld [vmem:[%s1091_s1 + $0x70] sm:$0xff] }
   0x9   :  { %268 = vmatprep.subr.bf16.mxu0 %v222_v21  ;;  %311 = vmatprep.subr.bf16.mxu1 %v228_v26  ;;  %v45_v47 = vld [vmem:[%s1091_s1 + $0xe0] sm:$0x11]  ;;  %v38_v49 = vld [vmem:[%s1091_s1 + $0xa8] sm:$0xff]  ;;  %v768_v54 = vcombine.high %v21_v42, %v29_v43  ;;  %v770_v56 = vcombine.high %v22_v45, %v30_v48  ;;  %v767_v58 = vcombine.low %v21_v42, %v29_v43  ;;  %v24_v3 = vld [vmem:[%s1091_s1 + $0x38] sm:$0xff] }
   0xa   :  { %269 = vmatpush1.bf16.msra.mxu0 %v219_v22  ;;  %v234_v40 = vand.u32 %v780_v33, %v877_v11  ;;  %v240_v44 = vand.u32 %v782_v36, %v877_v11  ;;  %v46_v50 = vld [vmem:[%s1091_s1 + $0xe8] sm:$0x11]  ;;  %v231_v51 = vand.u32 %v779_v38, %v877_v11  ;;  %v49_v52 = vld [vmem:[%s1093_s2] sm:$0xff]  ;;  %v237_v53 = vand.u32 %v781_v41, %v877_v11  ;;  %v39_v4 = vld [vmem:[%s1091_s1 + $0xb0] sm:$0xff] }
   0xb   :  { %312 = vmatpush1.bf16.msra.mxu1 %v225_v27  ;;  %352 = vmatprep.subr.bf16.mxu0 %v764_v28  ;;  %v784_v55 = vcombine.high %v37_v46, %v45_v47  ;;  %v786_v57 = vcombine.high %v38_v49, %v46_v50  ;;  %v783_v59 = vcombine.low %v37_v46, %v45_v47  ;;  %v50_v60 = vld [vmem:[%s1093_s2 + $0x8] sm:$0xff]  ;;  %v47_v6 = vld [vmem:[%s1091_s1 + $0xf0] sm:$0x11]  ;;  %v32_v7 = vld [vmem:[%s1091_s1 + $0x78] sm:$0xff] }
   0xc   :  { %395 = vmatprep.subr.bf16.mxu1 %v766_v32  ;;  %53 = vperm.xlu0 %833, %v49_v52   ;;  %v769_v61 = vcombine.low %v22_v45, %v30_v48  ;;  %v785_v63 = vcombine.low %v38_v49, %v46_v50  ;;  %v40_v8 = vld [vmem:[%s1091_s1 + $0xb8] sm:$0xff]  ;;  %v772_v13 = vcombine.high %v23_v0, %v31_v1 }
   0xd   :  { %791 = vmatmul.mubr.msk.bf16.vlgmr.msra.gmra.mrb[0].mxu0 %vm210_vm2, %v917_v35  ;;  %v246_v62 = vand.u32 %v784_v55, %v877_v11  ;;  %v252_v2 = vand.u32 %v786_v57, %v877_v11  ;;  %v48_v9 = vld [vmem:[%s1091_s1 + $0xf8] sm:$0x11]  ;;  %v243_v10 = vand.u32 %v783_v59, %v877_v11  ;;  %v788_v14 = vcombine.high %v39_v4, %v47_v6 }
   0xe   :  { %792 = vmatmul.mubr.msk.bf16.vlgmr.msra.gmra.mrb[0].mxu1 %vm210_vm2, %v917_v35  ;;  %353 = vmatpush1.bf16.msra.mxu0 %v763_v37  ;;  %v249_v12 = vand.u32 %v785_v63, %v877_v11  ;;  %v774_v15 = vcombine.high %v24_v3, %v32_v7  ;;  %v790_v16 = vcombine.high %v40_v8, %v48_v9 }
   0xf   :  { %396 = vmatpush1.bf16.msra.mxu1 %v765_v39  ;;  %354 = vmatprep.subr.bf16.mxu0 %v234_v40  ;;  %v771_v17 = vcombine.low %v23_v0, %v31_v1  ;;  %v787_v18 = vcombine.low %v39_v4, %v47_v6  ;;  %v773_v19 = vcombine.low %v24_v3, %v32_v7 }
  0x10   :  { %397 = vmatprep.subr.bf16.mxu1 %v240_v44  ;;  %384 = vmatprep.mubr.bf16.mxu0 %v836_v5  ;;  %v258_v20 = vand.u32 %v788_v14, %v877_v11  ;;  %v789_v21 = vcombine.low %v40_v8, %v48_v9  ;;  %v264_v22 = vand.u32 %v790_v16, %v877_v11 }
  0x11   :  { %427 = vmatprep.mubr.bf16.mxu1 %v836_v5  ;;  %58 = vperm.xlu0 %833, %v50_v60   ;;  %v255_v23 = vand.u32 %v787_v18, %v877_v11 }
  0x12   :  { %355 = vmatpush1.bf16.msra.mxu0 %v231_v51  ;;  %v261_v24 = vand.u32 %v789_v21, %v877_v11 }
  0x13   :  { %398 = vmatpush1.bf16.msra.mxu1 %v237_v53  ;;  %438 = vmatprep.subr.bf16.mxu0 %v768_v54 }
  0x14   :  { %481 = vmatprep.subr.bf16.mxu1 %v770_v56 }
  0x15   :  { %793 = vmatmul.mubr.msk.bf16.vlgmr.msra.gmra.mrb[4].mxu0 %vm210_vm2, %v917_v35 }
  0x16   :  { %794 = vmatmul.mubr.msk.bf16.vlgmr.msra.gmra.mrb[4].mxu1 %vm210_vm2, %v917_v35  ;;  %439 = vmatpush1.bf16.msra.mxu0 %v767_v58 }
  0x17   :  { %482 = vmatpush1.bf16.msra.mxu1 %v769_v61  ;;  %440 = vmatprep.subr.bf16.mxu0 %v246_v62 }
  0x18   :  { %483 = vmatprep.subr.bf16.mxu1 %v252_v2  ;;  %470 = vmatprep.mubr.bf16.mxu0 %v836_v5 }
  0x19   :  { %513 = vmatprep.mubr.bf16.mxu1 %v836_v5 }
  0x1a   :  { %441 = vmatpush1.bf16.msra.mxu0 %v243_v10 }
  0x1b   :  { %484 = vmatpush1.bf16.msra.mxu1 %v249_v12  ;;  %524 = vmatprep.subr.bf16.mxu0 %v772_v13 }
  0x1c   :  { %567 = vmatprep.subr.bf16.mxu1 %v774_v15 }
  0x1d   :  { %795 = vmatmul.mubr.msk.bf16.vlgmr.msra.gmra.mrb[8].mxu0 %vm210_vm2, %v917_v35 }
  0x1e   :  { %796 = vmatmul.mubr.msk.bf16.vlgmr.msra.gmra.mrb[8].mxu1 %vm210_vm2, %v917_v35  ;;  %525 = vmatpush1.bf16.msra.mxu0 %v771_v17 }
  0x1f   :  { %568 = vmatpush1.bf16.msra.mxu1 %v773_v19  ;;  %526 = vmatprep.subr.bf16.mxu0 %v258_v20 }
  0x20   :  { %569 = vmatprep.subr.bf16.mxu1 %v264_v22  ;;  %556 = vmatprep.mubr.bf16.mxu0 %v836_v5 }
  0x21   :  { %599 = vmatprep.mubr.bf16.mxu1 %v836_v5 }
  0x22   :  { %527 = vmatpush1.bf16.msra.mxu0 %v255_v23 }
  0x23   :  { %570 = vmatpush1.bf16.msra.mxu1 %v261_v24 }
  0x25   :  { %797 = vmatmul.mubr.msk.bf16.vlgmr.msra.gmra.mrb[12].mxu0 %vm210_vm2, %v917_v35 }
  0x26   :  { %798 = vmatmul.mubr.msk.bf16.vlgmr.msra.gmra.mrb[12].mxu1 %vm210_vm2, %v917_v35 }
  0x8b   :  { %v1007_v25 = vpop.permute.xlu0 %53 }
  0x90   :  { %v1009_v27 = vpop.permute.xlu0 %58 }
  0xe0   :  { %v300_v26 = vpop.f32.mrb[0].mxu0 }
  0xe1   :  { %v301_v11 = vadd.f32 %v300_v26, %v1007_v25  ;;  %v343_v28 = vpop.f32.mrb[0].mxu1  ;;  %v302_v29 = vpop.f32.mrb[1].mxu0 }
  0xe2   :  { %v344_v30 = vadd.f32 %v343_v28, %v1007_v25  ;;  %v303_v5 = vadd.f32 %v302_v29, %v1007_v25  ;;  %v345_v31 = vpop.f32.mrb[1].mxu1  ;;  %v304_v32 = vpop.f32.mrb[2].mxu0 }
  0xe3   :  { %v610_v33 = vmax.f32 %v301_v11, 0.0  ;;  %v346_v34 = vadd.f32 %v345_v31, %v1007_v25  ;;  %v305_v35 = vadd.f32 %v304_v32, %v1009_v27  ;;  %v347_v36 = vpop.f32.mrb[2].mxu1  ;;  %v306_v37 = vpop.f32.mrb[3].mxu0 }
  0xe4   :  { %v612_v38 = vmax.f32 %v344_v30, 0.0  ;;  %v611_v39 = vmax.f32 %v303_v5, 0.0  ;;  %v348_v40 = vadd.f32 %v347_v36, %v1009_v27  ;;  %v307_v41 = vadd.f32 %v306_v37, %v1009_v27  ;;  %v349_v42 = vpop.f32.mrb[3].mxu1 }
  0xe5   :  { %v613_v43 = vmax.f32 %v346_v34, 0.0  ;;  %v626_v44 = vmax.f32 %v305_v35, 0.0  ;;  %v350_v45 = vadd.f32 %v349_v42, %v1009_v27 }
  0xe6   :  { %v815_v46 = vpack.c.bf16 %v611_v39, %v610_v33  ;;  %v628_v47 = vmax.f32 %v348_v40, 0.0  ;;  %v627_v48 = vmax.f32 %v307_v41, 0.0 }
  0xe7   :  { %v816_v49 = vpack.c.bf16 %v613_v43, %v612_v38  ;;  %v629_v50 = vmax.f32 %v350_v45, 0.0 }
  0xe8   :  { %738 = vst [vmem:[%s1094_s3] sm:$0xff] %v815_v46  ;;  %v823_v51 = vpack.c.bf16 %v627_v48, %v626_v44  ;;  %v386_v52 = vpop.f32.mrb[4].mxu0 }
  0xe9   :  { %739 = vst [vmem:[%s1094_s3 + $0x8] sm:$0xff] %v816_v49  ;;  %v824_v53 = vpack.c.bf16 %v629_v50, %v628_v47  ;;  %v387_v54 = vadd.f32 %v386_v52, %v1007_v25  ;;  %v429_v55 = vpop.f32.mrb[4].mxu1  ;;  %v388_v56 = vpop.f32.mrb[5].mxu0 }
  0xea   :  { %746 = vst [vmem:[%s1094_s3 + $0x40] sm:$0xff] %v823_v51  ;;  %v430_v57 = vadd.f32 %v429_v55, %v1007_v25  ;;  %v389_v58 = vadd.f32 %v388_v56, %v1007_v25  ;;  %v431_v59 = vpop.f32.mrb[5].mxu1  ;;  %v390_v60 = vpop.f32.mrb[6].mxu0 }
  0xeb   :  { %747 = vst [vmem:[%s1094_s3 + $0x48] sm:$0xff] %v824_v53  ;;  %v614_v61 = vmax.f32 %v387_v54, 0.0  ;;  %v432_v62 = vadd.f32 %v431_v59, %v1007_v25  ;;  %v391_v63 = vadd.f32 %v390_v60, %v1009_v27  ;;  %v433_v0 = vpop.f32.mrb[6].mxu1  ;;  %v392_v1 = vpop.f32.mrb[7].mxu0 }
  0xec   :  { %v616_v2 = vmax.f32 %v430_v57, 0.0  ;;  %v615_v3 = vmax.f32 %v389_v58, 0.0  ;;  %v434_v4 = vadd.f32 %v433_v0, %v1009_v27  ;;  %v393_v6 = vadd.f32 %v392_v1, %v1009_v27  ;;  %v435_v7 = vpop.f32.mrb[7].mxu1 }
  0xed   :  { %v617_v8 = vmax.f32 %v432_v62, 0.0  ;;  %v630_v9 = vmax.f32 %v391_v63, 0.0  ;;  %v436_v10 = vadd.f32 %v435_v7, %v1009_v27 }
  0xee   :  { %v817_v12 = vpack.c.bf16 %v615_v3, %v614_v61  ;;  %v632_v13 = vmax.f32 %v434_v4, 0.0  ;;  %v631_v14 = vmax.f32 %v393_v6, 0.0 }
  0xef   :  { %v818_v15 = vpack.c.bf16 %v617_v8, %v616_v2  ;;  %v633_v16 = vmax.f32 %v436_v10, 0.0 }
  0xf0   :  { %740 = vst [vmem:[%s1094_s3 + $0x10] sm:$0xff] %v817_v12  ;;  %v825_v17 = vpack.c.bf16 %v631_v14, %v630_v9  ;;  %v472_v18 = vpop.f32.mrb[8].mxu0 }
  0xf1   :  { %741 = vst [vmem:[%s1094_s3 + $0x18] sm:$0xff] %v818_v15  ;;  %v826_v19 = vpack.c.bf16 %v633_v16, %v632_v13  ;;  %v473_v20 = vadd.f32 %v472_v18, %v1007_v25  ;;  %v515_v21 = vpop.f32.mrb[8].mxu1  ;;  %v474_v22 = vpop.f32.mrb[9].mxu0 }
  0xf2   :  { %748 = vst [vmem:[%s1094_s3 + $0x50] sm:$0xff] %v825_v17  ;;  %v516_v23 = vadd.f32 %v515_v21, %v1007_v25  ;;  %v475_v24 = vadd.f32 %v474_v22, %v1007_v25  ;;  %v517_v26 = vpop.f32.mrb[9].mxu1  ;;  %v476_v11 = vpop.f32.mrb[10].mxu0 }
  0xf3   :  { %749 = vst [vmem:[%s1094_s3 + $0x58] sm:$0xff] %v826_v19  ;;  %v618_v28 = vmax.f32 %v473_v20, 0.0  ;;  %v518_v29 = vadd.f32 %v517_v26, %v1007_v25  ;;  %v477_v30 = vadd.f32 %v476_v11, %v1009_v27  ;;  %v519_v5 = vpop.f32.mrb[10].mxu1  ;;  %v478_v31 = vpop.f32.mrb[11].mxu0 }
  0xf4   :  { %v620_v32 = vmax.f32 %v516_v23, 0.0  ;;  %v619_v33 = vmax.f32 %v475_v24, 0.0  ;;  %v520_v34 = vadd.f32 %v519_v5, %v1009_v27  ;;  %v479_v35 = vadd.f32 %v478_v31, %v1009_v27  ;;  %v521_v36 = vpop.f32.mrb[11].mxu1 }
  0xf5   :  { %v621_v37 = vmax.f32 %v518_v29, 0.0  ;;  %v634_v38 = vmax.f32 %v477_v30, 0.0  ;;  %v522_v39 = vadd.f32 %v521_v36, %v1009_v27 }
  0xf6   :  { %v819_v40 = vpack.c.bf16 %v619_v33, %v618_v28  ;;  %v636_v41 = vmax.f32 %v520_v34, 0.0  ;;  %v635_v42 = vmax.f32 %v479_v35, 0.0 }
  0xf7   :  { %v820_v43 = vpack.c.bf16 %v621_v37, %v620_v32  ;;  %v637_v44 = vmax.f32 %v522_v39, 0.0 }
  0xf8   :  { %742 = vst [vmem:[%s1094_s3 + $0x20] sm:$0xff] %v819_v40  ;;  %v827_v45 = vpack.c.bf16 %v635_v42, %v634_v38  ;;  %v558_v46 = vpop.f32.mrb[12].mxu0 }
  0xf9   :  { %743 = vst [vmem:[%s1094_s3 + $0x28] sm:$0xff] %v820_v43  ;;  %v828_v47 = vpack.c.bf16 %v637_v44, %v636_v41  ;;  %v559_v48 = vadd.f32 %v558_v46, %v1007_v25  ;;  %v601_v49 = vpop.f32.mrb[12].mxu1  ;;  %v560_v50 = vpop.f32.mrb[13].mxu0 }
  0xfa   :  { %750 = vst [vmem:[%s1094_s3 + $0x60] sm:$0xff] %v827_v45  ;;  %v602_v51 = vadd.f32 %v601_v49, %v1007_v25  ;;  %v561_v52 = vadd.f32 %v560_v50, %v1007_v25  ;;  %v603_v53 = vpop.f32.mrb[13].mxu1  ;;  %v562_v54 = vpop.f32.mrb[14].mxu0 }
  0xfb   :  { %751 = vst [vmem:[%s1094_s3 + $0x68] sm:$0xff] %v828_v47  ;;  %v622_v55 = vmax.f32 %v559_v48, 0.0  ;;  %v604_v56 = vadd.f32 %v603_v53, %v1007_v25  ;;  %v563_v57 = vadd.f32 %v562_v54, %v1009_v27  ;;  %v605_v58 = vpop.f32.mrb[14].mxu1  ;;  %v564_v59 = vpop.f32.mrb[15].mxu0 }
  0xfc   :  { %v624_v60 = vmax.f32 %v602_v51, 0.0  ;;  %v623_v61 = vmax.f32 %v561_v52, 0.0  ;;  %v606_v62 = vadd.f32 %v605_v58, %v1009_v27  ;;  %v565_v63 = vadd.f32 %v564_v59, %v1009_v27  ;;  %v607_v0 = vpop.f32.mrb[15].mxu1 }
  0xfd   :  { %v625_v1 = vmax.f32 %v604_v56, 0.0  ;;  %v638_v2 = vmax.f32 %v563_v57, 0.0  ;;  %v608_v3 = vadd.f32 %v607_v0, %v1009_v27 }
  0xfe   :  { %v821_v4 = vpack.c.bf16 %v623_v61, %v622_v55  ;;  %v640_v6 = vmax.f32 %v606_v62, 0.0  ;;  %v639_v7 = vmax.f32 %v565_v63, 0.0 }
  0xff   :  { %v822_v8 = vpack.c.bf16 %v625_v1, %v624_v60  ;;  %v641_v25 = vmax.f32 %v608_v3, 0.0 }
 0x100   :  { %744 = vst [vmem:[%s1094_s3 + $0x30] sm:$0xff] %v821_v4  ;;  %v829_v9 = vpack.c.bf16 %v639_v7, %v638_v2 }
 0x101   :  { %745 = vst [vmem:[%s1094_s3 + $0x38] sm:$0xff] %v822_v8  ;;  %v830_v10 = vpack.c.bf16 %v641_v25, %v640_v6 }
 0x102   :  { %752 = vst [vmem:[%s1094_s3 + $0x70] sm:$0xff] %v829_v9 }
 0x103   :  { %753 = vst [vmem:[%s1094_s3 + $0x78] sm:$0xff] %v830_v10 }

// kernel: forward.3
= control target key start
LH: loop header
LB: loop body
LE: loop exit
PB: predicated region body
PF: predicated region fallthrough
CT: control target
= control target key end

     0   :  { %s5782_s11 = smov 0   ;;  %s6901_s0 = inlined_call_operand.vmem [shape: bf16[512,400], index: 0, kind: input, shape index: {}]   ;;  %s6902_s1 = inlined_call_operand.vmem [shape: bf16[400,32], index: 1, kind: input, shape index: {}]   ;;  %s6903_s2 = inlined_call_operand.vmem [shape: f32[1,32], index: 2, kind: input, shape index: {}]   ;;  %s6904_s3 = inlined_call_operand.vmem [shape: f32[64,256], index: 3, kind: input, shape index: {}]   ;;  %s6905_s4 = inlined_call_operand.vmem [shape: bf16[16,32,512], index: 4, kind: input, shape index: {}]   ;;  %s6906_s5 = inlined_call_operand.vmem [shape: f32[1,512], index: 5, kind: input, shape index: {}]   ;;  %s6907_s6 = inlined_call_operand.vmem [shape: bf16[128,512], index: 6, kind: input, shape index: {}]   ;;  %s6908_s7 = inlined_call_operand.vmem [shape: f32[128,1], index: 7, kind: input, shape index: {}]   ;;  %s6909_s8 = inlined_call_operand.<no memory space> [shape: f32[1,1], index: 8, kind: input, shape index: {}]   ;;  %s6910_s9 = inlined_call_operand.vmem [shape: f32[2,1,128], index: 9, kind: output, shape index: {}]  }
   0x1   :  { %v14_v0 = vstv %s6909_s8 }
   0x2   :  { %15 = vst [vmem:[#allocation2] sm:$0x1] %v14_v0 }
   0x3 LB: > { %s5788_s12 = sadd.s32 4294967295, %s5723_s11   ;;  %p4442_p0 = scmp.ge.s32.totalorder %s5723_s11, 1  ;;  %s5723_s11 = sphi %s5782_s11, %s21_s11  }
   0x4   : > { %p291_p1 = scmp.lt.s32.totalorder %s5723_s11, 3 }
   0x6   : > { %p292_p2 = pnand %p4442_p0, %p291_p1 }
   0x7   : > { %v5292_v1 = vld [vmem:[%s6902_s1 + $0x40] sm:$0xff] (!%p292_p2)   ;;  %v5725_v2 = vmov (!%p292_p2), 0   ;;  %v5295_v5 = vld [vmem:[%s6902_s1 + $0x48] sm:$0xff] (!%p292_p2)   ;;  %v5298_v8 = vld [vmem:[%s6902_s1 + $0x50] sm:$0xff] (!%p292_p2)   ;;  %s4443_s30 = sshll.u32 (!%p292_p2), %s5788_s12, 5  ;;  %vm912_vm0 = vcmask (!%p292_p2), 130048  }
   0x8   : > { %295 = sbr.rel (%p292_p2) target bundleno = 2291 (0x8f3), region = 56  ;;  %1122 = vmatprep.subr.bf16.mxu1 (!%p292_p2), %v5725_v2  ;;  %v5293_v3 = vld [vmem:[%s6902_s1 + $0x80] sm:$0xff] (!%p292_p2)   ;;  %5291 = vset.pattern.permute.xlu0 (!%p292_p2), %v5725_v2  ;;  %v5296_v6 = vld [vmem:[%s6902_s1 + $0x88] sm:$0xff] (!%p292_p2)   ;;  %v5299_v9 = vld [vmem:[%s6902_s1 + $0x90] sm:$0xff] (!%p292_p2)   ;;  %p327_p3 = scmp.lt.s32.totalorder (!%p292_p2), %s4443_s30, 63  ;;  %vm1511_vm1 = vcmask (!%p292_p2), 261120  }
   0x9   : > { %4879 = vmatprep.subr.bf16.mxu0 (!%p292_p2), %v5292_v1  ;;  %v5294_v4 = vld [vmem:[%s6902_s1] sm:$0xff] (!%p292_p2)   ;;  %1123 = vmatpush1.bf16.msra.mxu1 (!%p292_p2), %v5293_v3  ;;  %v5297_v7 = vld [vmem:[%s6902_s1 + $0x8] sm:$0xff] (!%p292_p2)   ;;  %v5300_v10 = vld [vmem:[%s6902_s1 + $0x10] sm:$0xff] (!%p292_p2)   ;;  %vm5727_vm2 = vmmov (!%p292_p2), 0   ;;  %p333_p4 = scmp.lt.s32.totalorder (!%p292_p2), %s5788_s12, 1 }
   0xa   : > { %4880 = vmatpush3.bf16.msra.mxu0 (!%p292_p2), %v5294_v4  ;;  %1124 = vmatprep.subr.bf16.mxu1 (!%p292_p2), %v5725_v2  ;;  %v5301_v11 = vld [vmem:[%s6902_s1 + $0x58] sm:$0xff] (!%p292_p2)   ;;  %v5304_v14 = vld [vmem:[%s6902_s1 + $0x60] sm:$0xff] (!%p292_p2)   ;;  %v5307_v17 = vld [vmem:[%s6902_s1 + $0x68] sm:$0xff] (!%p292_p2)  }
   0xb   : > { %4881 = vmatprep.subr.bf16.mxu0 (!%p292_p2), %v5295_v5  ;;  %v5302_v12 = vld [vmem:[%s6902_s1 + $0x98] sm:$0xff] (!%p292_p2)   ;;  %v5305_v15 = vld [vmem:[%s6902_s1 + $0xa0] sm:$0xff] (!%p292_p2)   ;;  %v5308_v18 = vld [vmem:[%s6902_s1 + $0xa8] sm:$0xff] (!%p292_p2)  }
   0xc   : > { %v5303_v13 = vld [vmem:[%s6902_s1 + $0x18] sm:$0xff] (!%p292_p2)   ;;  %v5306_v16 = vld [vmem:[%s6902_s1 + $0x20] sm:$0xff] (!%p292_p2)   ;;  %v5309_v19 = vld [vmem:[%s6902_s1 + $0x28] sm:$0xff] (!%p292_p2)  }
   0xd   : > { %1125 = vmatpush1.bf16.msra.mxu1 (!%p292_p2), %v5296_v6  ;;  %v5310_v20 = vld [vmem:[%s6902_s1 + $0x70] sm:$0xff] (!%p292_p2)   ;;  %v5313_v23 = vld [vmem:[%s6902_s1 + $0x78] sm:$0xff] (!%p292_p2)   ;;  %v5319_v29 = vld [vmem:[%s6902_s1 + $0xc0] sm:$0xff] (!%p292_p2)  }
   0xe   : > { %4882 = vmatpush3.bf16.msra.mxu0 (!%p292_p2), %v5297_v7  ;;  %1126 = vmatprep.subr.bf16.mxu1 (!%p292_p2), %v5725_v2  ;;  %v5311_v21 = vld [vmem:[%s6902_s1 + $0xb0] sm:$0xff] (!%p292_p2)   ;;  %v5314_v25 = vld [vmem:[%s6902_s1 + $0xb8] sm:$0xff] (!%p292_p2)  }
   0xf   : > { %4883 = vmatprep.subr.bf16.mxu0 %v5298_v8  ;;  %s6912_s30 = smov (!%p327_p3, %s4443_s30), 63  ;;  %v5312_v22 = vld [vmem:[%s6902_s1 + $0x30] sm:$0xff]   ;;  %v5315_v27 = vld [vmem:[%s6902_s1 + $0x38] sm:$0xff]   ;;  %s6914_s12 = smov (!%p333_p4, %s5788_s12), 1 }
  0x10   : > { %s4878_s27 = sshll.u32 %s6912_s30, 4  ;;  %s335_s17 = scalar_lea.vmem %s6910_s9, %s6914_s12 }
  0x11   : > { %1127 = vmatpush1.bf16.msra.mxu1 %v5299_v9  ;;  %s5863_s30 = scalar_lea.vmem %s6901_s0, %s4878_s27 }
  0x12   : > { %4884 = vmatpush3.bf16.msra.mxu0 %v5300_v10  ;;  %1128 = vmatprep.subr.bf16.mxu1 %v5725_v2  ;;  %v5318_v24 = vld [vmem:[%s5863_s30 + $0x4] ss:$16 sps:$4 sm:$0xff]   ;;  %v5322_v26 = vld [vmem:[%s5863_s30 + $0xc] ss:$16 sps:$4 sm:$0xff]   ;;  %v5316_v28 = vld [vmem:[%s5863_s30] ss:$16 sps:$4 sm:$0xff]  }
  0x13   : > { %4885 = vmatprep.subr.bf16.mxu0 %v5301_v11  ;;  %993 = vmatprep.mubr.bf16.mxu0 %v5318_v24  ;;  %v5323_v30 = vld [vmem:[%s5863_s30 + $0x24] ss:$16 sps:$4 sm:$0xff]   ;;  %v5320_v31 = vld [vmem:[%s5863_s30 + $0x8] ss:$16 sps:$4 sm:$0xff]   ;;  %v5326_v32 = vld [vmem:[%s5863_s30 + $0x2c] ss:$16 sps:$4 sm:$0xff]  }
  0x14   : > { %4536 = vmatprep.mubr.msk.bf16.mxu1 %vm912_vm0, %v5322_v26  ;;  %v5325_v33 = vld [vmem:[%s5863_s30 + $0x20] ss:$16 sps:$4 sm:$0xff]   ;;  %v5329_v34 = vld [vmem:[%s5863_s30 + $0x44] ss:$16 sps:$4 sm:$0xff]   ;;  %v5328_v35 = vld [vmem:[%s5863_s30 + $0x28] ss:$16 sps:$4 sm:$0xff]  }
  0x15   : > { %1129 = vmatpush1.bf16.msra.mxu1 %v5302_v12  ;;  %v5332_v36 = vld [vmem:[%s5863_s30 + $0x4c] ss:$16 sps:$4 sm:$0xff]   ;;  %v5331_v37 = vld [vmem:[%s5863_s30 + $0x40] ss:$16 sps:$4 sm:$0xff]   ;;  %v5335_v38 = vld [vmem:[%s5863_s30 + $0x64] ss:$16 sps:$4 sm:$0xff]  }
  0x16   : > { %4886 = vmatpush3.bf16.msra.mxu0 %v5303_v13  ;;  %1130 = vmatprep.subr.bf16.mxu1 %v5725_v2  ;;  %v5334_v39 = vld [vmem:[%s5863_s30 + $0x48] ss:$16 sps:$4 sm:$0xff]   ;;  %v5338_v40 = vld [vmem:[%s5863_s30 + $0x6c] ss:$16 sps:$4 sm:$0xff]   ;;  %v5337_v41 = vld [vmem:[%s5863_s30 + $0x60] ss:$16 sps:$4 sm:$0xff]  }
  0x17   : > { %4887 = vmatprep.subr.bf16.mxu0 %v5304_v14  ;;  %v5341_v42 = vld [vmem:[%s5863_s30 + $0x84] ss:$16 sps:$4 sm:$0xff]   ;;  %v5340_v43 = vld [vmem:[%s5863_s30 + $0x68] ss:$16 sps:$4 sm:$0xff]   ;;  %v5344_v44 = vld [vmem:[%s5863_s30 + $0x8c] ss:$16 sps:$4 sm:$0xff]  }
  0x18   : > { %v5343_v45 = vld [vmem:[%s5863_s30 + $0x80] ss:$16 sps:$4 sm:$0xff]   ;;  %v5347_v46 = vld [vmem:[%s5863_s30 + $0xa4] ss:$16 sps:$4 sm:$0xff]   ;;  %v5346_v47 = vld [vmem:[%s5863_s30 + $0x88] ss:$16 sps:$4 sm:$0xff]  }
  0x19   : > { %1131 = vmatpush1.bf16.msra.mxu1 %v5305_v15  ;;  %v5350_v48 = vld [vmem:[%s5863_s30 + $0xac] ss:$16 sps:$4 sm:$0xff]   ;;  %v5349_v49 = vld [vmem:[%s5863_s30 + $0xa0] ss:$16 sps:$4 sm:$0xff]   ;;  %v5353_v50 = vld [vmem:[%s5863_s30 + $0xc4] ss:$16 sps:$4 sm:$0xff]  }
  0x1a   : > { %4888 = vmatpush3.bf16.msra.mxu0 %v5306_v16  ;;  %1132 = vmatprep.subr.bf16.mxu1 %v5725_v2  ;;  %v5352_v51 = vld [vmem:[%s5863_s30 + $0xa8] ss:$16 sps:$4 sm:$0xff]   ;;  %v5356_v52 = vld [vmem:[%s5863_s30 + $0xcc] ss:$16 sps:$4 sm:$0xff]   ;;  %v5355_v53 = vld [vmem:[%s5863_s30 + $0xc0] ss:$16 sps:$4 sm:$0xff]  }
  0x1b   : > { %4889 = vmatprep.subr.bf16.mxu0 %v5307_v17  ;;  %v5359_v54 = vld [vmem:[%s5863_s30 + $0xe4] ss:$16 sps:$4 sm:$0xff]   ;;  %v5358_v55 = vld [vmem:[%s5863_s30 + $0xc8] ss:$16 sps:$4 sm:$0xff]   ;;  %v5362_v56 = vld [vmem:[%s5863_s30 + $0xec] ss:$16 sps:$4 sm:$0xff]  }
  0x1c   : > { %v5361_v57 = vld [vmem:[%s5863_s30 + $0xe0] ss:$16 sps:$4 sm:$0xff]   ;;  %v5365_v58 = vld [vmem:[%s5863_s30 + $0x104] ss:$16 sps:$4 sm:$0xff]   ;;  %v5364_v59 = vld [vmem:[%s5863_s30 + $0xe8] ss:$16 sps:$4 sm:$0xff]  }
  0x1d   : > { %1133 = vmatpush1.bf16.msra.mxu1 %v5308_v18  ;;  %v5368_v60 = vld [vmem:[%s5863_s30 + $0x10c] ss:$16 sps:$4 sm:$0xff]   ;;  %v5367_v61 = vld [vmem:[%s5863_s30 + $0x100] ss:$16 sps:$4 sm:$0xff]   ;;  %v5371_v62 = vld [vmem:[%s5863_s30 + $0x124] ss:$16 sps:$4 sm:$0xff]  }
  0x1e   : > { %4890 = vmatpush3.bf16.msra.mxu0 %v5309_v19  ;;  %1134 = vmatprep.subr.bf16.mxu1 %v5725_v2  ;;  %v5370_v63 = vld [vmem:[%s5863_s30 + $0x108] ss:$16 sps:$4 sm:$0xff]   ;;  %v5374_v0 = vld [vmem:[%s5863_s30 + $0x12c] ss:$16 sps:$4 sm:$0xff]   ;;  %v5373_v1 = vld [vmem:[%s5863_s30 + $0x120] ss:$16 sps:$4 sm:$0xff]  }
  0x1f   : > { %4891 = vmatprep.subr.bf16.mxu0 %v5310_v20  ;;  %v5377_v3 = vld [vmem:[%s5863_s30 + $0x144] ss:$16 sps:$4 sm:$0xff]   ;;  %v5376_v4 = vld [vmem:[%s5863_s30 + $0x128] ss:$16 sps:$4 sm:$0xff]   ;;  %v5380_v5 = vld [vmem:[%s5863_s30 + $0x14c] ss:$16 sps:$4 sm:$0xff]  }
  0x20   : > { %v5379_v6 = vld [vmem:[%s5863_s30 + $0x140] ss:$16 sps:$4 sm:$0xff]   ;;  %v5383_v7 = vld [vmem:[%s5863_s30 + $0x164] ss:$16 sps:$4 sm:$0xff]   ;;  %v5382_v8 = vld [vmem:[%s5863_s30 + $0x148] ss:$16 sps:$4 sm:$0xff]  }
  0x21   : > { %1135 = vmatpush1.bf16.msra.mxu1 %v5311_v21  ;;  %v5386_v9 = vld [vmem:[%s5863_s30 + $0x16c] ss:$16 sps:$4 sm:$0xff]   ;;  %v5385_v10 = vld [vmem:[%s5863_s30 + $0x160] ss:$16 sps:$4 sm:$0xff]   ;;  %v5389_v11 = vld [vmem:[%s5863_s30 + $0x184] ss:$16 sps:$4 sm:$0xff]  }
  0x22   : > { %4892 = vmatpush3.bf16.msra.mxu0 %v5312_v22  ;;  %1136 = vmatprep.subr.bf16.mxu1 %v5725_v2  ;;  %v5388_v12 = vld [vmem:[%s5863_s30 + $0x168] ss:$16 sps:$4 sm:$0xff]   ;;  %v5392_v13 = vld [vmem:[%s5863_s30 + $0x18c] ss:$16 sps:$4 sm:$0xff]   ;;  %v5391_v14 = vld [vmem:[%s5863_s30 + $0x180] ss:$16 sps:$4 sm:$0xff]  }
  0x23   : > { %4893 = vmatprep.subr.bf16.mxu0 %v5313_v23  ;;  %v5395_v15 = vld [vmem:[%s5863_s30 + $0x1a4] ss:$16 sps:$4 sm:$0xff]   ;;  %v5394_v16 = vld [vmem:[%s5863_s30 + $0x188] ss:$16 sps:$4 sm:$0xff]   ;;  %v5398_v17 = vld [vmem:[%s5863_s30 + $0x1ac] ss:$16 sps:$4 sm:$0xff]  }
  0x24   : > { %v5397_v18 = vld [vmem:[%s5863_s30 + $0x1a0] ss:$16 sps:$4 sm:$0xff]   ;;  %v5401_v19 = vld [vmem:[%s5863_s30 + $0x1c4] ss:$16 sps:$4 sm:$0xff]   ;;  %v5400_v20 = vld [vmem:[%s5863_s30 + $0x1a8] ss:$16 sps:$4 sm:$0xff]  }
  0x25   : > { %1137 = vmatpush1.bf16.msra.mxu1 %v5314_v25  ;;  %v5404_v21 = vld [vmem:[%s5863_s30 + $0x1cc] ss:$16 sps:$4 sm:$0xff]   ;;  %v5403_v22 = vld [vmem:[%s5863_s30 + $0x1c0] ss:$16 sps:$4 sm:$0xff]   ;;  %v5407_v23 = vld [vmem:[%s5863_s30 + $0x1e4] ss:$16 sps:$4 sm:$0xff]  }
  0x26   : > { %4894 = vmatpush3.bf16.msra.mxu0 %v5315_v27  ;;  %1138 = vmatprep.subr.bf16.mxu1 %v5725_v2  ;;  %v5406_v24 = vld [vmem:[%s5863_s30 + $0x1c8] ss:$16 sps:$4 sm:$0xff]   ;;  %v5410_v25 = vld [vmem:[%s5863_s30 + $0x1ec] ss:$16 sps:$4 sm:$0xff]   ;;  %v5409_v26 = vld [vmem:[%s5863_s30 + $0x1e0] ss:$16 sps:$4 sm:$0xff]  }
  0x27   : > { %v5412_v27 = vld [vmem:[%s5863_s30 + $0x1e8] ss:$16 sps:$4 sm:$0xff]  }
  0x29   : > { %994 = vmatmul.mubr.bf16.vlgmr.msra.gmra.mrb[0].mxu0 %v5316_v28  ;;  %1139 = vmatpush1.bf16.msra.mxu1 %v5319_v29 }
  0x2a   : > { %1001 = vmatprep.mubr.bf16.mxu0 %v5323_v30  ;;  %v5967_v30 = vld [vmem:[%s6903_s2] ss:$0 sm:$0xff] }
  0x2c   : > { %1155 = vmatmul.mubr.bf16.vlgmr.msra.gmra.mrb[0].mxu1 %v5320_v31 }
  0x2d   : > { %4537 = vmatprep.mubr.msk.bf16.mxu1 %vm912_vm0, %v5326_v32 }
  0x31   : > { %1002 = vmatmul.mubr.bf16.gmra.mrb[4].mxu0 %v5325_v33 }
  0x32   : > { %1009 = vmatprep.mubr.bf16.mxu0 %v5329_v34 }
  0x34   : > { %1163 = vmatmul.mubr.bf16.gmra.mrb[4].mxu1 %v5328_v35 }
  0x35   : > { %4538 = vmatprep.mubr.msk.bf16.mxu1 %vm912_vm0, %v5332_v36 }
  0x39   : > { %1010 = vmatmul.mubr.bf16.gmra.mrb[8].mxu0 %v5331_v37 }
  0x3a   : > { %1017 = vmatprep.mubr.bf16.mxu0 %v5335_v38 }
  0x3c   : > { %1171 = vmatmul.mubr.bf16.gmra.mrb[8].mxu1 %v5334_v39 }
  0x3d   : > { %4539 = vmatprep.mubr.msk.bf16.mxu1 %vm912_vm0, %v5338_v40 }
  0x41   : > { %1018 = vmatmul.mubr.bf16.gmra.mrb[12].mxu0 %v5337_v41 }
  0x42   : > { %1025 = vmatprep.mubr.bf16.mxu0 %v5341_v42  ;;  %v1316_v42 = vld [vmem:[%s6904_s3 + $0x8] sm:$0xff] }
  0x44   : > { %1179 = vmatmul.mubr.bf16.gmra.mrb[12].mxu1 %v5340_v43 }
  0x45   : > { %4540 = vmatprep.mubr.msk.bf16.mxu1 %vm912_vm0, %v5344_v44 }
  0x49   : > { %1026 = vmatmul.mubr.bf16.gmra.mrb[16].mxu0 %v5343_v45 }
  0x4a   : > { %1033 = vmatprep.mubr.bf16.mxu0 %v5347_v46 }
  0x4c   : > { %1187 = vmatmul.mubr.bf16.gmra.mrb[16].mxu1 %v5346_v47 }
  0x4d   : > { %4541 = vmatprep.mubr.msk.bf16.mxu1 %vm912_vm0, %v5350_v48 }
  0x51   : > { %1034 = vmatmul.mubr.bf16.gmra.mrb[20].mxu0 %v5349_v49 }
  0x52   : > { %1041 = vmatprep.mubr.bf16.mxu0 %v5353_v50 }
  0x54   : > { %1195 = vmatmul.mubr.bf16.gmra.mrb[20].mxu1 %v5352_v51 }
  0x55   : > { %4542 = vmatprep.mubr.msk.bf16.mxu1 %vm912_vm0, %v5356_v52 }
  0x59   : > { %1042 = vmatmul.mubr.bf16.gmra.mrb[24].mxu0 %v5355_v53 }
  0x5a   : > { %1049 = vmatprep.mubr.bf16.mxu0 %v5359_v54 }
  0x5c   : > { %1203 = vmatmul.mubr.bf16.gmra.mrb[24].mxu1 %v5358_v55 }
  0x5d   : > { %4543 = vmatprep.mubr.msk.bf16.mxu1 %vm912_vm0, %v5362_v56 }
  0x61   : > { %1050 = vmatmul.mubr.bf16.gmra.mrb[28].mxu0 %v5361_v57 }
  0x62   : > { %1057 = vmatprep.mubr.bf16.mxu0 %v5365_v58 }
  0x64   : > { %1211 = vmatmul.mubr.bf16.gmra.mrb[28].mxu1 %v5364_v59 }
  0x65   : > { %4544 = vmatprep.mubr.msk.bf16.mxu1 %vm912_vm0, %v5368_v60 }
  0x69   : > { %1058 = vmatmul.mubr.bf16.gmra.mrb[32].mxu0 %v5367_v61 }
  0x6a   : > { %1065 = vmatprep.mubr.bf16.mxu0 %v5371_v62 }
  0x6c   : > { %1219 = vmatmul.mubr.bf16.gmra.mrb[32].mxu1 %v5370_v63 }
  0x6d   : > { %4545 = vmatprep.mubr.msk.bf16.mxu1 %vm912_vm0, %v5374_v0 }
  0x71   : > { %1066 = vmatmul.mubr.bf16.gmra.mrb[36].mxu0 %v5373_v1 }
  0x72   : > { %1073 = vmatprep.mubr.bf16.mxu0 %v5377_v3 }
  0x74   : > { %1227 = vmatmul.mubr.bf16.gmra.mrb[36].mxu1 %v5376_v4 }
  0x75   : > { %4546 = vmatprep.mubr.msk.bf16.mxu1 %vm912_vm0, %v5380_v5 }
  0x79   : > { %1074 = vmatmul.mubr.bf16.gmra.mrb[40].mxu0 %v5379_v6 }
  0x7a   : > { %1081 = vmatprep.mubr.bf16.mxu0 %v5383_v7 }
  0x7c   : > { %1235 = vmatmul.mubr.bf16.gmra.mrb[40].mxu1 %v5382_v8 }
  0x7d   : > { %4547 = vmatprep.mubr.msk.bf16.mxu1 %vm912_vm0, %v5386_v9 }
  0x81   : > { %1082 = vmatmul.mubr.bf16.gmra.mrb[44].mxu0 %v5385_v10 }
  0x82   : > { %1089 = vmatprep.mubr.bf16.mxu0 %v5389_v11 }
  0x84   : > { %1243 = vmatmul.mubr.bf16.gmra.mrb[44].mxu1 %v5388_v12 }
  0x85   : > { %4548 = vmatprep.mubr.msk.bf16.mxu1 %vm912_vm0, %v5392_v13 }
  0x89   : > { %1090 = vmatmul.mubr.bf16.gmra.mrb[48].mxu0 %v5391_v14 }
  0x8a   : > { %1097 = vmatprep.mubr.bf16.mxu0 %v5395_v15 }
  0x8c   : > { %1251 = vmatmul.mubr.bf16.gmra.mrb[48].mxu1 %v5394_v16 }
  0x8d   : > { %4549 = vmatprep.mubr.msk.bf16.mxu1 %vm912_vm0, %v5398_v17 }
  0x91   : > { %1098 = vmatmul.mubr.bf16.gmra.mrb[52].mxu0 %v5397_v18 }
  0x92   : > { %1105 = vmatprep.mubr.bf16.mxu0 %v5401_v19 }
  0x94   : > { %1259 = vmatmul.mubr.bf16.gmra.mrb[52].mxu1 %v5400_v20 }
  0x95   : > { %4550 = vmatprep.mubr.msk.bf16.mxu1 %vm912_vm0, %v5404_v21  ;;  %v5413_v21 = vld [vmem:[%s6905_s4] ss:$16 sps:$4 sm:$0xff]  }
  0x99   : > { %1106 = vmatmul.mubr.bf16.gmra.mrb[56].mxu0 %v5403_v22  ;;  %v5415_v22 = vld [vmem:[%s6905_s4 + $0x4] ss:$16 sps:$4 sm:$0xff]  }
  0x9a   : > { %1113 = vmatprep.mubr.bf16.mxu0 %v5407_v23  ;;  %1515 = vmatprep.subr.bf16.mxu1 %v5415_v22 }
  0x9b   : > { %1516 = vmatpush1.bf16.msra.mxu1 %v5413_v21 }
  0x9c   : > { %1267 = vmatmul.mubr.bf16.gmra.mrb[56].mxu1 %v5406_v24 }
  0x9d   : > { %4551 = vmatprep.mubr.msk.bf16.mxu1 %vm912_vm0, %v5410_v25 }
  0xa1   : > { %1114 = vmatmul.mubr.bf16.gmra.mrb[60].mxu0 %v5409_v26 }
  0xa2   : > { %1395 = vmatprep.mubr.f32.mxu0 %v1316_v42 }
  0xa4   : > { %1275 = vmatmul.mubr.bf16.gmra.mrb[60].mxu1 %v5412_v27 }
  0xa5   : > { %1547 = vmatprep.mubr.bf16.mxu1 %v5725_v2 }
  0xfc   : > { %v4895_v28 = vpop.f32.mrb[0].mxu0 }
  0xfd   : > { %v4896_v29 = vpop.f32.mrb[1].mxu0 }
  0xfe   : > { %v4897_v31 = vadd.f32 %v4896_v29, %v4895_v28  ;;  %v4898_v32 = vpop.f32.mrb[2].mxu0 }
  0xff   : > { %v4899_v33 = vpop.f32.mrb[3].mxu0  ;;  %v1156_v34 = vpop.f32.mrb[0].mxu1 }
 0x100   : > { %v4900_v35 = vadd.f32 %v4899_v33, %v4898_v32  ;;  %v996_v36 = vadd.f32 %v4897_v31, %v5967_v30  ;;  %v1158_v37 = vpop.f32.mrb[1].mxu1 }
 0x101   : > { %v1159_v38 = vpop.f32.mrb[2].mxu1 }
 0x102   : > { %v1157_v39 = vadd.f32 %v1156_v34, %v996_v36  ;;  %v999_v40 = vadd.f32 %v4900_v35, %v5967_v30  ;;  %v1161_v41 = vpop.f32.mrb[3].mxu1 }
 0x104   : > { %v1160_v43 = vadd.f32 %v1159_v38, %v999_v40  ;;  %v4901_v44 = vpop.f32.mrb[4].mxu0  ;;  %v1283_v46 = vmax.f32 %v1157_v39, 0.0 }
 0x105   : > { %v4902_v45 = vpop.f32.mrb[5].mxu0 }
 0x106   : > { %v1284_v47 = vmax.f32 %v1160_v43, 0.0  ;;  %v4903_v48 = vadd.f32 %v4902_v45, %v4901_v44  ;;  %v4904_v49 = vpop.f32.mrb[6].mxu0 }
 0x107   : > { %v4905_v50 = vpop.f32.mrb[7].mxu0  ;;  %v1164_v51 = vpop.f32.mrb[4].mxu1 }
 0x108   : > { %v5974_v52 = vpack.c.bf16 %v1284_v47, %v1283_v46  ;;  %v4906_v53 = vadd.f32 %v4905_v50, %v4904_v49  ;;  %v1004_v54 = vadd.f32 %v4903_v48, %v5967_v30  ;;  %v1166_v55 = vpop.f32.mrb[5].mxu1 }
 0x109   : > { %v1167_v56 = vpop.f32.mrb[6].mxu1 }
 0x10a   : > { %v1165_v57 = vadd.f32 %v1164_v51, %v1004_v54  ;;  %v1007_v58 = vadd.f32 %v4906_v53, %v5967_v30  ;;  %v1169_v59 = vpop.f32.mrb[7].mxu1 }
 0x10c   : > { %v1168_v60 = vadd.f32 %v1167_v56, %v1007_v58  ;;  %v4907_v61 = vpop.f32.mrb[8].mxu0  ;;  %v1285_v63 = vmax.f32 %v1165_v57, 0.0 }
 0x10d   : > { %v4908_v62 = vpop.f32.mrb[9].mxu0 }
 0x10e   : > { %v1286_v0 = vmax.f32 %v1168_v60, 0.0  ;;  %v4909_v1 = vadd.f32 %v4908_v62, %v4907_v61  ;;  %v4910_v3 = vpop.f32.mrb[10].mxu0 }
 0x10f   : > { %v4911_v4 = vpop.f32.mrb[11].mxu0  ;;  %v1172_v5 = vpop.f32.mrb[8].mxu1 }
 0x110   : > { %v5978_v6 = vpack.c.bf16 %v1286_v0, %v1285_v63  ;;  %v4912_v7 = vadd.f32 %v4911_v4, %v4910_v3  ;;  %v1012_v8 = vadd.f32 %v4909_v1, %v5967_v30  ;;  %v1174_v9 = vpop.f32.mrb[9].mxu1 }
 0x111   : > { %v1175_v10 = vpop.f32.mrb[10].mxu1 }
 0x112   : > { %v1173_v11 = vadd.f32 %v1172_v5, %v1012_v8  ;;  %v1015_v12 = vadd.f32 %v4912_v7, %v5967_v30  ;;  %v1177_v13 = vpop.f32.mrb[11].mxu1 }
 0x114   : > { %v1176_v14 = vadd.f32 %v1175_v10, %v1015_v12  ;;  %v4913_v15 = vpop.f32.mrb[12].mxu0  ;;  %v1287_v16 = vmax.f32 %v1173_v11, 0.0 }
 0x115   : > { %v4914_v17 = vpop.f32.mrb[13].mxu0 }
 0x116   : > { %v1288_v18 = vmax.f32 %v1176_v14, 0.0  ;;  %v4915_v19 = vadd.f32 %v4914_v17, %v4913_v15  ;;  %v4916_v20 = vpop.f32.mrb[14].mxu0 }
 0x117   : > { %v4917_v23 = vpop.f32.mrb[15].mxu0  ;;  %v1180_v24 = vpop.f32.mrb[12].mxu1 }
 0x118   : > { %v5988_v25 = vpack.c.bf16 %v1288_v18, %v1287_v16  ;;  %v4918_v26 = vadd.f32 %v4917_v23, %v4916_v20  ;;  %v1020_v27 = vadd.f32 %v4915_v19, %v5967_v30  ;;  %v1182_v28 = vpop.f32.mrb[13].mxu1 }
 0x119   : > { %v1183_v29 = vpop.f32.mrb[14].mxu1 }
 0x11a   : > { %v1181_v31 = vadd.f32 %v1180_v24, %v1020_v27  ;;  %v1023_v32 = vadd.f32 %v4918_v26, %v5967_v30  ;;  %v1185_v33 = vpop.f32.mrb[15].mxu1 }
 0x11c   : > { %v1184_v34 = vadd.f32 %v1183_v29, %v1023_v32  ;;  %v4919_v35 = vpop.f32.mrb[16].mxu0  ;;  %v1289_v37 = vmax.f32 %v1181_v31, 0.0 }
 0x11d   : > { %v4920_v36 = vpop.f32.mrb[17].mxu0 }
 0x11e   : > { %v1290_v38 = vmax.f32 %v1184_v34, 0.0  ;;  %v4921_v39 = vadd.f32 %v4920_v36, %v4919_v35  ;;  %v4922_v40 = vpop.f32.mrb[18].mxu0 }
 0x11f   : > { %v4923_v41 = vpop.f32.mrb[19].mxu0  ;;  %v1188_v42 = vpop.f32.mrb[16].mxu1 }
 0x120   : > { %v5992_v43 = vpack.c.bf16 %v1290_v38, %v1289_v37  ;;  %v4924_v44 = vadd.f32 %v4923_v41, %v4922_v40  ;;  %v1028_v45 = vadd.f32 %v4921_v39, %v5967_v30  ;;  %v1190_v46 = vpop.f32.mrb[17].mxu1 }
 0x121   : > { %v1191_v47 = vpop.f32.mrb[18].mxu1 }
 0x122   : > { %v1189_v48 = vadd.f32 %v1188_v42, %v1028_v45  ;;  %v1031_v49 = vadd.f32 %v4924_v44, %v5967_v30  ;;  %v1193_v50 = vpop.f32.mrb[19].mxu1 }
 0x124   : > { %v1192_v51 = vadd.f32 %v1191_v47, %v1031_v49  ;;  %v4925_v53 = vpop.f32.mrb[20].mxu0  ;;  %v1291_v55 = vmax.f32 %v1189_v48, 0.0 }
 0x125   : > { %v4926_v54 = vpop.f32.mrb[21].mxu0 }
 0x126   : > { %v1292_v56 = vmax.f32 %v1192_v51, 0.0  ;;  %v4927_v57 = vadd.f32 %v4926_v54, %v4925_v53  ;;  %v4928_v58 = vpop.f32.mrb[22].mxu0 }
 0x127   : > { %v4929_v59 = vpop.f32.mrb[23].mxu0  ;;  %v1196_v60 = vpop.f32.mrb[20].mxu1 }
 0x128   : > { %v5996_v61 = vpack.c.bf16 %v1292_v56, %v1291_v55  ;;  %v4930_v62 = vadd.f32 %v4929_v59, %v4928_v58  ;;  %v1036_v63 = vadd.f32 %v4927_v57, %v5967_v30  ;;  %v1198_v0 = vpop.f32.mrb[21].mxu1 }
 0x129   : > { %v1199_v1 = vpop.f32.mrb[22].mxu1 }
 0x12a   : > { %v1197_v3 = vadd.f32 %v1196_v60, %v1036_v63  ;;  %v1039_v4 = vadd.f32 %v4930_v62, %v5967_v30  ;;  %v1201_v5 = vpop.f32.mrb[23].mxu1 }
 0x12c   : > { %v1200_v7 = vadd.f32 %v1199_v1, %v1039_v4  ;;  %v4931_v8 = vpop.f32.mrb[24].mxu0  ;;  %v1293_v10 = vmax.f32 %v1197_v3, 0.0 }
 0x12d   : > { %v4932_v9 = vpop.f32.mrb[25].mxu0 }
 0x12e   : > { %v1294_v11 = vmax.f32 %v1200_v7, 0.0  ;;  %v4933_v12 = vadd.f32 %v4932_v9, %v4931_v8  ;;  %v4934_v13 = vpop.f32.mrb[26].mxu0 }
 0x12f   : > { %v4935_v14 = vpop.f32.mrb[27].mxu0  ;;  %v1204_v15 = vpop.f32.mrb[24].mxu1 }
 0x130   : > { %v6000_v16 = vpack.c.bf16 %v1294_v11, %v1293_v10  ;;  %v4936_v17 = vadd.f32 %v4935_v14, %v4934_v13  ;;  %v1044_v18 = vadd.f32 %v4933_v12, %v5967_v30  ;;  %v1206_v19 = vpop.f32.mrb[25].mxu1 }
 0x131   : > { %v1207_v20 = vpop.f32.mrb[26].mxu1 }
 0x132   : > { %v1205_v21 = vadd.f32 %v1204_v15, %v1044_v18  ;;  %v1047_v22 = vadd.f32 %v4936_v17, %v5967_v30  ;;  %v1209_v23 = vpop.f32.mrb[27].mxu1 }
 0x134   : > { %v1208_v24 = vadd.f32 %v1207_v20, %v1047_v22  ;;  %v4937_v26 = vpop.f32.mrb[28].mxu0  ;;  %v1295_v28 = vmax.f32 %v1205_v21, 0.0 }
 0x135   : > { %v4938_v27 = vpop.f32.mrb[29].mxu0 }
 0x136   : > { %v1296_v29 = vmax.f32 %v1208_v24, 0.0  ;;  %v4939_v31 = vadd.f32 %v4938_v27, %v4937_v26  ;;  %v4940_v32 = vpop.f32.mrb[30].mxu0 }
 0x137   : > { %v4941_v33 = vpop.f32.mrb[31].mxu0  ;;  %v1212_v34 = vpop.f32.mrb[28].mxu1 }
 0x138   : > { %v6004_v35 = vpack.c.bf16 %v1296_v29, %v1295_v28  ;;  %v4942_v36 = vadd.f32 %v4941_v33, %v4940_v32  ;;  %v1052_v37 = vadd.f32 %v4939_v31, %v5967_v30  ;;  %v1214_v38 = vpop.f32.mrb[29].mxu1 }
 0x139   : > { %v1215_v39 = vpop.f32.mrb[30].mxu1 }
 0x13a   : > { %v1213_v40 = vadd.f32 %v1212_v34, %v1052_v37  ;;  %v1055_v41 = vadd.f32 %v4942_v36, %v5967_v30  ;;  %v1217_v42 = vpop.f32.mrb[31].mxu1 }
 0x13c   : > { %v1216_v44 = vadd.f32 %v1215_v39, %v1055_v41  ;;  %v4943_v45 = vpop.f32.mrb[32].mxu0  ;;  %v1297_v47 = vmax.f32 %v1213_v40, 0.0 }
 0x13d   : > { %v4944_v46 = vpop.f32.mrb[33].mxu0 }
 0x13e   : > { %v1298_v48 = vmax.f32 %v1216_v44, 0.0  ;;  %v4945_v49 = vadd.f32 %v4944_v46, %v4943_v45  ;;  %v4946_v50 = vpop.f32.mrb[34].mxu0 }
 0x13f   : > { %v4947_v51 = vpop.f32.mrb[35].mxu0  ;;  %v1220_v53 = vpop.f32.mrb[32].mxu1 }
 0x140   : > { %v6008_v54 = vpack.c.bf16 %v1298_v48, %v1297_v47  ;;  %v4948_v55 = vadd.f32 %v4947_v51, %v4946_v50  ;;  %v1060_v56 = vadd.f32 %v4945_v49, %v5967_v30  ;;  %v1222_v57 = vpop.f32.mrb[33].mxu1 }
 0x141   : > { %v1223_v58 = vpop.f32.mrb[34].mxu1 }
 0x142   : > { %v1221_v59 = vadd.f32 %v1220_v53, %v1060_v56  ;;  %v1063_v60 = vadd.f32 %v4948_v55, %v5967_v30  ;;  %v1225_v62 = vpop.f32.mrb[35].mxu1 }
 0x144   : > { %v1224_v63 = vadd.f32 %v1223_v58, %v1063_v60  ;;  %v4949_v0 = vpop.f32.mrb[36].mxu0  ;;  %v1299_v3 = vmax.f32 %v1221_v59, 0.0 }
 0x145   : > { %v4950_v1 = vpop.f32.mrb[37].mxu0 }
 0x146   : > { %v1300_v4 = vmax.f32 %v1224_v63, 0.0  ;;  %v4951_v5 = vadd.f32 %v4950_v1, %v4949_v0  ;;  %v4952_v7 = vpop.f32.mrb[38].mxu0 }
 0x147   : > { %v4953_v8 = vpop.f32.mrb[39].mxu0  ;;  %v1228_v9 = vpop.f32.mrb[36].mxu1 }
 0x148   : > { %v5099_v10 = vpack.c.bf16 %v1300_v4, %v1299_v3  ;;  %v4954_v11 = vadd.f32 %v4953_v8, %v4952_v7  ;;  %v1068_v12 = vadd.f32 %v4951_v5, %v5967_v30  ;;  %v1230_v13 = vpop.f32.mrb[37].mxu1 }
 0x149   : > { %v1231_v14 = vpop.f32.mrb[38].mxu1 }
 0x14a   : > { %v1229_v15 = vadd.f32 %v1228_v9, %v1068_v12  ;;  %5100 = vmatprep.subr.bf16.mxu0 %v5099_v10  ;;  %v1071_v17 = vadd.f32 %v4954_v11, %v5967_v30  ;;  %v1233_v18 = vpop.f32.mrb[39].mxu1 }
 0x14b   : > { %5102 = vmatpush3.bf16.msra.mxu0 %v5974_v52 }
 0x14c   : > { %v1232_v19 = vadd.f32 %v1231_v14, %v1071_v17  ;;  %v4955_v20 = vpop.f32.mrb[40].mxu0  ;;  %v1301_v22 = vmax.f32 %v1229_v15, 0.0 }
 0x14d   : > { %v4956_v21 = vpop.f32.mrb[41].mxu0 }
 0x14e   : > { %v1302_v23 = vmax.f32 %v1232_v19, 0.0  ;;  %v4957_v24 = vadd.f32 %v4956_v21, %v4955_v20  ;;  %v4958_v26 = vpop.f32.mrb[42].mxu0 }
 0x14f   : > { %v4959_v27 = vpop.f32.mrb[43].mxu0  ;;  %v1236_v28 = vpop.f32.mrb[40].mxu1 }
 0x150   : > { %v5103_v29 = vpack.c.bf16 %v1302_v23, %v1301_v22  ;;  %v4960_v31 = vadd.f32 %v4959_v27, %v4958_v26  ;;  %v1076_v32 = vadd.f32 %v4957_v24, %v5967_v30  ;;  %v1238_v33 = vpop.f32.mrb[41].mxu1 }
 0x151   : > { %v1239_v34 = vpop.f32.mrb[42].mxu1 }
 0x152   : > { %v1237_v36 = vadd.f32 %v1236_v28, %v1076_v32  ;;  %5104 = vmatprep.subr.bf16.mxu0 %v5103_v29  ;;  %v1079_v37 = vadd.f32 %v4960_v31, %v5967_v30  ;;  %v1241_v52 = vpop.f32.mrb[43].mxu1 }
 0x153   : > { %5106 = vmatpush3.bf16.msra.mxu0 %v5978_v6 }
 0x154   : > { %v1240_v38 = vadd.f32 %v1239_v34, %v1079_v37  ;;  %v4961_v39 = vpop.f32.mrb[44].mxu0  ;;  %v1303_v41 = vmax.f32 %v1237_v36, 0.0 }
 0x155   : > { %v4962_v40 = vpop.f32.mrb[45].mxu0 }
 0x156   : > { %v1304_v42 = vmax.f32 %v1240_v38, 0.0  ;;  %v4963_v44 = vadd.f32 %v4962_v40, %v4961_v39  ;;  %v4964_v45 = vpop.f32.mrb[46].mxu0 }
 0x157   : > { %v4965_v46 = vpop.f32.mrb[47].mxu0  ;;  %v1244_v47 = vpop.f32.mrb[44].mxu1 }
 0x158   : > { %v5107_v48 = vpack.c.bf16 %v1304_v42, %v1303_v41  ;;  %v4966_v49 = vadd.f32 %v4965_v46, %v4964_v45  ;;  %v1084_v50 = vadd.f32 %v4963_v44, %v5967_v30  ;;  %v1246_v51 = vpop.f32.mrb[45].mxu1 }
 0x159   : > { %v1247_v53 = vpop.f32.mrb[46].mxu1 }
 0x15a   : > { %v1245_v55 = vadd.f32 %v1244_v47, %v1084_v50  ;;  %5108 = vmatprep.subr.bf16.mxu0 %v5107_v48  ;;  %v1087_v56 = vadd.f32 %v4966_v49, %v5967_v30  ;;  %v1249_v6 = vpop.f32.mrb[47].mxu1 }
 0x15b   : > { %5110 = vmatpush3.bf16.msra.mxu0 %v5988_v25 }
 0x15c   : > { %v1248_v57 = vadd.f32 %v1247_v53, %v1087_v56  ;;  %v4967_v58 = vpop.f32.mrb[48].mxu0  ;;  %v1305_v60 = vmax.f32 %v1245_v55, 0.0 }
 0x15d   : > { %v4968_v59 = vpop.f32.mrb[49].mxu0 }
 0x15e   : > { %v1306_v62 = vmax.f32 %v1248_v57, 0.0  ;;  %v4969_v63 = vadd.f32 %v4968_v59, %v4967_v58  ;;  %v4970_v0 = vpop.f32.mrb[50].mxu0 }
 0x15f   : > { %v4971_v1 = vpop.f32.mrb[51].mxu0  ;;  %v1252_v3 = vpop.f32.mrb[48].mxu1 }
 0x160   : > { %v5111_v4 = vpack.c.bf16 %v1306_v62, %v1305_v60  ;;  %v4972_v5 = vadd.f32 %v4971_v1, %v4970_v0  ;;  %v1092_v7 = vadd.f32 %v4969_v63, %v5967_v30  ;;  %v1254_v8 = vpop.f32.mrb[49].mxu1 }
 0x161   : > { %v1255_v9 = vpop.f32.mrb[50].mxu1  ;;  %v1315_v8 = vld [vmem:[%s6904_s3] sm:$0xff] }
 0x162   : > { %v1253_v10 = vadd.f32 %v1252_v3, %v1092_v7  ;;  %5112 = vmatprep.subr.bf16.mxu0 %v5111_v4  ;;  %v1095_v11 = vadd.f32 %v4972_v5, %v5967_v30  ;;  %v1257_v25 = vpop.f32.mrb[51].mxu1 }
 0x163   : > { %5114 = vmatpush3.bf16.msra.mxu0 %v5992_v43  ;;  %v1324_v25 = vld [vmem:[%s6904_s3 + $0x48] sm:$0xff] }
 0x164   : > { %v1256_v12 = vadd.f32 %v1255_v9, %v1095_v11  ;;  %v4973_v13 = vpop.f32.mrb[52].mxu0  ;;  %v1307_v15 = vmax.f32 %v1253_v10, 0.0  ;;  %v1318_v9 = vld [vmem:[%s6904_s3 + $0x18] sm:$0xff]  ;;  %v1321_v11 = vld [vmem:[%s6904_s3 + $0x30] sm:$0xff] }
 0x165   : > { %v4974_v14 = vpop.f32.mrb[53].mxu0  ;;  %v1322_v10 = vld [vmem:[%s6904_s3 + $0x38] sm:$0xff] }
 0x166   : > { %v1308_v17 = vmax.f32 %v1256_v12, 0.0  ;;  %v4975_v18 = vadd.f32 %v4974_v14, %v4973_v13  ;;  %v4976_v19 = vpop.f32.mrb[54].mxu0  ;;  %v1323_v12 = vld [vmem:[%s6904_s3 + $0x40] sm:$0xff]  ;;  %v1326_v13 = vld [vmem:[%s6904_s3 + $0x58] sm:$0xff]  ;;  %v1325_v14 = vld [vmem:[%s6904_s3 + $0x50] sm:$0xff] }
 0x167   : > { %v4977_v20 = vpop.f32.mrb[55].mxu0  ;;  %v1260_v21 = vpop.f32.mrb[52].mxu1 }
 0x168   : > { %v5115_v22 = vpack.c.bf16 %v1308_v17, %v1307_v15  ;;  %v4978_v23 = vadd.f32 %v4977_v20, %v4976_v19  ;;  %v1100_v24 = vadd.f32 %v4975_v18, %v5967_v30  ;;  %v1262_v26 = vpop.f32.mrb[53].mxu1  ;;  %v1328_v15 = vld [vmem:[%s6904_s3 + $0x68] sm:$0xff]  ;;  %v1327_v17 = vld [vmem:[%s6904_s3 + $0x60] sm:$0xff] }
 0x169   : > { %v1263_v27 = vpop.f32.mrb[54].mxu1  ;;  %v5418_v18 = vld [vmem:[%s6905_s4 + $0x24] ss:$16 sps:$4 sm:$0xff]   ;;  %v5416_v19 = vld [vmem:[%s6905_s4 + $0x20] ss:$16 sps:$4 sm:$0xff]  }
 0x16a   : > { %v1261_v28 = vadd.f32 %v1260_v21, %v1100_v24  ;;  %5116 = vmatprep.subr.bf16.mxu0 %v5115_v22  ;;  %v1103_v29 = vadd.f32 %v4978_v23, %v5967_v30  ;;  %v1265_v43 = vpop.f32.mrb[55].mxu1  ;;  %1517 = vmatprep.subr.bf16.mxu1 %v5418_v18  ;;  %v5421_v20 = vld [vmem:[%s6905_s4 + $0xc] ss:$16 sps:$4 sm:$0xff]   ;;  %v1329_v22 = vld [vmem:[%s6904_s3 + $0x70] sm:$0xff]  ;;  %v5467_v18 = vld [vmem:[%s6905_s4 + $0x108] ss:$16 sps:$4 sm:$0xff]  }
 0x16b   : > { %5118 = vmatpush3.bf16.msra.mxu0 %v5996_v61  ;;  %1518 = vmatpush1.bf16.msra.mxu1 %v5416_v19  ;;  %v1330_v21 = vld [vmem:[%s6904_s3 + $0x78] sm:$0xff] }
 0x16c   : > { %v1264_v31 = vadd.f32 %v1263_v27, %v1103_v29  ;;  %v4979_v32 = vpop.f32.mrb[56].mxu0  ;;  %v1309_v34 = vmax.f32 %v1261_v28, 0.0  ;;  %1556 = vmatprep.subr.bf16.mxu1 %v5421_v20  ;;  %v5419_v27 = vld [vmem:[%s6905_s4 + $0x8] ss:$16 sps:$4 sm:$0xff]   ;;  %v5424_v29 = vld [vmem:[%s6905_s4 + $0x2c] ss:$16 sps:$4 sm:$0xff]  }
 0x16d   : > { %v4980_v33 = vpop.f32.mrb[57].mxu0  ;;  %v5472_v19 = vld [vmem:[%s6905_s4 + $0x12c] ss:$16 sps:$4 sm:$0xff]   ;;  %v5470_v20 = vld [vmem:[%s6905_s4 + $0x128] ss:$16 sps:$4 sm:$0xff]  }
 0x16e   : > { %v1310_v36 = vmax.f32 %v1264_v31, 0.0  ;;  %v4981_v37 = vadd.f32 %v4980_v33, %v4979_v32  ;;  %v4982_v52 = vpop.f32.mrb[58].mxu0  ;;  %v5422_v33 = vld [vmem:[%s6905_s4 + $0x28] ss:$16 sps:$4 sm:$0xff]  }
 0x16f   : > { %v4983_v38 = vpop.f32.mrb[59].mxu0  ;;  %v1268_v39 = vpop.f32.mrb[56].mxu1 }
 0x170   : > { %v5119_v40 = vpack.c.bf16 %v1310_v36, %v1309_v34  ;;  %v4984_v41 = vadd.f32 %v4983_v38, %v4982_v52  ;;  %v1108_v42 = vadd.f32 %v4981_v37, %v5967_v30  ;;  %v1270_v44 = vpop.f32.mrb[57].mxu1  ;;  %v5427_v34 = vld [vmem:[%s6905_s4 + $0x44] ss:$16 sps:$4 sm:$0xff]   ;;  %v5425_v38 = vld [vmem:[%s6905_s4 + $0x40] ss:$16 sps:$4 sm:$0xff]  }
 0x171   : > { %v1271_v45 = vpop.f32.mrb[58].mxu1  ;;  %v5428_v44 = vld [vmem:[%s6905_s4 + $0x60] ss:$16 sps:$4 sm:$0xff]  }
 0x172   : > { %v1269_v46 = vadd.f32 %v1268_v39, %v1108_v42  ;;  %5120 = vmatprep.subr.bf16.mxu0 %v5119_v40  ;;  %v1111_v47 = vadd.f32 %v4984_v41, %v5967_v30  ;;  %v1273_v61 = vpop.f32.mrb[59].mxu1  ;;  %v5430_v39 = vld [vmem:[%s6905_s4 + $0x64] ss:$16 sps:$4 sm:$0xff]  }
 0x173   : > { %5122 = vmatpush3.bf16.msra.mxu0 %v6000_v16 }
 0x174   : > { %v1272_v48 = vadd.f32 %v1271_v45, %v1111_v47  ;;  %v4985_v49 = vpop.f32.mrb[60].mxu0  ;;  %v1311_v51 = vmax.f32 %v1269_v46, 0.0  ;;  %v5433_v45 = vld [vmem:[%s6905_s4 + $0x4c] ss:$16 sps:$4 sm:$0xff]  }
 0x175   : > { %v4986_v50 = vpop.f32.mrb[61].mxu0 }
 0x176   : > { %v1312_v53 = vmax.f32 %v1272_v48, 0.0  ;;  %v4987_v55 = vadd.f32 %v4986_v50, %v4985_v49  ;;  %v4988_v56 = vpop.f32.mrb[62].mxu0  ;;  %v5431_v48 = vld [vmem:[%s6905_s4 + $0x48] ss:$16 sps:$4 sm:$0xff]   ;;  %v5436_v50 = vld [vmem:[%s6905_s4 + $0x6c] ss:$16 sps:$4 sm:$0xff]  }
 0x177   : > { %v4989_v6 = vpop.f32.mrb[63].mxu0  ;;  %v1276_v57 = vpop.f32.mrb[60].mxu1 }
 0x178   : > { %v5123_v58 = vpack.c.bf16 %v1312_v53, %v1311_v51  ;;  %v4990_v59 = vadd.f32 %v4989_v6, %v4988_v56  ;;  %v1116_v60 = vadd.f32 %v4987_v55, %v5967_v30  ;;  %v1278_v62 = vpop.f32.mrb[61].mxu1  ;;  %v5434_v51 = vld [vmem:[%s6905_s4 + $0x68] ss:$16 sps:$4 sm:$0xff]   ;;  %v5439_v53 = vld [vmem:[%s6905_s4 + $0x84] ss:$16 sps:$4 sm:$0xff]  }
 0x179   : > { %v1279_v63 = vpop.f32.mrb[62].mxu1  ;;  %v5437_v55 = vld [vmem:[%s6905_s4 + $0x80] ss:$16 sps:$4 sm:$0xff]   ;;  %v5442_v56 = vld [vmem:[%s6905_s4 + $0xa4] ss:$16 sps:$4 sm:$0xff]  }
 0x17a   : > { %v1277_v0 = vadd.f32 %v1276_v57, %v1116_v60  ;;  %5124 = vmatprep.subr.bf16.mxu0 %v5123_v58  ;;  %v1119_v1 = vadd.f32 %v4990_v59, %v5967_v30  ;;  %v1281_v16 = vpop.f32.mrb[63].mxu1  ;;  %v1317_v30 = vld [vmem:[%s6904_s3 + $0x10] sm:$0xff]  ;;  %v5445_v58 = vld [vmem:[%s6905_s4 + $0x8c] ss:$16 sps:$4 sm:$0xff]  }
 0x17b   : > { %5126 = vmatpush3.bf16.msra.mxu0 %v6004_v35  ;;  %v1320_v35 = vld [vmem:[%s6904_s3 + $0x28] sm:$0xff]  ;;  %v5440_v6 = vld [vmem:[%s6905_s4 + $0xa0] ss:$16 sps:$4 sm:$0xff]   ;;  %v5451_v16 = vld [vmem:[%s6905_s4 + $0xc4] ss:$16 sps:$4 sm:$0xff]  }
 0x17c   : > { %v1280_v3 = vadd.f32 %v1279_v63, %v1119_v1  ;;  %v1313_v4 = vmax.f32 %v1277_v0, 0.0  ;;  %v5443_v63 = vld [vmem:[%s6905_s4 + $0x88] ss:$16 sps:$4 sm:$0xff]   ;;  %v5448_v0 = vld [vmem:[%s6905_s4 + $0xac] ss:$16 sps:$4 sm:$0xff]  }
 0x17d   : > { %v5446_v1 = vld [vmem:[%s6905_s4 + $0xa8] ss:$16 sps:$4 sm:$0xff]  }
 0x17e   : > { %v1314_v5 = vmax.f32 %v1280_v3, 0.0  ;;  %v5449_v3 = vld [vmem:[%s6905_s4 + $0xc0] ss:$16 sps:$4 sm:$0xff]  }
 0x180   : > { %v5127_v7 = vpack.c.bf16 %v1314_v5, %v1313_v4  ;;  %v5454_v4 = vld [vmem:[%s6905_s4 + $0xe4] ss:$16 sps:$4 sm:$0xff]   ;;  %v5452_v5 = vld [vmem:[%s6905_s4 + $0xe0] ss:$16 sps:$4 sm:$0xff]  }
 0x182   : > { %5128 = vmatprep.subr.bf16.mxu0 %v5127_v7  ;;  %v5457_v7 = vld [vmem:[%s6905_s4 + $0xcc] ss:$16 sps:$4 sm:$0xff]  }
 0x183   : > { %5130 = vmatpush3.bf16.msra.mxu0 %v6008_v54  ;;  %v1319_v54 = vld [vmem:[%s6904_s3 + $0x20] sm:$0xff] }
 0x186   : > { %1396 = vmatmul.mubr.f32.vlgmr.msra.gmra.mrb[64].mxu0 %v1315_v8  ;;  %v5455_v8 = vld [vmem:[%s6905_s4 + $0xc8] ss:$16 sps:$4 sm:$0xff]  }
 0x187   : > { %1400 = vmatprep.mubr.f32.mxu0 %v1318_v9 }
 0x18a   : > { %1401 = vmatmul.mubr.f32.gmra.mrb[66].mxu0 %v1317_v30  ;;  %v5460_v30 = vld [vmem:[%s6905_s4 + $0xec] ss:$16 sps:$4 sm:$0xff]  }
 0x18b   : > { %1405 = vmatprep.mubr.f32.mxu0 %v1320_v35  ;;  %v5458_v35 = vld [vmem:[%s6905_s4 + $0xe8] ss:$16 sps:$4 sm:$0xff]  }
 0x18e   : > { %1406 = vmatmul.mubr.f32.gmra.mrb[68].mxu0 %v1319_v54  ;;  %v5463_v54 = vld [vmem:[%s6905_s4 + $0x104] ss:$16 sps:$4 sm:$0xff]  }
 0x18f   : > { %1410 = vmatprep.mubr.f32.mxu0 %v1322_v10  ;;  %v5461_v10 = vld [vmem:[%s6905_s4 + $0x100] ss:$16 sps:$4 sm:$0xff]  }
 0x192   : > { %1411 = vmatmul.mubr.f32.gmra.mrb[70].mxu0 %v1321_v11  ;;  %v5466_v11 = vld [vmem:[%s6905_s4 + $0x124] ss:$16 sps:$4 sm:$0xff]  }
 0x193   : > { %1415 = vmatprep.mubr.f32.mxu0 %v1324_v25  ;;  %v5464_v25 = vld [vmem:[%s6905_s4 + $0x120] ss:$16 sps:$4 sm:$0xff]  }
 0x196   : > { %1416 = vmatmul.mubr.f32.gmra.mrb[72].mxu0 %v1323_v12 }
 0x197   : > { %1420 = vmatprep.mubr.f32.mxu0 %v1326_v13  ;;  %v5469_v13 = vld [vmem:[%s6905_s4 + $0x10c] ss:$16 sps:$4 sm:$0xff]  }
 0x19a   : > { %1421 = vmatmul.mubr.f32.gmra.mrb[74].mxu0 %v1325_v14 }
 0x19b   : > { %1425 = vmatprep.mubr.f32.mxu0 %v1328_v15 }
 0x19e   : > { %1426 = vmatmul.mubr.f32.gmra.mrb[76].mxu0 %v1327_v17 }
 0x19f   : > { %1430 = vmatprep.mubr.f32.mxu0 %v1330_v21  ;;  %v5475_v21 = vld [vmem:[%s6905_s4 + $0x144] ss:$16 sps:$4 sm:$0xff]  }
 0x1a2   : > { %1431 = vmatmul.mubr.f32.gmra.mrb[78].mxu0 %v1329_v22  ;;  %v5473_v22 = vld [vmem:[%s6905_s4 + $0x140] ss:$16 sps:$4 sm:$0xff]  }
 0x1a3   : > { %3943 = vmatprep.mubr.bf16.mxu0 %v5725_v2 }
 0x259   : > { %v5023_v23 = vpop.f32.mrb[64].mxu0 }
 0x25a   : > { %v5024_v24 = vpop.f32.mrb[65].mxu0 }
 0x25b   : > { %v5025_v26 = vadd.f32 %v5024_v24, %v5023_v23  ;;  %v5478_v23 = vld [vmem:[%s6905_s4 + $0x164] ss:$16 sps:$4 sm:$0xff]   ;;  %v5476_v24 = vld [vmem:[%s6905_s4 + $0x160] ss:$16 sps:$4 sm:$0xff]  }
 0x25d   : > { %v1462_v28 = vpack.c.bf16 %v5025_v26, %v5025_v26  ;;  %v5026_v43 = vpop.f32.mrb[66].mxu0  ;;  %v5481_v26 = vld [vmem:[%s6905_s4 + $0x14c] ss:$16 sps:$4 sm:$0xff]  }
 0x25e   : > { %v5027_v31 = vpop.f32.mrb[67].mxu0 }
 0x25f   : > { %4560 = vmatmul.mubr.msk.bf16.vlgmr.msra.gmra.mrb[64].mxu1 %vm1511_vm1, %v1462_v28  ;;  %v5028_v32 = vadd.f32 %v5027_v31, %v5026_v43  ;;  %v1611_v49 = vrot.slane %v1462_v28, 2  ;;  %v5482_v43 = vld [vmem:[%s6905_s4 + $0x168] ss:$16 sps:$4 sm:$0xff]   ;;  %v5487_v31 = vld [vmem:[%s6905_s4 + $0x184] ss:$16 sps:$4 sm:$0xff]  }
 0x260   : > { %1557 = vmatpush1.bf16.msra.mxu1 %v5419_v27  ;;  %1588 = vmatprep.mubr.bf16.mxu1 %v5725_v2  ;;  %v5479_v27 = vld [vmem:[%s6905_s4 + $0x148] ss:$16 sps:$4 sm:$0xff]  }
 0x261   : > { %1558 = vmatprep.subr.bf16.mxu1 %v5424_v29  ;;  %v5029_v36 = vpop.f32.mrb[68].mxu0  ;;  %v1741_v62 = vpack.c.bf16 %v5028_v32, %v5028_v32  ;;  %v5484_v29 = vld [vmem:[%s6905_s4 + $0x16c] ss:$16 sps:$4 sm:$0xff]   ;;  %v5485_v32 = vld [vmem:[%s6905_s4 + $0x180] ss:$16 sps:$4 sm:$0xff]  }
 0x262   : > { %v5030_v37 = vpop.f32.mrb[69].mxu0 }
 0x263   : > { %v6103_v52 = vadd.f32 %v5030_v37, %v5029_v36  ;;  %v1890_v9 = vrot.slane %v1741_v62, 2  ;;  %v5493_v37 = vld [vmem:[%s6905_s4 + $0x18c] ss:$16 sps:$4 sm:$0xff]  }
 0x264   : > { %1559 = vmatpush1.bf16.msra.mxu1 %v5422_v33  ;;  %v5490_v33 = vld [vmem:[%s6905_s4 + $0x1a4] ss:$16 sps:$4 sm:$0xff]  }
 0x265   : > { %1655 = vmatprep.subr.bf16.mxu1 %v5427_v34  ;;  %v5032_v40 = vpop.f32.mrb[70].mxu0  ;;  %v2020_v17 = vpack.c.bf16 %v6103_v52, %v6103_v52  ;;  %v5488_v34 = vld [vmem:[%s6905_s4 + $0x1a0] ss:$16 sps:$4 sm:$0xff]  }
 0x266   : > { %v5033_v41 = vpop.f32.mrb[71].mxu0 }
 0x267   : > { %4561 = vmatmul.mubr.msk.bf16.vlgmr.msra.gmra.mrb[68].mxu1 %vm1511_vm1, %v1462_v28  ;;  %v6112_v42 = vadd.f32 %v5033_v41, %v5032_v40  ;;  %v2169_v28 = vrot.slane %v2020_v17, 2  ;;  %v5491_v40 = vld [vmem:[%s6905_s4 + $0x188] ss:$16 sps:$4 sm:$0xff]   ;;  %v5496_v41 = vld [vmem:[%s6905_s4 + $0x1ac] ss:$16 sps:$4 sm:$0xff]  }
 0x268   : > { %1656 = vmatpush1.bf16.msra.mxu1 %v5425_v38  ;;  %1687 = vmatprep.mubr.bf16.mxu1 %v5725_v2 }
 0x269   : > { %1657 = vmatprep.subr.bf16.mxu1 %v5430_v39  ;;  %v5035_v46 = vpop.f32.mrb[72].mxu0  ;;  %v2299_v39 = vpack.c.bf16 %v6112_v42, %v6112_v42  ;;  %v5499_v42 = vld [vmem:[%s6905_s4 + $0x1c4] ss:$16 sps:$4 sm:$0xff]  }
 0x26a   : > { %v5036_v47 = vpop.f32.mrb[73].mxu0 }
 0x26b   : > { %v6121_v61 = vadd.f32 %v5036_v47, %v5035_v46  ;;  %v5502_v46 = vld [vmem:[%s6905_s4 + $0x1e4] ss:$16 sps:$4 sm:$0xff]   ;;  %v5500_v47 = vld [vmem:[%s6905_s4 + $0x1e0] ss:$16 sps:$4 sm:$0xff]  }
 0x26c   : > { %1658 = vmatpush1.bf16.msra.mxu1 %v5428_v44  ;;  %v5494_v44 = vld [vmem:[%s6905_s4 + $0x1a8] ss:$16 sps:$4 sm:$0xff]  }
 0x26d   : > { %1696 = vmatprep.subr.bf16.mxu1 %v5433_v45  ;;  %v5038_v57 = vpop.f32.mrb[74].mxu0  ;;  %v5497_v45 = vld [vmem:[%s6905_s4 + $0x1c0] ss:$16 sps:$4 sm:$0xff]  }
 0x26e   : > { %v5039_v59 = vpop.f32.mrb[75].mxu0 }
 0x26f   : > { %4578 = vmatmul.mubr.msk.bf16.vlgmr.msra.gmra.mrb[64].mxu1 %vm1511_vm1, %v1611_v49  ;;  %v6151_v60 = vadd.f32 %v5039_v59, %v5038_v57  ;;  %v5512_v57 = vld [vmem:[%s6905_s4 + $0x220] ss:$16 sps:$4 sm:$0xff]   ;;  %v2578_v59 = vpack.c.bf16 %v6121_v61, %v6121_v61  ;;  %v5523_v61 = vld [vmem:[%s6905_s4 + $0x244] ss:$16 sps:$4 sm:$0xff]  }
 0x270   : > { %1697 = vmatpush1.bf16.msra.mxu1 %v5431_v48  ;;  %1728 = vmatprep.mubr.bf16.mxu1 %v5725_v2  ;;  %v5505_v48 = vld [vmem:[%s6905_s4 + $0x1cc] ss:$16 sps:$4 sm:$0xff]  }
 0x271   : > { %1698 = vmatprep.subr.bf16.mxu1 %v5436_v50  ;;  %v5041_v12 = vpop.f32.mrb[76].mxu0  ;;  %v2448_v50 = vrot.slane %v2299_v39, 2 }
 0x272   : > { %v5042_v14 = vpop.f32.mrb[77].mxu0 }
 0x273   : > { %v6209_v15 = vadd.f32 %v5042_v14, %v5041_v12  ;;  %v5539_v12 = vld [vmem:[%s6905_s4 + $0x288] ss:$16 sps:$4 sm:$0xff]  }
 0x274   : > { %1699 = vmatpush1.bf16.msra.mxu1 %v5434_v51  ;;  %v5508_v51 = vld [vmem:[%s6905_s4 + $0x1ec] ss:$16 sps:$4 sm:$0xff]   ;;  %v5542_v14 = vld [vmem:[%s6905_s4 + $0x2a8] ss:$16 sps:$4 sm:$0xff]  }
 0x275   : > { %1794 = vmatprep.subr.bf16.mxu1 %v5439_v53  ;;  %v5044_v36 = vpop.f32.mrb[78].mxu0  ;;  %v5506_v53 = vld [vmem:[%s6905_s4 + $0x1e8] ss:$16 sps:$4 sm:$0xff]  }
 0x276   : > { %v5045_v52 = vpop.f32.mrb[79].mxu0 }
 0x277   : > { %4579 = vmatmul.mubr.msk.bf16.vlgmr.msra.gmra.mrb[68].mxu1 %vm1511_vm1, %v1611_v49  ;;  %v6269_v38 = vadd.f32 %v5045_v52, %v5044_v36  ;;  %v5503_v49 = vld [vmem:[%s6905_s4 + $0x1c8] ss:$16 sps:$4 sm:$0xff]   ;;  %v5569_v36 = vld [vmem:[%s6905_s4 + $0x340] ss:$16 sps:$4 sm:$0xff]  }
 0x278   : > { %1795 = vmatpush1.bf16.msra.mxu1 %v5437_v55  ;;  %1826 = vmatprep.mubr.bf16.mxu1 %v5725_v2  ;;  %v5511_v55 = vld [vmem:[%s6905_s4 + $0x204] ss:$16 sps:$4 sm:$0xff]   ;;  %v5572_v52 = vld [vmem:[%s6905_s4 + $0x360] ss:$16 sps:$4 sm:$0xff]  }
 0x279   : > { %1796 = vmatprep.subr.bf16.mxu1 %v5442_v56  ;;  %v5509_v56 = vld [vmem:[%s6905_s4 + $0x200] ss:$16 sps:$4 sm:$0xff]  }
 0x27c   : > { %1797 = vmatpush1.bf16.msra.mxu1 %v5440_v6  ;;  %v5514_v6 = vld [vmem:[%s6905_s4 + $0x224] ss:$16 sps:$4 sm:$0xff]  }
 0x27d   : > { %1835 = vmatprep.subr.bf16.mxu1 %v5445_v58  ;;  %v5517_v58 = vld [vmem:[%s6905_s4 + $0x20c] ss:$16 sps:$4 sm:$0xff]  }
 0x27f   : > { %4596 = vmatmul.mubr.msk.bf16.vlgmr.msra.gmra.mrb[64].mxu1 %vm1511_vm1, %v1741_v62 }
 0x280   : > { %1836 = vmatpush1.bf16.msra.mxu1 %v5443_v63  ;;  %1867 = vmatprep.mubr.bf16.mxu1 %v5725_v2  ;;  %v5520_v63 = vld [vmem:[%s6905_s4 + $0x22c] ss:$16 sps:$4 sm:$0xff]  }
 0x281   : > { %1837 = vmatprep.subr.bf16.mxu1 %v5448_v0  ;;  %v5518_v0 = vld [vmem:[%s6905_s4 + $0x228] ss:$16 sps:$4 sm:$0xff]  }
 0x284   : > { %1838 = vmatpush1.bf16.msra.mxu1 %v5446_v1  ;;  %v5521_v1 = vld [vmem:[%s6905_s4 + $0x240] ss:$16 sps:$4 sm:$0xff]  }
 0x285   : > { %1934 = vmatprep.subr.bf16.mxu1 %v5451_v16  ;;  %v5526_v16 = vld [vmem:[%s6905_s4 + $0x264] ss:$16 sps:$4 sm:$0xff]  }
 0x287   : > { %4597 = vmatmul.mubr.msk.bf16.vlgmr.msra.gmra.mrb[68].mxu1 %vm1511_vm1, %v1741_v62  ;;  %v5515_v62 = vld [vmem:[%s6905_s4 + $0x208] ss:$16 sps:$4 sm:$0xff]  }
 0x288   : > { %1935 = vmatpush1.bf16.msra.mxu1 %v5449_v3  ;;  %1966 = vmatprep.mubr.bf16.mxu1 %v5725_v2  ;;  %v5524_v3 = vld [vmem:[%s6905_s4 + $0x260] ss:$16 sps:$4 sm:$0xff]  }
 0x289   : > { %1936 = vmatprep.subr.bf16.mxu1 %v5454_v4  ;;  %v5529_v4 = vld [vmem:[%s6905_s4 + $0x24c] ss:$16 sps:$4 sm:$0xff]  }
 0x28c   : > { %1937 = vmatpush1.bf16.msra.mxu1 %v5452_v5  ;;  %v5527_v5 = vld [vmem:[%s6905_s4 + $0x248] ss:$16 sps:$4 sm:$0xff]  }
 0x28d   : > { %1975 = vmatprep.subr.bf16.mxu1 %v5457_v7  ;;  %v2727_v7 = vrot.slane %v2578_v59, 2 }
 0x28f   : > { %4614 = vmatmul.mubr.msk.bf16.vlgmr.msra.gmra.mrb[64].mxu1 %vm1511_vm1, %v1890_v9 }
 0x290   : > { %1976 = vmatpush1.bf16.msra.mxu1 %v5455_v8  ;;  %2007 = vmatprep.mubr.bf16.mxu1 %v5725_v2  ;;  %v5532_v8 = vld [vmem:[%s6905_s4 + $0x26c] ss:$16 sps:$4 sm:$0xff]  }
 0x291   : > { %1977 = vmatprep.subr.bf16.mxu1 %v5460_v30  ;;  %v5535_v30 = vld [vmem:[%s6905_s4 + $0x284] ss:$16 sps:$4 sm:$0xff]  }
 0x294   : > { %1978 = vmatpush1.bf16.msra.mxu1 %v5458_v35  ;;  %v5533_v35 = vld [vmem:[%s6905_s4 + $0x280] ss:$16 sps:$4 sm:$0xff]  }
 0x295   : > { %2073 = vmatprep.subr.bf16.mxu1 %v5463_v54  ;;  %v5538_v54 = vld [vmem:[%s6905_s4 + $0x2a4] ss:$16 sps:$4 sm:$0xff]  }
 0x297   : > { %4615 = vmatmul.mubr.msk.bf16.vlgmr.msra.gmra.mrb[68].mxu1 %vm1511_vm1, %v1890_v9  ;;  %v5530_v9 = vld [vmem:[%s6905_s4 + $0x268] ss:$16 sps:$4 sm:$0xff]  }
 0x298   : > { %2074 = vmatpush1.bf16.msra.mxu1 %v5461_v10  ;;  %2105 = vmatprep.mubr.bf16.mxu1 %v5725_v2  ;;  %v5536_v10 = vld [vmem:[%s6905_s4 + $0x2a0] ss:$16 sps:$4 sm:$0xff]  }
 0x299   : > { %2075 = vmatprep.subr.bf16.mxu1 %v5466_v11  ;;  %v5541_v11 = vld [vmem:[%s6905_s4 + $0x28c] ss:$16 sps:$4 sm:$0xff]  }
 0x29c   : > { %2076 = vmatpush1.bf16.msra.mxu1 %v5464_v25  ;;  %v2857_v25 = vpack.c.bf16 %v6151_v60, %v6151_v60  ;;  %v5547_v60 = vld [vmem:[%s6905_s4 + $0x2c4] ss:$16 sps:$4 sm:$0xff]  }
 0x29d   : > { %2114 = vmatprep.subr.bf16.mxu1 %v5469_v13  ;;  %v5544_v13 = vld [vmem:[%s6905_s4 + $0x2ac] ss:$16 sps:$4 sm:$0xff]  }
 0x29f   : > { %4632 = vmatmul.mubr.msk.bf16.vlgmr.msra.gmra.mrb[64].mxu1 %vm1511_vm1, %v2020_v17 }
 0x2a0   : > { %2115 = vmatpush1.bf16.msra.mxu1 %v5467_v18  ;;  %2146 = vmatprep.mubr.bf16.mxu1 %v5725_v2  ;;  %v5550_v18 = vld [vmem:[%s6905_s4 + $0x2e4] ss:$16 sps:$4 sm:$0xff]  }
 0x2a1   : > { %2116 = vmatprep.subr.bf16.mxu1 %v5472_v19  ;;  %v5548_v19 = vld [vmem:[%s6905_s4 + $0x2e0] ss:$16 sps:$4 sm:$0xff]  }
 0x2a4   : > { %2117 = vmatpush1.bf16.msra.mxu1 %v5470_v20  ;;  %v5553_v20 = vld [vmem:[%s6905_s4 + $0x2cc] ss:$16 sps:$4 sm:$0xff]  }
 0x2a5   : > { %2213 = vmatprep.subr.bf16.mxu1 %v5475_v21  ;;  %v5551_v21 = vld [vmem:[%s6905_s4 + $0x2c8] ss:$16 sps:$4 sm:$0xff]  }
 0x2a7   : > { %4633 = vmatmul.mubr.msk.bf16.vlgmr.msra.gmra.mrb[68].mxu1 %vm1511_vm1, %v2020_v17  ;;  %v5545_v17 = vld [vmem:[%s6905_s4 + $0x2c0] ss:$16 sps:$4 sm:$0xff]  }
 0x2a8   : > { %2214 = vmatpush1.bf16.msra.mxu1 %v5473_v22  ;;  %2245 = vmatprep.mubr.bf16.mxu1 %v5725_v2  ;;  %v3006_v22 = vrot.slane %v2857_v25, 2 }
 0x2a9   : > { %2215 = vmatprep.subr.bf16.mxu1 %v5478_v23  ;;  %v5556_v23 = vld [vmem:[%s6905_s4 + $0x2ec] ss:$16 sps:$4 sm:$0xff]  }
 0x2ac   : > { %2216 = vmatpush1.bf16.msra.mxu1 %v5476_v24  ;;  %v5554_v24 = vld [vmem:[%s6905_s4 + $0x2e8] ss:$16 sps:$4 sm:$0xff]  }
 0x2ad   : > { %2254 = vmatprep.subr.bf16.mxu1 %v5481_v26  ;;  %v5559_v26 = vld [vmem:[%s6905_s4 + $0x304] ss:$16 sps:$4 sm:$0xff]  }
 0x2af   : > { %4650 = vmatmul.mubr.msk.bf16.vlgmr.msra.gmra.mrb[64].mxu1 %vm1511_vm1, %v2169_v28 }
 0x2b0   : > { %2255 = vmatpush1.bf16.msra.mxu1 %v5479_v27  ;;  %2286 = vmatprep.mubr.bf16.mxu1 %v5725_v2  ;;  %v5557_v27 = vld [vmem:[%s6905_s4 + $0x300] ss:$16 sps:$4 sm:$0xff]  }
 0x2b1   : > { %2256 = vmatprep.subr.bf16.mxu1 %v5484_v29  ;;  %v5560_v29 = vld [vmem:[%s6905_s4 + $0x320] ss:$16 sps:$4 sm:$0xff]  }
 0x2b4   : > { %2257 = vmatpush1.bf16.msra.mxu1 %v5482_v43  ;;  %v5565_v43 = vld [vmem:[%s6905_s4 + $0x30c] ss:$16 sps:$4 sm:$0xff]  }
 0x2b5   : > { %2352 = vmatprep.subr.bf16.mxu1 %v5487_v31  ;;  %v3136_v31 = vpack.c.bf16 %v6209_v15, %v6209_v15  ;;  %v5571_v15 = vld [vmem:[%s6905_s4 + $0x344] ss:$16 sps:$4 sm:$0xff]  }
 0x2b7   : > { %4651 = vmatmul.mubr.msk.bf16.vlgmr.msra.gmra.mrb[68].mxu1 %vm1511_vm1, %v2169_v28  ;;  %v5562_v28 = vld [vmem:[%s6905_s4 + $0x324] ss:$16 sps:$4 sm:$0xff]  }
 0x2b8   : > { %2353 = vmatpush1.bf16.msra.mxu1 %v5485_v32  ;;  %2384 = vmatprep.mubr.bf16.mxu1 %v5725_v2  ;;  %v5563_v32 = vld [vmem:[%s6905_s4 + $0x308] ss:$16 sps:$4 sm:$0xff]  }
 0x2b9   : > { %2354 = vmatprep.subr.bf16.mxu1 %v5490_v33  ;;  %v5568_v33 = vld [vmem:[%s6905_s4 + $0x32c] ss:$16 sps:$4 sm:$0xff]  }
 0x2bc   : > { %2355 = vmatpush1.bf16.msra.mxu1 %v5488_v34  ;;  %v5566_v34 = vld [vmem:[%s6905_s4 + $0x328] ss:$16 sps:$4 sm:$0xff]  }
 0x2bd   : > { %2393 = vmatprep.subr.bf16.mxu1 %v5493_v37  ;;  %v5574_v37 = vld [vmem:[%s6905_s4 + $0x364] ss:$16 sps:$4 sm:$0xff]  }
 0x2bf   : > { %4668 = vmatmul.mubr.msk.bf16.vlgmr.msra.gmra.mrb[64].mxu1 %vm1511_vm1, %v2299_v39 }
 0x2c0   : > { %2394 = vmatpush1.bf16.msra.mxu1 %v5491_v40  ;;  %2425 = vmatprep.mubr.bf16.mxu1 %v5725_v2  ;;  %v5575_v40 = vld [vmem:[%s6905_s4 + $0x348] ss:$16 sps:$4 sm:$0xff]  }
 0x2c1   : > { %2395 = vmatprep.subr.bf16.mxu1 %v5496_v41  ;;  %v3285_v41 = vrot.slane %v3136_v31, 2 }
 0x2c4   : > { %2396 = vmatpush1.bf16.msra.mxu1 %v5494_v44  ;;  %v5580_v44 = vld [vmem:[%s6905_s4 + $0x36c] ss:$16 sps:$4 sm:$0xff]  }
 0x2c5   : > { %2492 = vmatprep.subr.bf16.mxu1 %v5499_v42  ;;  %v5578_v42 = vld [vmem:[%s6905_s4 + $0x368] ss:$16 sps:$4 sm:$0xff]  }
 0x2c7   : > { %4669 = vmatmul.mubr.msk.bf16.vlgmr.msra.gmra.mrb[68].mxu1 %vm1511_vm1, %v2299_v39  ;;  %v5577_v39 = vld [vmem:[%s6905_s4 + $0x34c] ss:$16 sps:$4 sm:$0xff]  }
 0x2c8   : > { %2493 = vmatpush1.bf16.msra.mxu1 %v5497_v45  ;;  %2524 = vmatprep.mubr.bf16.mxu1 %v5725_v2  ;;  %v5583_v45 = vld [vmem:[%s6905_s4 + $0x384] ss:$16 sps:$4 sm:$0xff]  }
 0x2c9   : > { %2494 = vmatprep.subr.bf16.mxu1 %v5502_v46  ;;  %v5581_v46 = vld [vmem:[%s6905_s4 + $0x380] ss:$16 sps:$4 sm:$0xff]  }
 0x2cc   : > { %2495 = vmatpush1.bf16.msra.mxu1 %v5500_v47  ;;  %v5586_v47 = vld [vmem:[%s6905_s4 + $0x3a4] ss:$16 sps:$4 sm:$0xff]  }
 0x2cd   : > { %2533 = vmatprep.subr.bf16.mxu1 %v5505_v48  ;;  %v5584_v48 = vld [vmem:[%s6905_s4 + $0x3a0] ss:$16 sps:$4 sm:$0xff]  }
 0x2cf   : > { %4686 = vmatmul.mubr.msk.bf16.vlgmr.msra.gmra.mrb[64].mxu1 %vm1511_vm1, %v2448_v50 }
 0x2d0   : > { %2534 = vmatpush1.bf16.msra.mxu1 %v5503_v49  ;;  %2565 = vmatprep.mubr.bf16.mxu1 %v5725_v2  ;;  %v5589_v49 = vld [vmem:[%s6905_s4 + $0x38c] ss:$16 sps:$4 sm:$0xff]  }
 0x2d1   : > { %2535 = vmatprep.subr.bf16.mxu1 %v5508_v51  ;;  %v5587_v51 = vld [vmem:[%s6905_s4 + $0x388] ss:$16 sps:$4 sm:$0xff]  }
 0x2d4   : > { %2536 = vmatpush1.bf16.msra.mxu1 %v5506_v53  ;;  %v5592_v53 = vld [vmem:[%s6905_s4 + $0x3ac] ss:$16 sps:$4 sm:$0xff]  }
 0x2d5   : > { %2631 = vmatprep.subr.bf16.mxu1 %v5511_v55  ;;  %v5590_v55 = vld [vmem:[%s6905_s4 + $0x3a8] ss:$16 sps:$4 sm:$0xff]  }
 0x2d7   : > { %4687 = vmatmul.mubr.msk.bf16.vlgmr.msra.gmra.mrb[68].mxu1 %vm1511_vm1, %v2448_v50  ;;  %v3415_v50 = vpack.c.bf16 %v6269_v38, %v6269_v38  ;;  %v5595_v38 = vld [vmem:[%s6905_s4 + $0x3c4] ss:$16 sps:$4 sm:$0xff]  }
 0x2d8   : > { %2632 = vmatpush1.bf16.msra.mxu1 %v5509_v56  ;;  %2663 = vmatprep.mubr.bf16.mxu1 %v5725_v2  ;;  %v5593_v56 = vld [vmem:[%s6905_s4 + $0x3c0] ss:$16 sps:$4 sm:$0xff]  }
 0x2d9   : > { %2633 = vmatprep.subr.bf16.mxu1 %v5514_v6  ;;  %v5598_v6 = vld [vmem:[%s6905_s4 + $0x3e4] ss:$16 sps:$4 sm:$0xff]  }
 0x2dc   : > { %2634 = vmatpush1.bf16.msra.mxu1 %v5512_v57  ;;  %v5596_v57 = vld [vmem:[%s6905_s4 + $0x3e0] ss:$16 sps:$4 sm:$0xff]  }
 0x2dd   : > { %2672 = vmatprep.subr.bf16.mxu1 %v5517_v58  ;;  %v5601_v58 = vld [vmem:[%s6905_s4 + $0x3cc] ss:$16 sps:$4 sm:$0xff]  }
 0x2df   : > { %4704 = vmatmul.mubr.msk.bf16.vlgmr.msra.gmra.mrb[64].mxu1 %vm1511_vm1, %v2578_v59 }
 0x2e0   : > { %2673 = vmatpush1.bf16.msra.mxu1 %v5515_v62  ;;  %2704 = vmatprep.mubr.bf16.mxu1 %v5725_v2  ;;  %v3564_v62 = vrot.slane %v3415_v50, 2 }
 0x2e1   : > { %2674 = vmatprep.subr.bf16.mxu1 %v5520_v63  ;;  %v5604_v63 = vld [vmem:[%s6905_s4 + $0x3ec] ss:$16 sps:$4 sm:$0xff]  }
 0x2e4   : > { %2675 = vmatpush1.bf16.msra.mxu1 %v5518_v0  ;;  %v5602_v0 = vld [vmem:[%s6905_s4 + $0x3e8] ss:$16 sps:$4 sm:$0xff]  }
 0x2e5   : > { %2771 = vmatprep.subr.bf16.mxu1 %v5523_v61  ;;  %v6548_v61 = vld [vmem:[%s6907_s6 + $0x4] ss:$16 sps:$4 sm:$0xff]  }
 0x2e6   : > { %3911 = vmatprep.subr.bf16.mxu0 %v6548_v61 }
 0x2e7   : > { %4705 = vmatmul.mubr.msk.bf16.vlgmr.msra.gmra.mrb[68].mxu1 %vm1511_vm1, %v2578_v59  ;;  %v5599_v59 = vld [vmem:[%s6905_s4 + $0x3c8] ss:$16 sps:$4 sm:$0xff]  }
 0x2e8   : > { %2772 = vmatpush1.bf16.msra.mxu1 %v5521_v1  ;;  %2803 = vmatprep.mubr.bf16.mxu1 %v5725_v2  ;;  %v6553_v1 = vld [vmem:[%s6907_s6] ss:$16 sps:$4 sm:$0xff]  }
 0x2e9   : > { %2773 = vmatprep.subr.bf16.mxu1 %v5526_v16  ;;  %3912 = vmatpush1.bf16.msra.mxu0 %v6553_v1  ;;  %v6560_v16 = vld [vmem:[%s6907_s6 + $0x24] ss:$16 sps:$4 sm:$0xff]  }
 0x2ea   : > { %3913 = vmatprep.subr.bf16.mxu0 %v6560_v16 }
 0x2ec   : > { %2774 = vmatpush1.bf16.msra.mxu1 %v5524_v3  ;;  %v6565_v3 = vld [vmem:[%s6907_s6 + $0x20] ss:$16 sps:$4 sm:$0xff]  }
 0x2ed   : > { %2812 = vmatprep.subr.bf16.mxu1 %v5529_v4  ;;  %3914 = vmatpush1.bf16.msra.mxu0 %v6565_v3  ;;  %v6572_v4 = vld [vmem:[%s6907_s6 + $0x44] ss:$16 sps:$4 sm:$0xff]  }
 0x2ee   : > { %3915 = vmatprep.subr.bf16.mxu0 %v6572_v4 }
 0x2ef   : > { %4722 = vmatmul.mubr.msk.bf16.vlgmr.msra.gmra.mrb[64].mxu1 %vm1511_vm1, %v2727_v7 }
 0x2f0   : > { %2813 = vmatpush1.bf16.msra.mxu1 %v5527_v5  ;;  %2844 = vmatprep.mubr.bf16.mxu1 %v5725_v2  ;;  %v6577_v5 = vld [vmem:[%s6907_s6 + $0x40] ss:$16 sps:$4 sm:$0xff]  }
 0x2f1   : > { %2814 = vmatprep.subr.bf16.mxu1 %v5532_v8  ;;  %3916 = vmatpush1.bf16.msra.mxu0 %v6577_v5  ;;  %v6589_v8 = vld [vmem:[%s6907_s6 + $0x60] ss:$16 sps:$4 sm:$0xff]  }
 0x2f4   : > { %2815 = vmatpush1.bf16.msra.mxu1 %v5530_v9  ;;  %v6596_v9 = vld [vmem:[%s6907_s6 + $0x84] ss:$16 sps:$4 sm:$0xff]  }
 0x2f5   : > { %2910 = vmatprep.subr.bf16.mxu1 %v5535_v30  ;;  %v6601_v30 = vld [vmem:[%s6907_s6 + $0x80] ss:$16 sps:$4 sm:$0xff]  }
 0x2f7   : > { %4723 = vmatmul.mubr.msk.bf16.vlgmr.msra.gmra.mrb[68].mxu1 %vm1511_vm1, %v2727_v7  ;;  %v6584_v7 = vld [vmem:[%s6907_s6 + $0x64] ss:$16 sps:$4 sm:$0xff]  }
 0x2f8   : > { %2911 = vmatpush1.bf16.msra.mxu1 %v5533_v35  ;;  %2942 = vmatprep.mubr.bf16.mxu1 %v5725_v2  ;;  %v6607_v35 = vld [vmem:[%s6907_s6 + $0xa4] ss:$16 sps:$4 sm:$0xff]  }
 0x2f9   : > { %2912 = vmatprep.subr.bf16.mxu1 %v5538_v54  ;;  %3917 = vmatprep.subr.bf16.mxu0 %v6584_v7  ;;  %v6613_v54 = vld [vmem:[%s6907_s6 + $0xa0] ss:$16 sps:$4 sm:$0xff]  }
 0x2fa   : > { %3918 = vmatpush1.bf16.msra.mxu0 %v6589_v8 }
 0x2fb   : > { %3919 = vmatprep.subr.bf16.mxu0 %v6596_v9 }
 0x2fc   : > { %2913 = vmatpush1.bf16.msra.mxu1 %v5536_v10  ;;  %v6619_v10 = vld [vmem:[%s6907_s6 + $0xc4] ss:$16 sps:$4 sm:$0xff]  }
 0x2fd   : > { %2951 = vmatprep.subr.bf16.mxu1 %v5541_v11  ;;  %v6625_v11 = vld [vmem:[%s6907_s6 + $0xc0] ss:$16 sps:$4 sm:$0xff]  }
 0x2fe   : > { %3920 = vmatpush1.bf16.msra.mxu0 %v6601_v30 }
 0x2ff   : > { %4740 = vmatmul.mubr.msk.bf16.vlgmr.msra.gmra.mrb[64].mxu1 %vm1511_vm1, %v2857_v25  ;;  %3921 = vmatprep.subr.bf16.mxu0 %v6607_v35 }
 0x300   : > { %2952 = vmatpush1.bf16.msra.mxu1 %v5539_v12  ;;  %2983 = vmatprep.mubr.bf16.mxu1 %v5725_v2  ;;  %v6637_v12 = vld [vmem:[%s6907_s6 + $0xe0] ss:$16 sps:$4 sm:$0xff]  }
 0x301   : > { %2953 = vmatprep.subr.bf16.mxu1 %v5544_v13  ;;  %v6643_v13 = vld [vmem:[%s6907_s6 + $0xc] ss:$16 sps:$4 sm:$0xff]  }
 0x302   : > { %3922 = vmatpush1.bf16.msra.mxu0 %v6613_v54 }
 0x303   : > { %3923 = vmatprep.subr.bf16.mxu0 %v6619_v10 }
 0x304   : > { %2954 = vmatpush1.bf16.msra.mxu1 %v5542_v14  ;;  %v1438_v14 = vlaneseq }
 0x305   : > { %3050 = vmatprep.subr.bf16.mxu1 %v5547_v60 }
 0x306   : > { %3924 = vmatpush1.bf16.msra.mxu0 %v6625_v11  ;;  %v1439_v60 = vshrl.u32 %v1438_v14, 7  ;;  %v6692_v14 = vld [vmem:[%s6907_s6 + $0x48] ss:$16 sps:$4 sm:$0xff]  }
 0x307   : > { %4741 = vmatmul.mubr.msk.bf16.vlgmr.msra.gmra.mrb[68].mxu1 %vm1511_vm1, %v2857_v25  ;;  %v6631_v25 = vld [vmem:[%s6907_s6 + $0xe4] ss:$16 sps:$4 sm:$0xff]  }
 0x308   : > { %3051 = vmatpush1.bf16.msra.mxu1 %v5545_v17  ;;  %3082 = vmatprep.mubr.bf16.mxu1 %v5725_v2  ;;  %v1440_v17 = vsub.s32 0, %v1439_v60 }
 0x309   : > { %3052 = vmatprep.subr.bf16.mxu1 %v5550_v18  ;;  %3925 = vmatprep.subr.bf16.mxu0 %v6631_v25  ;;  %v1436_v18 = vld [vmem:[%s6906_s5] sm:$0xf] }
 0x30a   : > { %3926 = vmatpush1.bf16.msra.mxu0 %v6637_v12 }
 0x30b   : > { %3952 = vmatprep.subr.bf16.mxu0 %v6643_v13 }
 0x30c   : > { %3053 = vmatpush1.bf16.msra.mxu1 %v5548_v19  ;;  %v1444_v19 = vsub.s32 1, %v1439_v60 }
 0x30d   : > { %3091 = vmatprep.subr.bf16.mxu1 %v5553_v20  ;;  %v1441_v20 = vrot.slane %v1436_v18, %v1440_v17  ;;  %v6704_v17 = vld [vmem:[%s6907_s6 + $0x68] ss:$16 sps:$4 sm:$0xff]  }
 0x30f   : > { %4758 = vmatmul.mubr.msk.bf16.vlgmr.msra.gmra.mrb[64].mxu1 %vm1511_vm1, %v3006_v22 }
 0x310   : > { %3092 = vmatpush1.bf16.msra.mxu1 %v5551_v21  ;;  %3123 = vmatprep.mubr.bf16.mxu1 %v5725_v2  ;;  %v1445_v21 = vrot.slane %v1436_v18, %v1444_v19  ;;  %v6716_v19 = vld [vmem:[%s6907_s6 + $0x88] ss:$16 sps:$4 sm:$0xff]  }
 0x311   : > { %3093 = vmatprep.subr.bf16.mxu1 %v5556_v23 }
 0x314   : > { %3094 = vmatpush1.bf16.msra.mxu1 %v5554_v24 }
 0x315   : > { %3189 = vmatprep.subr.bf16.mxu1 %v5559_v26 }
 0x317   : > { %4759 = vmatmul.mubr.msk.bf16.vlgmr.msra.gmra.mrb[68].mxu1 %vm1511_vm1, %v3006_v22 }
 0x318   : > { %3190 = vmatpush1.bf16.msra.mxu1 %v5557_v27  ;;  %3221 = vmatprep.mubr.bf16.mxu1 %v5725_v2 }
 0x319   : > { %3191 = vmatprep.subr.bf16.mxu1 %v5562_v28  ;;  %v1452_v28 = vsub.s32 3, %v1439_v60 }
 0x31c   : > { %3192 = vmatpush1.bf16.msra.mxu1 %v5560_v29 }
 0x31d   : > { %3230 = vmatprep.subr.bf16.mxu1 %v5565_v43 }
 0x31f   : > { %4776 = vmatmul.mubr.msk.bf16.vlgmr.msra.gmra.mrb[64].mxu1 %vm1511_vm1, %v3136_v31 }
 0x320   : > { %3231 = vmatpush1.bf16.msra.mxu1 %v5563_v32  ;;  %3262 = vmatprep.mubr.bf16.mxu1 %v5725_v2  ;;  %v1448_v32 = vsub.s32 2, %v1439_v60  ;;  %v6698_v60 = vld [vmem:[%s6907_s6 + $0x6c] ss:$16 sps:$4 sm:$0xff]  }
 0x321   : > { %3232 = vmatprep.subr.bf16.mxu1 %v5568_v33  ;;  %v1453_v33 = vrot.slane %v1436_v18, %v1452_v28  ;;  %v6752_v28 = vld [vmem:[%s6907_s6 + $0xe8] ss:$16 sps:$4 sm:$0xff]  }
 0x324   : > { %3233 = vmatpush1.bf16.msra.mxu1 %v5566_v34 }
 0x325   : > { %3329 = vmatprep.subr.bf16.mxu1 %v5571_v15  ;;  %v1449_v15 = vrot.slane %v1436_v18, %v1448_v32  ;;  %v6710_v18 = vld [vmem:[%s6907_s6 + $0x8c] ss:$16 sps:$4 sm:$0xff]  }
 0x327   : > { %4777 = vmatmul.mubr.msk.bf16.vlgmr.msra.gmra.mrb[68].mxu1 %vm1511_vm1, %v3136_v31 }
 0x328   : > { %3330 = vmatpush1.bf16.msra.mxu1 %v5569_v36  ;;  %3361 = vmatprep.mubr.bf16.mxu1 %v5725_v2 }
 0x329   : > { %3331 = vmatprep.subr.bf16.mxu1 %v5574_v37 }
 0x32c   : > { %3332 = vmatpush1.bf16.msra.mxu1 %v5572_v52 }
 0x32d   : > { %3370 = vmatprep.subr.bf16.mxu1 %v5577_v39 }
 0x32f   : > { %4794 = vmatmul.mubr.msk.bf16.vlgmr.msra.gmra.mrb[64].mxu1 %vm1511_vm1, %v3285_v41 }
 0x330   : > { %3371 = vmatpush1.bf16.msra.mxu1 %v5575_v40  ;;  %3402 = vmatprep.mubr.bf16.mxu1 %v5725_v2 }
 0x331   : > { %3372 = vmatprep.subr.bf16.mxu1 %v5580_v44 }
 0x334   : > { %3373 = vmatpush1.bf16.msra.mxu1 %v5578_v42 }
 0x335   : > { %3468 = vmatprep.subr.bf16.mxu1 %v5583_v45 }
 0x337   : > { %4795 = vmatmul.mubr.msk.bf16.vlgmr.msra.gmra.mrb[68].mxu1 %vm1511_vm1, %v3285_v41 }
 0x338   : > { %3469 = vmatpush1.bf16.msra.mxu1 %v5581_v46  ;;  %3500 = vmatprep.mubr.bf16.mxu1 %v5725_v2 }
 0x339   : > { %3470 = vmatprep.subr.bf16.mxu1 %v5586_v47 }
 0x33c   : > { %3471 = vmatpush1.bf16.msra.mxu1 %v5584_v48 }
 0x33d   : > { %3509 = vmatprep.subr.bf16.mxu1 %v5589_v49 }
 0x33f   : > { %4812 = vmatmul.mubr.msk.bf16.vlgmr.msra.gmra.mrb[64].mxu1 %vm1511_vm1, %v3415_v50 }
 0x340   : > { %3510 = vmatpush1.bf16.msra.mxu1 %v5587_v51  ;;  %3541 = vmatprep.mubr.bf16.mxu1 %v5725_v2 }
 0x341   : > { %3511 = vmatprep.subr.bf16.mxu1 %v5592_v53 }
 0x344   : > { %3512 = vmatpush1.bf16.msra.mxu1 %v5590_v55 }
 0x345   : > { %3608 = vmatprep.subr.bf16.mxu1 %v5595_v38 }
 0x347   : > { %4813 = vmatmul.mubr.msk.bf16.vlgmr.msra.gmra.mrb[68].mxu1 %vm1511_vm1, %v3415_v50 }
 0x348   : > { %3609 = vmatpush1.bf16.msra.mxu1 %v5593_v56  ;;  %3640 = vmatprep.mubr.bf16.mxu1 %v5725_v2 }
 0x349   : > { %3610 = vmatprep.subr.bf16.mxu1 %v5598_v6 }
 0x34c   : > { %3611 = vmatpush1.bf16.msra.mxu1 %v5596_v57 }
 0x34d   : > { %3649 = vmatprep.subr.bf16.mxu1 %v5601_v58  ;;  %v6668_v58 = vld [vmem:[%s6907_s6 + $0x8] ss:$16 sps:$4 sm:$0xff]  }
 0x34f   : > { %4830 = vmatmul.mubr.msk.bf16.vlgmr.msra.gmra.mrb[64].mxu1 %vm1511_vm1, %v3564_v62 }
 0x350   : > { %3650 = vmatpush1.bf16.msra.mxu1 %v5599_v59  ;;  %3681 = vmatprep.mubr.bf16.mxu1 %v5725_v2 }
 0x351   : > { %3651 = vmatprep.subr.bf16.mxu1 %v5604_v63  ;;  %v6679_v63 = vld [vmem:[%s6907_s6 + $0x28] ss:$16 sps:$4 sm:$0xff]  }
 0x354   : > { %3652 = vmatpush1.bf16.msra.mxu1 %v5602_v0  ;;  %v6686_v0 = vld [vmem:[%s6907_s6 + $0x4c] ss:$16 sps:$4 sm:$0xff]  }
 0x357   : > { %4831 = vmatmul.mubr.msk.bf16.vlgmr.msra.gmra.mrb[68].mxu1 %vm1511_vm1, %v3564_v62  ;;  %v6673_v62 = vld [vmem:[%s6907_s6 + $0x2c] ss:$16 sps:$4 sm:$0xff]  }
 0x422   : > { %v3642_v22 = vpop.f32.mrb[64].mxu1 }
 0x423   : > { %v6650_v23 = vadd.f32 %v3642_v22, %v1441_v20  ;;  %v3644_v24 = vpop.f32.mrb[65].mxu1  ;;  %v6722_v20 = vld [vmem:[%s6907_s6 + $0xac] ss:$16 sps:$4 sm:$0xff]  }
 0x424   : > { %v6652_v26 = vadd.f32 %v3644_v24, %v1445_v21  ;;  %v3646_v27 = vpop.f32.mrb[66].mxu1  ;;  %v6728_v21 = vld [vmem:[%s6907_s6 + $0xa8] ss:$16 sps:$4 sm:$0xff]   ;;  %v6734_v22 = vld [vmem:[%s6907_s6 + $0xcc] ss:$16 sps:$4 sm:$0xff]  }
 0x425   : > { %v4832_v29 = vmul.f32 -1.442695, %v6650_v23  ;;  %v3647_v43 = vpop.f32.mrb[67].mxu1  ;;  %v6740_v24 = vld [vmem:[%s6907_s6 + $0xc8] ss:$16 sps:$4 sm:$0xff]  }
 0x426   : > { %v4833_v31 = vmul.f32 -1.442695, %v6652_v26  ;;  %v6746_v27 = vld [vmem:[%s6907_s6 + $0xec] ss:$16 sps:$4 sm:$0xff]  }
 0x427   : > { %5653 = vpow2.f32 %v4832_v29 }
 0x428   : > { %5655 = vpow2.f32 %v4833_v31 }
 0x42a   : > { %v3683_v34 = vpop.f32.mrb[68].mxu1 }
 0x42b   : > { %v3685_v36 = vpop.f32.mrb[69].mxu1  ;;  %v6659_v41 = vadd.f32 %v3683_v34, %v1449_v15 }
 0x42c   : > { %v6656_v37 = vadd.f32 %v3685_v36, %v1453_v33  ;;  %v3687_v52 = vpop.f32.mrb[70].mxu1 }
 0x42d   : > { %v3688_v39 = vpop.f32.mrb[71].mxu1 }
 0x42e   : > { %v4834_v40 = vmul.f32 -1.442695, %v6656_v37 }
 0x430   : > { %5657 = vpow2.f32 %v4834_v40 }
 0x431   : > { %v5654_v44 = vpop.eup %5653  ;;  %5659 = vtanh.f32 %v6659_v41 }
 0x432   : > { %v5656_v42 = vpop.eup %5655  ;;  %v3729_v45 = vadd.f32 1.0, %v5654_v44 }
 0x433   : > { %v3735_v46 = vadd.f32 1.0, %v5656_v42 }
 0x434   : > { %5661 = vrcp.f32 %v3729_v45 }
 0x435   : > { %5663 = vrcp.f32 %v3735_v46 }
 0x43a   : > { %v5658_v47 = vpop.eup %5657 }
 0x43b   : > { %v5660_v48 = vpop.eup %5659  ;;  %v3742_v53 = vadd.f32 1.0, %v5658_v47 }
 0x43d   : > { %5665 = vrcp.f32 %v3742_v53 }
 0x43e   : > { %v5662_v49 = vpop.eup %5661 }
 0x43f   : > { %v5664_v50 = vpop.eup %5663  ;;  %v3746_v51 = vmul.f32 %v5662_v49, %v5660_v48 }
 0x440   : > { %v3745_v55 = vmul.f32 0.0, %v5664_v50 }
 0x442   : > { %v6662_v38 = vadd.f32 %v3746_v51, %v3745_v55 }
 0x444   : > { %5667 = vtanh.f32 %v6662_v38  ;;  %v4029_v45 = vrot.slane %v6662_v38, 7 }
 0x447   : > { %v5666_v56 = vpop.eup %5665 }
 0x44e   : > { %v5668_v6 = vpop.eup %5667 }
 0x44f   : > { %v3749_v57 = vmul.f32 %v5668_v6, %v5666_v56 }
 0x451   : > { %v3750_v59 = vpack.c.bf16 %v3749_v57, %v3749_v57 }
 0x453   : > { %3944 = vmatmul.mubr.bf16.vlgmr.msra.gmra.mrb[80].mxu0 %v3750_v59 }
 0x454   : > { %3953 = vmatpush1.bf16.msra.mxu0 %v6668_v58  ;;  %3984 = vmatprep.mubr.bf16.mxu0 %v5725_v2 }
 0x455   : > { %3954 = vmatprep.subr.bf16.mxu0 %v6673_v62 }
 0x458   : > { %3955 = vmatpush1.bf16.msra.mxu0 %v6679_v63 }
 0x459   : > { %3956 = vmatprep.subr.bf16.mxu0 %v6686_v0 }
 0x45c   : > { %3957 = vmatpush1.bf16.msra.mxu0 %v6692_v14 }
 0x45d   : > { %3958 = vmatprep.subr.bf16.mxu0 %v6698_v60 }
 0x460   : > { %3959 = vmatpush1.bf16.msra.mxu0 %v6704_v17 }
 0x461   : > { %3960 = vmatprep.subr.bf16.mxu0 %v6710_v18 }
 0x464   : > { %3961 = vmatpush1.bf16.msra.mxu0 %v6716_v19 }
 0x465   : > { %3962 = vmatprep.subr.bf16.mxu0 %v6722_v20 }
 0x468   : > { %3963 = vmatpush1.bf16.msra.mxu0 %v6728_v21 }
 0x469   : > { %3964 = vmatprep.subr.bf16.mxu0 %v6734_v22 }
 0x46c   : > { %3965 = vmatpush1.bf16.msra.mxu0 %v6740_v24 }
 0x46d   : > { %3966 = vmatprep.subr.bf16.mxu0 %v6746_v27 }
 0x470   : > { %3967 = vmatpush1.bf16.msra.mxu0 %v6752_v28 }
 0x471   : > { %4041 = vmatprep.subr.bf16.mxu0 %v6548_v61 }
 0x473   : > { %3985 = vmatmul.mubr.bf16.vlgmr.msra.gmra.mrb[84].mxu0 %v3750_v59 }
 0x474   : > { %4042 = vmatpush1.bf16.msra.mxu0 %v6553_v1  ;;  %4073 = vmatprep.mubr.bf16.mxu0 %v5725_v2 }
 0x475   : > { %4043 = vmatprep.subr.bf16.mxu0 %v6560_v16 }
 0x478   : > { %4044 = vmatpush1.bf16.msra.mxu0 %v6565_v3 }
 0x479   : > { %4045 = vmatprep.subr.bf16.mxu0 %v6572_v4 }
 0x47c   : > { %4046 = vmatpush1.bf16.msra.mxu0 %v6577_v5 }
 0x47d   : > { %4047 = vmatprep.subr.bf16.mxu0 %v6584_v7 }
 0x480   : > { %4048 = vmatpush1.bf16.msra.mxu0 %v6589_v8 }
 0x481   : > { %4049 = vmatprep.subr.bf16.mxu0 %v6596_v9 }
 0x484   : > { %4050 = vmatpush1.bf16.msra.mxu0 %v6601_v30 }
 0x485   : > { %4051 = vmatprep.subr.bf16.mxu0 %v6607_v35 }
 0x488   : > { %4052 = vmatpush1.bf16.msra.mxu0 %v6613_v54 }
 0x489   : > { %4053 = vmatprep.subr.bf16.mxu0 %v6619_v10 }
 0x48c   : > { %4054 = vmatpush1.bf16.msra.mxu0 %v6625_v11 }
 0x48d   : > { %4055 = vmatprep.subr.bf16.mxu0 %v6631_v25 }
 0x490   : > { %4056 = vmatpush1.bf16.msra.mxu0 %v6637_v12 }
 0x491   : > { %4082 = vmatprep.subr.bf16.mxu0 %v6643_v13 }
 0x526   : > { %v3945_v29 = vpop.f32.mrb[80].mxu0 }
 0x527   : > { %v3947_v43 = vpop.f32.mrb[81].mxu0  ;;  %v3997_v36 = vrot.slane %v3945_v29, 7 }
 0x528   : > { %v3998_v31 = vrot.slane %v3947_v43, 7  ;;  %v3949_v32 = vpop.f32.mrb[82].mxu0 }
 0x529   : > { %v3950_v33 = vpop.f32.mrb[83].mxu0  ;;  %v4005_v52 = vadd.f32 %v6650_v23, %v3997_v36 }
 0x52a   : > { %v4006_v34 = vadd.f32 %v6652_v26, %v3998_v31 }
 0x52b   : > { %v4867_v39 = vmul.f32 -1.442695, %v4005_v52 }
 0x52c   : > { %v4868_v15 = vmul.f32 -1.442695, %v4006_v34 }
 0x52e   : > { %5669 = vpow2.f32 %v4868_v15 }
 0x52f   : > { %5671 = vpow2.f32 %v4867_v39 }
 0x538   : > { %v5670_v40 = vpop.eup %5669 }
 0x539   : > { %v4018_v44 = vadd.f32 1.0, %v5670_v40  ;;  %v5672_v42 = vpop.eup %5671 }
 0x53a   : > { %v4012_v47 = vadd.f32 1.0, %v5672_v42 }
 0x53b   : > { %5673 = vrcp.f32 %v4018_v44 }
 0x53c   : > { %5675 = vrcp.f32 %v4012_v47 }
 0x545   : > { %v5674_v46 = vpop.eup %5673 }
 0x546   : > { %v4031_v48 = vmul.f32 %v5674_v46, %v4029_v45  ;;  %v3986_v49 = vpop.f32.mrb[84].mxu0  ;;  %v5676_v29 = vpop.eup %5675 }
 0x547   : > { %v3999_v50 = vrot.slane %v3986_v49, 7  ;;  %v3988_v51 = vpop.f32.mrb[85].mxu0 }
 0x548   : > { %v4000_v53 = vrot.slane %v3988_v51, 7  ;;  %v3990_v55 = vpop.f32.mrb[86].mxu0 }
 0x549   : > { %v4007_v56 = vadd.f32 %v6659_v41, %v3999_v50  ;;  %v3991_v6 = vpop.f32.mrb[87].mxu0 }
 0x54a   : > { %v4008_v57 = vadd.f32 %v6656_v37, %v4000_v53 }
 0x54b   : > { %5677 = vtanh.f32 %v4007_v56 }
 0x54c   : > { %v4869_v59 = vmul.f32 -1.442695, %v4008_v57 }
 0x54e   : > { %5679 = vpow2.f32 %v4869_v59 }
 0x555   : > { %v5678_v43 = vpop.eup %5677 }
 0x556   : > { %v4032_v38 = vmul.f32 %v5678_v43, %v5676_v29 }
 0x558   : > { %v5680_v31 = vpop.eup %5679  ;;  %v6779_v32 = vadd.f32 %v4032_v38, %v4031_v48 }
 0x559   : > { %v4025_v33 = vadd.f32 1.0, %v5680_v31 }
 0x55a   : > { %5681 = vtanh.f32 %v6779_v32 }
 0x55b   : > { %5683 = vrcp.f32 %v4025_v33  ;;  %v4306_v33 = vld [vmem:[%s6908_s7 + $0x58] sm:$0xff] }
 0x564   : > { %v5682_v34 = vpop.eup %5681 }
 0x565   : > { %v5684_v15 = vpop.eup %5683 }
 0x566   : > { %v4035_v36 = vmul.f32 %v5684_v15, %v5682_v34  ;;  %v4307_v15 = vld [vmem:[%s6908_s7 + $0x60] sm:$0xff] }
 0x568   : > { %v4036_v52 = vpack.c.bf16 %v4035_v36, %v4035_v36  ;;  %v4308_v36 = vld [vmem:[%s6908_s7 + $0x68] sm:$0xff] }
 0x56a   : > { %v4038_v39 = vshrl.u32 %v4036_v52, 16  ;;  %v5728_v52 = vmov 0.0  }
 0x56c   : > { %4074 = vmatmul.mubr.bf16.vlgmr.msra.gmra.mrb[88].mxu0 %v4038_v39 }
 0x56d   : > { %4083 = vmatpush1.bf16.msra.mxu0 %v6668_v58  ;;  %4114 = vmatprep.mubr.bf16.mxu0 %v5725_v2 }
 0x56e   : > { %4084 = vmatprep.subr.bf16.mxu0 %v6673_v62 }
 0x571   : > { %4085 = vmatpush1.bf16.msra.mxu0 %v6679_v63 }
 0x572   : > { %4086 = vmatprep.subr.bf16.mxu0 %v6686_v0 }
 0x575   : > { %4087 = vmatpush1.bf16.msra.mxu0 %v6692_v14 }
 0x576   : > { %4088 = vmatprep.subr.bf16.mxu0 %v6698_v60 }
 0x579   : > { %4089 = vmatpush1.bf16.msra.mxu0 %v6704_v17 }
 0x57a   : > { %4090 = vmatprep.subr.bf16.mxu0 %v6710_v18 }
 0x57d   : > { %4091 = vmatpush1.bf16.msra.mxu0 %v6716_v19 }
 0x57e   : > { %4092 = vmatprep.subr.bf16.mxu0 %v6722_v20 }
 0x581   : > { %4093 = vmatpush1.bf16.msra.mxu0 %v6728_v21 }
 0x582   : > { %4094 = vmatprep.subr.bf16.mxu0 %v6734_v22 }
 0x585   : > { %4095 = vmatpush1.bf16.msra.mxu0 %v6740_v24 }
 0x586   : > { %4096 = vmatprep.subr.bf16.mxu0 %v6746_v27 }
 0x589   : > { %4097 = vmatpush1.bf16.msra.mxu0 %v6752_v28 }
 0x58a   : > { %4170 = vmatprep.subr.bf16.mxu0 %v6548_v61 }
 0x58c   : > { %4115 = vmatmul.mubr.bf16.vlgmr.msra.gmra.mrb[92].mxu0 %v4038_v39  ;;  %v5150_v39 = vpack.c.bf16 %v4308_v36, %v4307_v15 }
 0x58d   : > { %4171 = vmatpush1.bf16.msra.mxu0 %v6553_v1  ;;  %4202 = vmatprep.mubr.bf16.mxu0 %v5725_v2 }
 0x58e   : > { %4172 = vmatprep.subr.bf16.mxu0 %v6560_v16 }
 0x591   : > { %4173 = vmatpush1.bf16.msra.mxu0 %v6565_v3 }
 0x592   : > { %4174 = vmatprep.subr.bf16.mxu0 %v6572_v4 }
 0x595   : > { %4175 = vmatpush1.bf16.msra.mxu0 %v6577_v5 }
 0x596   : > { %4176 = vmatprep.subr.bf16.mxu0 %v6584_v7 }
 0x599   : > { %4177 = vmatpush1.bf16.msra.mxu0 %v6589_v8 }
 0x59a   : > { %4178 = vmatprep.subr.bf16.mxu0 %v6596_v9 }
 0x59d   : > { %4179 = vmatpush1.bf16.msra.mxu0 %v6601_v30 }
 0x59e   : > { %4180 = vmatprep.subr.bf16.mxu0 %v6607_v35 }
 0x5a1   : > { %4181 = vmatpush1.bf16.msra.mxu0 %v6613_v54 }
 0x5a2   : > { %4182 = vmatprep.subr.bf16.mxu0 %v6619_v10 }
 0x5a5   : > { %4183 = vmatpush1.bf16.msra.mxu0 %v6625_v11  ;;  %v4159_v11 = vrot.slane %v6779_v32, 7  ;;  %v4305_v32 = vld [vmem:[%s6908_s7 + $0x50] sm:$0xff] }
 0x5a6   : > { %4184 = vmatprep.subr.bf16.mxu0 %v6631_v25  ;;  %v5147_v34 = vpack.c.bf16 %v4306_v33, %v4305_v32 }
 0x5a9   : > { %4185 = vmatpush1.bf16.msra.mxu0 %v6637_v12 }
 0x5aa   : > { %4211 = vmatprep.subr.bf16.mxu0 %v6643_v13 }
 0x63f   : > { %v4075_v61 = vpop.f32.mrb[88].mxu0 }
 0x640   : > { %v4077_v1 = vpop.f32.mrb[89].mxu0  ;;  %v4127_v8 = vrot.slane %v4075_v61, 6  ;;  %v4309_v61 = vld [vmem:[%s6908_s7 + $0x70] sm:$0xff] }
 0x641   : > { %v4128_v16 = vrot.slane %v4077_v1, 6  ;;  %v4079_v3 = vpop.f32.mrb[90].mxu0  ;;  %v4310_v1 = vld [vmem:[%s6908_s7 + $0x78] sm:$0xff] }
 0x642   : > { %v4080_v4 = vpop.f32.mrb[91].mxu0  ;;  %v4135_v9 = vadd.f32 %v6650_v23, %v4127_v8 }
 0x643   : > { %v4136_v5 = vadd.f32 %v6652_v26, %v4128_v16  ;;  %v5153_v16 = vpack.c.bf16 %v4310_v1, %v4309_v61 }
 0x644   : > { %v4870_v30 = vmul.f32 -1.442695, %v4135_v9 }
 0x645   : > { %v4871_v7 = vmul.f32 -1.442695, %v4136_v5 }
 0x647   : > { %5685 = vpow2.f32 %v4871_v7 }
 0x648   : > { %5687 = vpow2.f32 %v4870_v30 }
 0x651   : > { %v5686_v35 = vpop.eup %5685 }
 0x652   : > { %v4148_v54 = vadd.f32 1.0, %v5686_v35  ;;  %v5688_v10 = vpop.eup %5687 }
 0x653   : > { %v4142_v12 = vadd.f32 1.0, %v5688_v10 }
 0x654   : > { %5689 = vrcp.f32 %v4148_v54 }
 0x655   : > { %5691 = vrcp.f32 %v4142_v12 }
 0x65e   : > { %v5690_v25 = vpop.eup %5689 }
 0x65f   : > { %v4161_v13 = vmul.f32 %v5690_v25, %v4159_v11  ;;  %v4116_v40 = vpop.f32.mrb[92].mxu0  ;;  %v5692_v51 = vpop.eup %5691 }
 0x660   : > { %v4129_v44 = vrot.slane %v4116_v40, 6  ;;  %v4118_v42 = vpop.f32.mrb[93].mxu0 }
 0x661   : > { %v4130_v45 = vrot.slane %v4118_v42, 6  ;;  %v4120_v46 = vpop.f32.mrb[94].mxu0 }
 0x662   : > { %v4137_v47 = vadd.f32 %v6659_v41, %v4129_v44  ;;  %v4121_v48 = vpop.f32.mrb[95].mxu0 }
 0x663   : > { %v4138_v49 = vadd.f32 %v6656_v37, %v4130_v45 }
 0x664   : > { %5693 = vtanh.f32 %v4137_v47 }
 0x665   : > { %v4872_v50 = vmul.f32 -1.442695, %v4138_v49 }
 0x667   : > { %5695 = vpow2.f32 %v4872_v50 }
 0x66e   : > { %v5694_v53 = vpop.eup %5693 }
 0x66f   : > { %v4162_v55 = vmul.f32 %v5694_v53, %v5692_v51 }
 0x671   : > { %v5696_v56 = vpop.eup %5695  ;;  %v6821_v6 = vadd.f32 %v4162_v55, %v4161_v13 }
 0x672   : > { %v4155_v57 = vadd.f32 1.0, %v5696_v56 }
 0x673   : > { %5697 = vtanh.f32 %v6821_v6  ;;  %v4288_v13 = vrot.slane %v6821_v6, 7 }
 0x674   : > { %5699 = vrcp.f32 %v4155_v57 }
 0x67d   : > { %v5698_v59 = vpop.eup %5697 }
 0x67e   : > { %v5700_v29 = vpop.eup %5699 }
 0x67f   : > { %v4165_v43 = vmul.f32 %v5700_v29, %v5698_v59 }
 0x681   : > { %v4166_v38 = vpack.c.bf16 %v4165_v43, %v4165_v43 }
 0x683   : > { %v4168_v31 = vrot.slane %v4166_v38, 1 }
 0x685   : > { %4203 = vmatmul.mubr.bf16.vlgmr.msra.gmra.mrb[96].mxu0 %v4168_v31 }
 0x686   : > { %4212 = vmatpush1.bf16.msra.mxu0 %v6668_v58  ;;  %4243 = vmatprep.mubr.bf16.mxu0 %v5725_v2  ;;  %v4295_v2 = vld [vmem:[%s6908_s7] sm:$0xff]  ;;  %v4296_v58 = vld [vmem:[%s6908_s7 + $0x8] sm:$0xff] }
 0x687   : > { %4213 = vmatprep.subr.bf16.mxu0 %v6673_v62  ;;  %v5132_v62 = vpack.c.bf16 %v4296_v58, %v4295_v2 }
 0x68a   : > { %4214 = vmatpush1.bf16.msra.mxu0 %v6679_v63  ;;  %v5726_v63 = vmov 0.0|0.0  }
 0x68b   : > { %4215 = vmatprep.subr.bf16.mxu0 %v6686_v0  ;;  %v4297_v0 = vld [vmem:[%s6908_s7 + $0x10] sm:$0xff] }
 0x68e   : > { %4216 = vmatpush1.bf16.msra.mxu0 %v6692_v14  ;;  %v4298_v14 = vld [vmem:[%s6908_s7 + $0x18] sm:$0xff] }
 0x68f   : > { %4217 = vmatprep.subr.bf16.mxu0 %v6698_v60  ;;  %v5135_v60 = vpack.c.bf16 %v4298_v14, %v4297_v0 }
 0x692   : > { %4218 = vmatpush1.bf16.msra.mxu0 %v6704_v17  ;;  %v4299_v17 = vld [vmem:[%s6908_s7 + $0x20] sm:$0xff] }
 0x693   : > { %4219 = vmatprep.subr.bf16.mxu0 %v6710_v18  ;;  %v4300_v18 = vld [vmem:[%s6908_s7 + $0x28] sm:$0xff] }
 0x696   : > { %4220 = vmatpush1.bf16.msra.mxu0 %v6716_v19  ;;  %v5138_v19 = vpack.c.bf16 %v4300_v18, %v4299_v17 }
 0x697   : > { %4221 = vmatprep.subr.bf16.mxu0 %v6722_v20  ;;  %v4301_v20 = vld [vmem:[%s6908_s7 + $0x30] sm:$0xff] }
 0x69a   : > { %4222 = vmatpush1.bf16.msra.mxu0 %v6728_v21  ;;  %v4302_v21 = vld [vmem:[%s6908_s7 + $0x38] sm:$0xff] }
 0x69b   : > { %4223 = vmatprep.subr.bf16.mxu0 %v6734_v22  ;;  %v5141_v22 = vpack.c.bf16 %v4302_v21, %v4301_v20 }
 0x69e   : > { %4224 = vmatpush1.bf16.msra.mxu0 %v6740_v24  ;;  %v4303_v24 = vld [vmem:[%s6908_s7 + $0x40] sm:$0xff] }
 0x69f   : > { %4225 = vmatprep.subr.bf16.mxu0 %v6746_v27  ;;  %v4304_v27 = vld [vmem:[%s6908_s7 + $0x48] sm:$0xff] }
 0x6a2   : > { %4226 = vmatpush1.bf16.msra.mxu0 %v6752_v28  ;;  %v5144_v28 = vpack.c.bf16 %v4304_v27, %v4303_v24 }
 0x6a3   : > { %5131 = vmatprep.subr.bf16.mxu0 %v5726_v63 }
 0x6a5   : > { %4244 = vmatmul.mubr.bf16.vlgmr.msra.gmra.mrb[100].mxu0 %v4168_v31  ;;  %v4311_v31 = vld [vmem:[#allocation2] sm:$0x1] }
 0x6a6   : > { %5133 = vmatpush3.bf16.msra.mxu0 %v5132_v62  ;;  %5096 = vmatprep.mubr.msk.f32.mxu0 %vm5727_vm2, %v5728_v52 }
 0x6a7   : > { %5134 = vmatprep.subr.bf16.mxu0 %v5726_v63 }
 0x6aa   : > { %5136 = vmatpush3.bf16.msra.mxu0 %v5135_v60 }
 0x6ab   : > { %5137 = vmatprep.subr.bf16.mxu0 %v5726_v63 }
 0x6ae   : > { %5139 = vmatpush3.bf16.msra.mxu0 %v5138_v19 }
 0x6af   : > { %5140 = vmatprep.subr.bf16.mxu0 %v5726_v63 }
 0x6b2   : > { %5142 = vmatpush3.bf16.msra.mxu0 %v5141_v22 }
 0x6b3   : > { %5143 = vmatprep.subr.bf16.mxu0 %v5726_v63 }
 0x6b6   : > { %5145 = vmatpush3.bf16.msra.mxu0 %v5144_v28 }
 0x6b7   : > { %5146 = vmatprep.subr.bf16.mxu0 %v5726_v63 }
 0x6ba   : > { %5148 = vmatpush3.bf16.msra.mxu0 %v5147_v34 }
 0x6bb   : > { %5149 = vmatprep.subr.bf16.mxu0 %v5726_v63 }
 0x6be   : > { %5151 = vmatpush3.bf16.msra.mxu0 %v5150_v39 }
 0x6bf   : > { %5152 = vmatprep.subr.bf16.mxu0 %v5726_v63 }
 0x6c2   : > { %5154 = vmatpush3.bf16.msra.mxu0 %v5153_v16 }
 0x758   : > { %v4204_v3 = vpop.f32.mrb[96].mxu0 }
 0x759   : > { %v4206_v4 = vpop.f32.mrb[97].mxu0  ;;  %v4256_v35 = vrot.slane %v4204_v3, 5 }
 0x75a   : > { %v4257_v5 = vrot.slane %v4206_v4, 5  ;;  %v4208_v7 = vpop.f32.mrb[98].mxu0 }
 0x75b   : > { %v4209_v8 = vpop.f32.mrb[99].mxu0  ;;  %v4264_v54 = vadd.f32 %v6650_v23, %v4256_v35 }
 0x75c   : > { %v4265_v9 = vadd.f32 %v6652_v26, %v4257_v5 }
 0x75d   : > { %v4873_v10 = vmul.f32 -1.442695, %v4264_v54 }
 0x75e   : > { %v4874_v30 = vmul.f32 -1.442695, %v4265_v9 }
 0x760   : > { %5701 = vpow2.f32 %v4874_v30 }
 0x761   : > { %5703 = vpow2.f32 %v4873_v10 }
 0x76a   : > { %v5702_v11 = vpop.eup %5701 }
 0x76b   : > { %v4277_v25 = vadd.f32 1.0, %v5702_v11  ;;  %v5704_v12 = vpop.eup %5703 }
 0x76c   : > { %v4271_v44 = vadd.f32 1.0, %v5704_v12 }
 0x76d   : > { %5705 = vrcp.f32 %v4277_v25 }
 0x76e   : > { %5707 = vrcp.f32 %v4271_v44 }
 0x777   : > { %v5706_v40 = vpop.eup %5705 }
 0x778   : > { %v4290_v42 = vmul.f32 %v5706_v40, %v4288_v13  ;;  %v4245_v45 = vpop.f32.mrb[100].mxu0  ;;  %v5708_v53 = vpop.eup %5707 }
 0x779   : > { %v4258_v46 = vrot.slane %v4245_v45, 5  ;;  %v4247_v47 = vpop.f32.mrb[101].mxu0 }
 0x77a   : > { %v4259_v26 = vrot.slane %v4247_v47, 5  ;;  %v4249_v48 = vpop.f32.mrb[102].mxu0 }
 0x77b   : > { %v4266_v49 = vadd.f32 %v6659_v41, %v4258_v46  ;;  %v4250_v50 = vpop.f32.mrb[103].mxu0 }
 0x77c   : > { %v4267_v23 = vadd.f32 %v6656_v37, %v4259_v26 }
 0x77d   : > { %5709 = vtanh.f32 %v4266_v49 }
 0x77e   : > { %v4875_v51 = vmul.f32 -1.442695, %v4267_v23 }
 0x780   : > { %5711 = vpow2.f32 %v4875_v51 }
 0x787   : > { %v5710_v55 = vpop.eup %5709 }
 0x788   : > { %v4291_v56 = vmul.f32 %v5710_v55, %v5708_v53 }
 0x78a   : > { %v5712_v6 = vpop.eup %5711  ;;  %v4292_v57 = vadd.f32 %v4291_v56, %v4290_v42 }
 0x78b   : > { %v4284_v59 = vadd.f32 1.0, %v5712_v6 }
 0x78c   : > { %5713 = vtanh.f32 %v4292_v57 }
 0x78d   : > { %5715 = vrcp.f32 %v4284_v59 }
 0x796   : > { %v5714_v29 = vpop.eup %5713 }
 0x797   : > { %v5716_v43 = vpop.eup %5715 }
 0x798   : > { %v4294_v41 = vmul.f32 %v5716_v43, %v5714_v29 }
 0x79a   : > { %v4313_v38 = vrot.slane %v4294_v41, 3 }
 0x79c   : > { %5097 = vmatmul.mubr.f32.vlgmr.msra.gmra.mrb[104].mxu0 %v4313_v38 }
 0x86f   : > { %v4381_v37 = vpop.f32.mrb[104].mxu0 }
 0x870   : > { %v4382_v2 = vadd.f32 %v4381_v37, %v4311_v31  ;;  %v5098_v58 = vpop.f32.mrb[105].mxu0 }
 0x872   : > { %4387 = vperm.xlu0 %5291, %v4382_v2  }
 0x8f1   : > { %v4388_v62 = vpop.permute.xlu0 %4387 }
 0x8f2   : > { %4390 = vst [vmem:[%s335_s17] sm:$0x1] %v4388_v62 }
 0x8f3 PF: > { %s21_s11 = sadd.s32 1, %s5723_s11  }
 0x8f4   : > { %p18_p5 = scmp.ge.s32.totalorder %s21_s11, 4  }
 0x8f6   :  { %20 = sbr.rel (!%p18_p5) target bundleno = 3 (0x3), region = 101 }

</bundles_post_ra>
